<compile_context>
chip_gen: v6e
topology: v6e:2x2x1
jax: 0.10.0
libtpu: 0.0.40
codegen_flags: <defaults>
</compile_context>

<pallas_src>
import functools
import math

import jax
import jax.numpy as jnp
from jax.experimental import pallas as pl
from jax.experimental.pallas import tpu as pltpu

_VMEM_LIMIT = 48 * 1024 * 1024   # headroom-safe on v7x (64 MiB physical VMEM)


# ------------------------------ tiling helper -------------------------------

def _pick_tile(dim, target, align):
    """Largest tile <= target that is a multiple of `align` and divides `dim`.

    Falls back to the full dimension (always a legal block size)."""
    if dim <= target:
        return dim
    t = (target // align) * align
    while t >= align:
        if dim % t == 0:
            return t
        t -= align
    return dim


# ----------------------------- Pallas kernels -------------------------------

def _linear_kernel(x_ref, w_ref, b_ref, o_ref, acc_ref, *, activation):
    @pl.when(pl.program_id(2) == 0)
    def _():
        acc_ref[...] = jnp.zeros_like(acc_ref)

    # x / w arrive bf16 at the pallas_call boundary (no in-kernel casts).
    acc_ref[...] += jnp.dot(x_ref[...], w_ref[...],
                            preferred_element_type=jnp.float32)

    @pl.when(pl.program_id(2) == pl.num_programs(2) - 1)
    def _():
        y = acc_ref[...] + b_ref[...]
        if activation == "gelu":
            # TODO(synk): BERT's exact erf-GELU approximated with the tanh form.
            y = jax.nn.gelu(y)
        elif activation == "tanh":
            y = jnp.tanh(y)
        o_ref[...] = y.astype(o_ref.dtype)


def linear(x, w, b, activation="none", out_dtype=jnp.bfloat16,
           tm=512, tn=512, tk=1024):
    """y = act(x @ w + b). w stored as (in, out) = torch weight transposed."""
    x = x.astype(jnp.bfloat16)
    w = w.astype(jnp.bfloat16)
    b = b.astype(jnp.float32)
    M, K = x.shape
    N = w.shape[1]
    tm = _pick_tile(M, tm, 8)
    tn = _pick_tile(N, tn, 128)
    tk = _pick_tile(K, tk, 128)     # tk >= 768 -> full K for H->H / H->4H
    return pl.pallas_call(
        functools.partial(_linear_kernel, activation=activation),
        out_shape=jax.ShapeDtypeStruct((M, N), out_dtype),
        grid=(M // tm, N // tn, K // tk),
        in_specs=[pl.BlockSpec((tm, tk), lambda i, j, k: (i, k)),
                  pl.BlockSpec((tk, tn), lambda i, j, k: (k, j)),
                  pl.BlockSpec((1, tn), lambda i, j, k: (0, j))],
        out_specs=pl.BlockSpec((tm, tn), lambda i, j, k: (i, j)),
        scratch_shapes=[pltpu.VMEM((tm, tn), jnp.float32)],
        compiler_params=pltpu.CompilerParams(
            dimension_semantics=("parallel", "parallel", "arbitrary"),
            vmem_limit_bytes=_VMEM_LIMIT),
    )(x, w, b.reshape(1, N))


def _linear_add_ln_kernel(x_ref, w_ref, b_ref, r_ref, g_ref, beta_ref,
                          o_ref, acc_ref, *, eps):
    @pl.when(pl.program_id(1) == 0)
    def _():
        acc_ref[...] = jnp.zeros_like(acc_ref)

    acc_ref[...] += jnp.dot(x_ref[...], w_ref[...],
                            preferred_element_type=jnp.float32)

    @pl.when(pl.program_id(1) == pl.num_programs(1) - 1)
    def _():
        y = acc_ref[...] + b_ref[...] + r_ref[...].astype(jnp.float32)
        mu = jnp.mean(y, axis=-1, keepdims=True)
        var = jnp.mean((y - mu) ** 2, axis=-1, keepdims=True)
        o_ref[...] = ((y - mu) * jax.lax.rsqrt(var + eps) * g_ref[...]
                      + beta_ref[...]).astype(o_ref.dtype)


def linear_add_layernorm(x, w, b, resid, gamma, beta, eps=1e-12,
                         tm=256, tk=1536):
    """LayerNorm((x @ w + b) + resid) fused in the matmul epilogue.

    LN reduces over the full hidden dim, so N is kept untiled (full H)."""
    x = x.astype(jnp.bfloat16)
    w = w.astype(jnp.bfloat16)
    resid = resid.astype(jnp.bfloat16)
    b = b.astype(jnp.float32)
    gamma = gamma.astype(jnp.float32)
    beta = beta.astype(jnp.float32)
    M, K = x.shape
    H = w.shape[1]
    tm = _pick_tile(M, tm, 8)
    tk = _pick_tile(K, tk, 128)
    return pl.pallas_call(
        functools.partial(_linear_add_ln_kernel, eps=eps),
        out_shape=jax.ShapeDtypeStruct((M, H), jnp.bfloat16),
        grid=(M // tm, K // tk),
        in_specs=[pl.BlockSpec((tm, tk), lambda i, k: (i, k)),
                  pl.BlockSpec((tk, H), lambda i, k: (k, 0)),
                  pl.BlockSpec((1, H), lambda i, k: (0, 0)),
                  pl.BlockSpec((tm, H), lambda i, k: (i, 0)),
                  pl.BlockSpec((1, H), lambda i, k: (0, 0)),
                  pl.BlockSpec((1, H), lambda i, k: (0, 0))],
        out_specs=pl.BlockSpec((tm, H), lambda i, k: (i, 0)),
        scratch_shapes=[pltpu.VMEM((tm, H), jnp.float32)],
        compiler_params=pltpu.CompilerParams(
            dimension_semantics=("parallel", "arbitrary"),
            vmem_limit_bytes=_VMEM_LIMIT),
    )(x, w, b.reshape(1, H), resid, gamma.reshape(1, H), beta.reshape(1, H))


def _layernorm_kernel(x_ref, g_ref, b_ref, o_ref, *, eps):
    x = x_ref[...].astype(jnp.float32)
    mu = jnp.mean(x, axis=-1, keepdims=True)
    var = jnp.mean((x - mu) ** 2, axis=-1, keepdims=True)
    o_ref[...] = ((x - mu) * jax.lax.rsqrt(var + eps) * g_ref[...]
                  + b_ref[...]).astype(o_ref.dtype)


def layernorm(x, gamma, beta, eps=1e-12, tm=512):
    M, H = x.shape
    tm = _pick_tile(M, tm, 8)
    return pl.pallas_call(
        functools.partial(_layernorm_kernel, eps=eps),
        out_shape=jax.ShapeDtypeStruct((M, H), jnp.bfloat16),
        grid=(M // tm,),
        in_specs=[pl.BlockSpec((tm, H), lambda i: (i, 0)),
                  pl.BlockSpec((1, H), lambda i: (0, 0)),
                  pl.BlockSpec((1, H), lambda i: (0, 0))],
        out_specs=pl.BlockSpec((tm, H), lambda i: (i, 0)),
        compiler_params=pltpu.CompilerParams(
            dimension_semantics=("parallel",)),
    )(x, gamma.astype(jnp.float32).reshape(1, H),
      beta.astype(jnp.float32).reshape(1, H))


def _attention_kernel(qkv_ref, bias_ref, o_ref, *, num_heads, hidden, scale):
    """Per-batch multi-head attention on the fused QKV layout.

    Q/K/V and the per-head columns are sliced inside VMEM (no HBM transposes);
    per-head outputs are concatenated along lanes so the store is a single
    lane-dense (S, H) block."""
    # TODO(synk): for long sequences (S >~ 1k) switch to flash-style
    #             query-block / online-softmax tiling; full (S,S) scores here.
    x = qkv_ref[0]                       # (S, 3H) bf16
    bias = bias_ref[0]                   # (1, S)  f32  (0 / -1e9 mask bias)
    H = hidden
    hd = H // num_heads
    outs = []
    for h in range(num_heads):
        # scale folded into the (S, hd) q tile instead of the (S, S) scores
        q = x[:, h * hd:(h + 1) * hd] * scale
        k = x[:, H + h * hd:H + (h + 1) * hd]
        v = x[:, 2 * H + h * hd:2 * H + (h + 1) * hd]
        s = jax.lax.dot_general(q, k, (((1,), (1,)), ((), ())),
                                preferred_element_type=jnp.float32)
        s = s + bias
        s = s - jnp.max(s, axis=-1, keepdims=True)
        p = jnp.exp(s)
        p = p * pl.reciprocal(jnp.sum(p, axis=-1, keepdims=True), approx=True)
        outs.append(jnp.dot(p.astype(jnp.bfloat16), v,
                            preferred_element_type=jnp.float32))
    o_ref[0] = jnp.concatenate(outs, axis=-1).astype(o_ref.dtype)


def self_attention(qkv, mask_bias, num_heads):
    """Multi-head self attention straight from the fused (B, S, 3H) QKV."""
    B, S, H3 = qkv.shape
    H = H3 // 3
    hd = H // num_heads
    return pl.pallas_call(
        functools.partial(_attention_kernel, num_heads=num_heads, hidden=H,
                          scale=1.0 / math.sqrt(hd)),
        out_shape=jax.ShapeDtypeStruct((B, S, H), jnp.bfloat16),
        grid=(B,),
        in_specs=[pl.BlockSpec((1, S, H3), lambda b: (b, 0, 0)),
                  pl.BlockSpec((1, 1, S), lambda b: (b, 0, 0))],
        out_specs=pl.BlockSpec((1, S, H), lambda b: (b, 0, 0)),
        compiler_params=pltpu.CompilerParams(
            dimension_semantics=("parallel",)),
    )(qkv.astype(jnp.bfloat16), mask_bias.astype(jnp.float32))


def _entity_head_kernel(cls_ref, semb_ref, wfc_ref, bfc_ref,
                        wcls_ref, wh_ref, bmlp_ref, o_ref):
    # entity_fc: Dropout(identity) + Linear(800, 800) + Tanh
    h = jnp.tanh(jnp.dot(semb_ref[...], wfc_ref[...],
                         preferred_element_type=jnp.float32) + bfc_ref[...])
    # mlp_head: Dropout(identity) + Linear(input_size + 800, input_size)
    # applied to concat([cls_vec, h])  ==  cls @ W_cls + h @ W_ent + b
    o_ref[...] = (jnp.dot(cls_ref[...], wcls_ref[...],
                          preferred_element_type=jnp.float32)
                  + jnp.dot(h.astype(jnp.bfloat16), wh_ref[...],
                            preferred_element_type=jnp.float32)
                  + bmlp_ref[...])


def entity_head(cls_vec, s_emb, w_fc, b_fc, w_mlp_cls, w_mlp_ent, b_mlp):
    B, H = cls_vec.shape
    E = s_emb.shape[1]
    return pl.pallas_call(
        _entity_head_kernel,
        out_shape=jax.ShapeDtypeStruct((B, H), jnp.float32),
        grid=(1,),
        in_specs=[pl.BlockSpec((B, H), lambda i: (0, 0)),
                  pl.BlockSpec((B, E), lambda i: (0, 0)),
                  pl.BlockSpec((E, E), lambda i: (0, 0)),
                  pl.BlockSpec((1, E), lambda i: (0, 0)),
                  pl.BlockSpec((H, H), lambda i: (0, 0)),
                  pl.BlockSpec((E, H), lambda i: (0, 0)),
                  pl.BlockSpec((1, H), lambda i: (0, 0))],
        out_specs=pl.BlockSpec((B, H), lambda i: (0, 0)),
    )(cls_vec.astype(jnp.bfloat16), s_emb.astype(jnp.bfloat16),
      w_fc.astype(jnp.bfloat16), b_fc.astype(jnp.float32).reshape(1, E),
      w_mlp_cls.astype(jnp.bfloat16), w_mlp_ent.astype(jnp.bfloat16),
      b_mlp.astype(jnp.float32).reshape(1, H))


# ------------------------------ parameter init ------------------------------

def init_params(key, *, vocab_size, max_pos, hidden, num_layers, num_heads,
                ffn, ent_vocab, ent_dim, result_size):
    del num_heads  # shape-independent here
    ks = iter(jax.random.split(key, 11 + 4 * num_layers))

    def w(shape, dtype=jnp.bfloat16, scale=0.02):
        return (scale * jax.random.normal(next(ks), shape)).astype(dtype)

    def zeros(shape):
        return jnp.zeros(shape, jnp.float32)

    def ones(shape):
        return jnp.ones(shape, jnp.float32)

    params = {
        "word_emb": w((vocab_size, hidden), jnp.float32),
        "pos_emb": w((max_pos, hidden), jnp.float32),
        "type_emb": w((2, hidden), jnp.float32),
        "emb_ln_g": ones((hidden,)),
        "emb_ln_b": zeros((hidden,)),
        "layers": [],
        # quaternion entity embeddings (emb_s_a / emb_x_a / emb_y_a / emb_z_a)
        "emb_s_a": w((ent_vocab, ent_dim), jnp.float32),
        "emb_x_a": w((ent_vocab, ent_dim), jnp.float32),
        "emb_y_a": w((ent_vocab, ent_dim), jnp.float32),
        "emb_z_a": w((ent_vocab, ent_dim), jnp.float32),
        # entity_fc: Linear(800, 800)
        "w_fc": w((4 * ent_dim, 4 * ent_dim)),
        "b_fc": zeros((4 * ent_dim,)),
        # mlp_head: Linear(input_size + 800, input_size), split [cls | ent]
        "w_mlp_cls": w((hidden, hidden)),
        "w_mlp_ent": w((4 * ent_dim, hidden)),
        "b_mlp": zeros((hidden,)),
        # out_linear_layer: Linear(input_size, result_size)
        "w_out": w((hidden, result_size)),
        "b_out": zeros((result_size,)),
    }
    for _ in range(num_layers):
        params["layers"].append({
            # fused Q|K|V projection weight
            "w_qkv": w((hidden, 3 * hidden)), "b_qkv": zeros((3 * hidden,)),
            "wo": w((hidden, hidden)), "bo": zeros((hidden,)),
            "ln1_g": ones((hidden,)), "ln1_b": zeros((hidden,)),
            "w1": w((hidden, ffn)), "b1": zeros((ffn,)),
            "w2": w((ffn, hidden)), "b2": zeros((hidden,)),
            "ln2_g": ones((hidden,)), "ln2_b": zeros((hidden,)),
        })
    return params


# ------------------------------- forward pass -------------------------------

def bert_encoder(params, input_ids, attention_mask, num_heads):
    B, S = input_ids.shape
    H = params["word_emb"].shape[1]
    # embedding lookups (gather) are glue; all dense math below is Pallas.
    x = (params["word_emb"][input_ids]
         + params["pos_emb"][None, :S, :]
         + params["type_emb"][0][None, None, :])
    h = layernorm(x.reshape(B * S, H), params["emb_ln_g"], params["emb_ln_b"])
    # attention-mask bias computed once per forward (hoisted out of the loop)
    mask_bias = (1.0 - attention_mask.astype(jnp.float32)).reshape(B, 1, S) \
        * (-1e9)
    for layer in params["layers"]:
        # fused Q|K|V projection: a single (H, 3H) matmul, output stays fused
        qkv = linear(h, layer["w_qkv"], layer["b_qkv"])      # (B*S, 3H) bf16
        # metadata-only reshape; per-head slicing happens inside the kernel
        ctx = self_attention(qkv.reshape(B, S, 3 * H), mask_bias, num_heads)
        # attention output projection fused with residual-add + LayerNorm
        h = linear_add_layernorm(ctx.reshape(B * S, H), layer["wo"],
                                 layer["bo"], h,
                                 layer["ln1_g"], layer["ln1_b"])
        ff = linear(h, layer["w1"], layer["b1"], activation="gelu")
        # FFN second matmul fused with residual-add + LayerNorm
        h = linear_add_layernorm(ff, layer["w2"], layer["b2"], h,
                                 layer["ln2_g"], layer["ln2_b"])
    return h.reshape(B, S, H)


@functools.partial(jax.jit, static_argnames=("num_heads",))
def _forward(params, batch_word_list, attention_mask, ent_idx, num_heads):
    sequence_output = bert_encoder(params, batch_word_list, attention_mask,
                                   num_heads)
    cls_vec = sequence_output[:, 0, :]                        # (B, hidden)
    if ent_idx is None:
        # dropout(p=0.1) is identity at inference
        return linear(cls_vec, params["w_out"], params["b_out"],
                      out_dtype=jnp.float32)
    emb_s = params["emb_s_a"][ent_idx]
    emb_x = params["emb_x_a"][ent_idx]
    emb_y = params["emb_y_a"][ent_idx]
    emb_z = params["emb_z_a"][ent_idx]
    s_emb = jnp.concatenate((emb_s, emb_x, emb_y, emb_z), axis=1)  # (B, 800)
    # entity_fc + concat + mlp_head fused in one Pallas kernel
    return entity_head(cls_vec, s_emb, params["w_fc"], params["b_fc"],
                       params["w_mlp_cls"], params["w_mlp_ent"],
                       params["b_mlp"])


def basic_bert_unit_forward(params, entid_dict, batch_word_list,
                            attention_mask, eids=None, num_heads=4):
    if eids is not None:
        # TODO(synk): id_newid_entdict.pkl remap runs host-side (identity here).
        ent_idx = jnp.asarray([entid_dict[int(i)] for i in eids],
                              dtype=jnp.int32)
    else:
        ent_idx = None
    return _forward(params, batch_word_list, attention_mask, ent_idx,
                    num_heads)


# ---------------------------------- main -------------------------------------

if __name__ == "__main__":
    B, S = 2, 8
    HIDDEN = 32          # "input_size" of the module
    RESULT = 16          # "result_size"
    NUM_HEADS = 4
    NUM_LAYERS = 2
    FFN = 64
    VOCAB = 100
    MAX_POS = 16
    ENT_VOCAB = 50
    ENT_DIM = 200        # quaternion part dim -> concat gives 800

    key = jax.random.PRNGKey(0)
    k_param, k_ids = jax.random.split(key)

    params = init_params(k_param, vocab_size=VOCAB, max_pos=MAX_POS,
                         hidden=HIDDEN, num_layers=NUM_LAYERS,
                         num_heads=NUM_HEADS, ffn=FFN, ent_vocab=ENT_VOCAB,
                         ent_dim=ENT_DIM, result_size=RESULT)
    # id_newid_entdict.pkl replaced with identity mapping
    entid_dict = {i: i for i in range(ENT_VOCAB)}

    batch_word_list = jax.random.randint(k_ids, (B, S), 0, VOCAB,
                                         dtype=jnp.int32)
    attention_mask = jnp.array([[1, 1, 1, 1, 1, 1, 1, 1],
                                [1, 1, 1, 1, 1, 0, 0, 0]], dtype=jnp.int32)
    eids = [3, 7]

    out_with_eids = basic_bert_unit_forward(params, entid_dict,
                                            batch_word_list, attention_mask,
                                            eids=eids, num_heads=NUM_HEADS)
    out_no_eids = basic_bert_unit_forward(params, entid_dict,
                                          batch_word_list, attention_mask,
                                          eids=None, num_heads=NUM_HEADS)
    jax.block_until_ready(out_with_eids)
    jax.block_until_ready(out_no_eids)

    assert out_with_eids.shape == (B, HIDDEN)
    assert out_no_eids.shape == (B, RESULT)
    assert bool(jnp.all(jnp.isfinite(out_with_eids)))
    assert bool(jnp.all(jnp.isfinite(out_no_eids)))
    print("KERNEL_OK")
</pallas_src>

<mosaic_0001>
module attributes {stable_mosaic.version = 11 : i64} {
  func.func @_layernorm_kernel(%arg0: i32, %arg1: memref<16x32xf32, #tpu.memory_space<vmem>>, %arg2: memref<1x32xf32, #tpu.memory_space<vmem>>, %arg3: memref<1x32xf32, #tpu.memory_space<vmem>>, %arg4: memref<16x32xbf16, #tpu.memory_space<vmem>>) attributes {dimension_semantics = [#tpu.dimension_semantics<parallel>], iteration_bounds = array<i64: 1>, scalar_prefetch = 0 : i64, scratch_operands = 0 : i64, tpu.core_type = #tpu.core_type<tc>, window_params = [{transform_indices = @transform_0, window_bounds = array<i64: 16, 32>}, {pipeline_mode = #tpu.pipeline_mode<synchronous>, transform_indices = @transform_1, window_bounds = array<i64: 1, 32>}, {pipeline_mode = #tpu.pipeline_mode<synchronous>, transform_indices = @transform_2, window_bounds = array<i64: 1, 32>}, {transform_indices = @transform_3, window_bounds = array<i64: 16, 32>}]} {
    %c0 = arith.constant 0 : index
    %c0_0 = arith.constant 0 : index
    %0 = vector.load %arg1[%c0, %c0_0] : memref<16x32xf32, #tpu.memory_space<vmem>>, vector<16x32xf32>
    %cst = arith.constant dense<0.000000e+00> : vector<16xf32>
    %1 = vector.multi_reduction <add>, %0, %cst [1] : vector<16x32xf32> to vector<16xf32>
    %2 = vector.shape_cast %1 : vector<16xf32> to vector<16x1xf32>
    %cst_1 = arith.constant 3.200000e+01 : f32
    %3 = vector.broadcast %cst_1 : f32 to vector<16x1xf32>
    %4 = arith.divf %2, %3 : vector<16x1xf32>
    %5 = vector.broadcast %4 : vector<16x1xf32> to vector<16x32xf32>
    %6 = arith.subf %0, %5 : vector<16x32xf32>
    %7 = arith.mulf %6, %6 : vector<16x32xf32>
    %cst_2 = arith.constant dense<0.000000e+00> : vector<16xf32>
    %8 = vector.multi_reduction <add>, %7, %cst_2 [1] : vector<16x32xf32> to vector<16xf32>
    %9 = vector.shape_cast %8 : vector<16xf32> to vector<16x1xf32>
    %cst_3 = arith.constant 3.200000e+01 : f32
    %10 = vector.broadcast %cst_3 : f32 to vector<16x1xf32>
    %11 = arith.divf %9, %10 : vector<16x1xf32>
    %12 = vector.broadcast %4 : vector<16x1xf32> to vector<16x32xf32>
    %13 = arith.subf %0, %12 : vector<16x32xf32>
    %cst_4 = arith.constant 9.99999996E-13 : f32
    %14 = vector.broadcast %cst_4 : f32 to vector<16x1xf32>
    %15 = arith.addf %11, %14 : vector<16x1xf32>
    %16 = math.rsqrt %15 : vector<16x1xf32>
    %17 = vector.broadcast %16 : vector<16x1xf32> to vector<16x32xf32>
    %18 = arith.mulf %13, %17 : vector<16x32xf32>
    %c0_5 = arith.constant 0 : index
    %c0_6 = arith.constant 0 : index
    %19 = vector.load %arg2[%c0_5, %c0_6] : memref<1x32xf32, #tpu.memory_space<vmem>>, vector<1x32xf32>
    %20 = vector.broadcast %19 : vector<1x32xf32> to vector<16x32xf32>
    %21 = arith.mulf %18, %20 : vector<16x32xf32>
    %c0_7 = arith.constant 0 : index
    %c0_8 = arith.constant 0 : index
    %22 = vector.load %arg3[%c0_7, %c0_8] : memref<1x32xf32, #tpu.memory_space<vmem>>, vector<1x32xf32>
    %23 = vector.broadcast %22 : vector<1x32xf32> to vector<16x32xf32>
    %24 = arith.addf %21, %23 : vector<16x32xf32>
    %25 = arith.truncf %24 : vector<16x32xf32> to vector<16x32xbf16>
    %c0_9 = arith.constant 0 : index
    %c0_10 = arith.constant 0 : index
    %26 = vector.load %arg4[%c0_9, %c0_10] : memref<16x32xbf16, #tpu.memory_space<vmem>>, vector<16x32xbf16>
    tpu.vector_store %arg4[%c0_9, %c0_10], %25 {strides = array<i32>} : memref<16x32xbf16, #tpu.memory_space<vmem>>, vector<16x32xbf16>,
    return
  }
  func.func @transform_0(%arg0: i32) -> (i32, i32) {
    %c0_i32 = arith.constant 0 : i32
    %c0_i32_0 = arith.constant 0 : i32
    return %arg0, %c0_i32 : i32, i32
  }
  func.func @transform_1(%arg0: i32) -> (i32, i32) {
    %c0_i32 = arith.constant 0 : i32
    %c0_i32_0 = arith.constant 0 : i32
    %c0_i32_1 = arith.constant 0 : i32
    return %c0_i32, %c0_i32_0 : i32, i32
  }
  func.func @transform_2(%arg0: i32) -> (i32, i32) {
    %c0_i32 = arith.constant 0 : i32
    %c0_i32_0 = arith.constant 0 : i32
    %c0_i32_1 = arith.constant 0 : i32
    return %c0_i32, %c0_i32_0 : i32, i32
  }
  func.func @transform_3(%arg0: i32) -> (i32, i32) {
    %c0_i32 = arith.constant 0 : i32
    %c0_i32_0 = arith.constant 0 : i32
    return %arg0, %c0_i32 : i32, i32
  }
}

module attributes {stable_mosaic.version = 11 : i64} {
  func.func @_attention_kernel(%arg0: i32, %arg1: memref<1x8x96xbf16, #tpu.memory_space<vmem>>, %arg2: memref<1x1x8xf32, #tpu.memory_space<vmem>>, %arg3: memref<1x8x32xbf16, #tpu.memory_space<vmem>>) attributes {dimension_semantics = [#tpu.dimension_semantics<parallel>], iteration_bounds = array<i64: 2>, scalar_prefetch = 0 : i64, scratch_operands = 0 : i64, tpu.core_type = #tpu.core_type<tc>, window_params = [{transform_indices = @transform_0, window_bounds = array<i64: 1, 8, 96>}, {transform_indices = @transform_1, window_bounds = array<i64: 1, 1, 8>}, {transform_indices = @transform_2, window_bounds = array<i64: 1, 8, 32>}]} {
    %c0 = arith.constant 0 : index
    %c0_0 = arith.constant 0 : index
    %c0_1 = arith.constant 0 : index
    %0 = vector.load %arg1[%c0, %c0_0, %c0_1] : memref<1x8x96xbf16, #tpu.memory_space<vmem>>, vector<1x8x96xbf16>
    %1 = vector.shape_cast %0 : vector<1x8x96xbf16> to vector<8x96xbf16>
    %c0_2 = arith.constant 0 : index
    %c0_3 = arith.constant 0 : index
    %c0_4 = arith.constant 0 : index
    %2 = vector.load %arg2[%c0_2, %c0_3, %c0_4] : memref<1x1x8xf32, #tpu.memory_space<vmem>>, vector<1x1x8xf32>
    %3 = vector.shape_cast %2 : vector<1x1x8xf32> to vector<1x8xf32>
    %4 = vector.extract_strided_slice %1 {offsets = [0, 0], sizes = [8, 8], strides = [1, 1]} : vector<8x96xbf16> to vector<8x8xbf16>
    %cst = arith.constant 3.535160e-01 : bf16
    %5 = vector.broadcast %cst : bf16 to vector<8x8xbf16>
    %6 = arith.mulf %4, %5 : vector<8x8xbf16>
    %7 = vector.extract_strided_slice %1 {offsets = [0, 32], sizes = [8, 8], strides = [1, 1]} : vector<8x96xbf16> to vector<8x8xbf16>
    %8 = vector.extract_strided_slice %1 {offsets = [0, 64], sizes = [8, 8], strides = [1, 1]} : vector<8x96xbf16> to vector<8x8xbf16>
    %cst_5 = arith.constant dense<0.000000e+00> : vector<8x8xf32>
    %9 = tpu.matmul %6, %7, %cst_5 {dimension_numbers = #tpu.dot_dimension_numbers<[1], [1], [0], [0], [0, 0, 1, 0], [], []>} : vector<8x8xbf16>, vector<8x8xbf16>, vector<8x8xf32> -> vector<8x8xf32>
    %10 = vector.broadcast %3 : vector<1x8xf32> to vector<8x8xf32>
    %11 = arith.addf %9, %10 : vector<8x8xf32>
    %cst_6 = arith.constant dense<0xFF800000> : vector<8xf32>
    %12 = vector.multi_reduction <maximumf>, %11, %cst_6 [1] : vector<8x8xf32> to vector<8xf32>
    %13 = vector.shape_cast %12 : vector<8xf32> to vector<8x1xf32>
    %14 = vector.broadcast %13 : vector<8x1xf32> to vector<8x8xf32>
    %15 = arith.subf %11, %14 : vector<8x8xf32>
    %16 = math.exp %15 : vector<8x8xf32>
    %cst_7 = arith.constant dense<0.000000e+00> : vector<8xf32>
    %17 = vector.multi_reduction <add>, %16, %cst_7 [1] : vector<8x8xf32> to vector<8xf32>
    %18 = vector.shape_cast %17 : vector<8xf32> to vector<8x1xf32>
    %19 = tpu.reciprocal %18 {approx = true} : vector<8x1xf32> -> vector<8x1xf32>
    %20 = vector.broadcast %19 : vector<8x1xf32> to vector<8x8xf32>
    %21 = arith.mulf %16, %20 : vector<8x8xf32>
    %22 = arith.truncf %21 : vector<8x8xf32> to vector<8x8xbf16>
    %cst_8 = arith.constant dense<0.000000e+00> : vector<8x8xf32>
    %23 = tpu.matmul %22, %8, %cst_8 {dimension_numbers = #tpu.dot_dimension_numbers<[1], [0], [0], [1], [0, 0, 1, 1], [], []>} : vector<8x8xbf16>, vector<8x8xbf16>, vector<8x8xf32> -> vector<8x8xf32>
    %24 = vector.extract_strided_slice %1 {offsets = [0, 8], sizes = [8, 8], strides = [1, 1]} : vector<8x96xbf16> to vector<8x8xbf16>
    %cst_9 = arith.constant 3.535160e-01 : bf16
    %25 = vector.broadcast %cst_9 : bf16 to vector<8x8xbf16>
    %26 = arith.mulf %24, %25 : vector<8x8xbf16>
    %27 = vector.extract_strided_slice %1 {offsets = [0, 40], sizes = [8, 8], strides = [1, 1]} : vector<8x96xbf16> to vector<8x8xbf16>
    %28 = vector.extract_strided_slice %1 {offsets = [0, 72], sizes = [8, 8], strides = [1, 1]} : vector<8x96xbf16> to vector<8x8xbf16>
    %cst_10 = arith.constant dense<0.000000e+00> : vector<8x8xf32>
    %29 = tpu.matmul %26, %27, %cst_10 {dimension_numbers = #tpu.dot_dimension_numbers<[1], [1], [0], [0], [0, 0, 1, 0], [], []>} : vector<8x8xbf16>, vector<8x8xbf16>, vector<8x8xf32> -> vector<8x8xf32>
    %30 = vector.broadcast %3 : vector<1x8xf32> to vector<8x8xf32>
    %31 = arith.addf %29, %30 : vector<8x8xf32>
    %cst_11 = arith.constant dense<0xFF800000> : vector<8xf32>
    %32 = vector.multi_reduction <maximumf>, %31, %cst_11 [1] : vector<8x8xf32> to vector<8xf32>
    %33 = vector.shape_cast %32 : vector<8xf32> to vector<8x1xf32>
    %34 = vector.broadcast %33 : vector<8x1xf32> to vector<8x8xf32>
    %35 = arith.subf %31, %34 : vector<8x8xf32>
    %36 = math.exp %35 : vector<8x8xf32>
    %cst_12 = arith.constant dense<0.000000e+00> : vector<8xf32>
    %37 = vector.multi_reduction <add>, %36, %cst_12 [1] : vector<8x8xf32> to vector<8xf32>
    %38 = vector.shape_cast %37 : vector<8xf32> to vector<8x1xf32>
    %39 = tpu.reciprocal %38 {approx = true} : vector<8x1xf32> -> vector<8x1xf32>
    %40 = vector.broadcast %39 : vector<8x1xf32> to vector<8x8xf32>
    %41 = arith.mulf %36, %40 : vector<8x8xf32>
    %42 = arith.truncf %41 : vector<8x8xf32> to vector<8x8xbf16>
    %cst_13 = arith.constant dense<0.000000e+00> : vector<8x8xf32>
    %43 = tpu.matmul %42, %28, %cst_13 {dimension_numbers = #tpu.dot_dimension_numbers<[1], [0], [0], [1], [0, 0, 1, 1], [], []>} : vector<8x8xbf16>, vector<8x8xbf16>, vector<8x8xf32> -> vector<8x8xf32>
    %44 = vector.extract_strided_slice %1 {offsets = [0, 16], sizes = [8, 8], strides = [1, 1]} : vector<8x96xbf16> to vector<8x8xbf16>
    %cst_14 = arith.constant 3.535160e-01 : bf16
    %45 = vector.broadcast %cst_14 : bf16 to vector<8x8xbf16>
    %46 = arith.mulf %44, %45 : vector<8x8xbf16>
    %47 = vector.extract_strided_slice %1 {offsets = [0, 48], sizes = [8, 8], strides = [1, 1]} : vector<8x96xbf16> to vector<8x8xbf16>
    %48 = vector.extract_strided_slice %1 {offsets = [0, 80], sizes = [8, 8], strides = [1, 1]} : vector<8x96xbf16> to vector<8x8xbf16>
    %cst_15 = arith.constant dense<0.000000e+00> : vector<8x8xf32>
    %49 = tpu.matmul %46, %47, %cst_15 {dimension_numbers = #tpu.dot_dimension_numbers<[1], [1], [0], [0], [0, 0, 1, 0], [], []>} : vector<8x8xbf16>, vector<8x8xbf16>, vector<8x8xf32> -> vector<8x8xf32>
    %50 = vector.broadcast %3 : vector<1x8xf32> to vector<8x8xf32>
    %51 = arith.addf %49, %50 : vector<8x8xf32>
    %cst_16 = arith.constant dense<0xFF800000> : vector<8xf32>
    %52 = vector.multi_reduction <maximumf>, %51, %cst_16 [1] : vector<8x8xf32> to vector<8xf32>
    %53 = vector.shape_cast %52 : vector<8xf32> to vector<8x1xf32>
    %54 = vector.broadcast %53 : vector<8x1xf32> to vector<8x8xf32>
    %55 = arith.subf %51, %54 : vector<8x8xf32>
    %56 = math.exp %55 : vector<8x8xf32>
    %cst_17 = arith.constant dense<0.000000e+00> : vector<8xf32>
    %57 = vector.multi_reduction <add>, %56, %cst_17 [1] : vector<8x8xf32> to vector<8xf32>
    %58 = vector.shape_cast %57 : vector<8xf32> to vector<8x1xf32>
    %59 = tpu.reciprocal %58 {approx = true} : vector<8x1xf32> -> vector<8x1xf32>
    %60 = vector.broadcast %59 : vector<8x1xf32> to vector<8x8xf32>
    %61 = arith.mulf %56, %60 : vector<8x8xf32>
    %62 = arith.truncf %61 : vector<8x8xf32> to vector<8x8xbf16>
    %cst_18 = arith.constant dense<0.000000e+00> : vector<8x8xf32>
    %63 = tpu.matmul %62, %48, %cst_18 {dimension_numbers = #tpu.dot_dimension_numbers<[1], [0], [0], [1], [0, 0, 1, 1], [], []>} : vector<8x8xbf16>, vector<8x8xbf16>, vector<8x8xf32> -> vector<8x8xf32>
    %64 = vector.extract_strided_slice %1 {offsets = [0, 24], sizes = [8, 8], strides = [1, 1]} : vector<8x96xbf16> to vector<8x8xbf16>
    %cst_19 = arith.constant 3.535160e-01 : bf16
    %65 = vector.broadcast %cst_19 : bf16 to vector<8x8xbf16>
    %66 = arith.mulf %64, %65 : vector<8x8xbf16>
    %67 = vector.extract_strided_slice %1 {offsets = [0, 56], sizes = [8, 8], strides = [1, 1]} : vector<8x96xbf16> to vector<8x8xbf16>
    %68 = vector.extract_strided_slice %1 {offsets = [0, 88], sizes = [8, 8], strides = [1, 1]} : vector<8x96xbf16> to vector<8x8xbf16>
    %cst_20 = arith.constant dense<0.000000e+00> : vector<8x8xf32>
    %69 = tpu.matmul %66, %67, %cst_20 {dimension_numbers = #tpu.dot_dimension_numbers<[1], [1], [0], [0], [0, 0, 1, 0], [], []>} : vector<8x8xbf16>, vector<8x8xbf16>, vector<8x8xf32> -> vector<8x8xf32>
    %70 = vector.broadcast %3 : vector<1x8xf32> to vector<8x8xf32>
    %71 = arith.addf %69, %70 : vector<8x8xf32>
    %cst_21 = arith.constant dense<0xFF800000> : vector<8xf32>
    %72 = vector.multi_reduction <maximumf>, %71, %cst_21 [1] : vector<8x8xf32> to vector<8xf32>
    %73 = vector.shape_cast %72 : vector<8xf32> to vector<8x1xf32>
    %74 = vector.broadcast %73 : vector<8x1xf32> to vector<8x8xf32>
    %75 = arith.subf %71, %74 : vector<8x8xf32>
    %76 = math.exp %75 : vector<8x8xf32>
    %cst_22 = arith.constant dense<0.000000e+00> : vector<8xf32>
    %77 = vector.multi_reduction <add>, %76, %cst_22 [1] : vector<8x8xf32> to vector<8xf32>
    %78 = vector.shape_cast %77 : vector<8xf32> to vector<8x1xf32>
    %79 = tpu.reciprocal %78 {approx = true} : vector<8x1xf32> -> vector<8x1xf32>
    %80 = vector.broadcast %79 : vector<8x1xf32> to vector<8x8xf32>
    %81 = arith.mulf %76, %80 : vector<8x8xf32>
    %82 = arith.truncf %81 : vector<8x8xf32> to vector<8x8xbf16>
    %cst_23 = arith.constant dense<0.000000e+00> : vector<8x8xf32>
    %83 = tpu.matmul %82, %68, %cst_23 {dimension_numbers = #tpu.dot_dimension_numbers<[1], [0], [0], [1], [0, 0, 1, 1], [], []>} : vector<8x8xbf16>, vector<8x8xbf16>, vector<8x8xf32> -> vector<8x8xf32>
    %84 = tpu.concatenate %23, %43, %63, %83 in 1 : vector<8x8xf32>, vector<8x8xf32>, vector<8x8xf32>, vector<8x8xf32> -> vector<8x32xf32>
    %85 = arith.truncf %84 : vector<8x32xf32> to vector<8x32xbf16>
    %c0_24 = arith.constant 0 : index
    %c0_25 = arith.constant 0 : index
    %c0_26 = arith.constant 0 : index
    %86 = vector.load %arg3[%c0_24, %c0_25, %c0_26] : memref<1x8x32xbf16, #tpu.memory_space<vmem>>, vector<1x8x32xbf16>
    %87 = vector.shape_cast %86 : vector<1x8x32xbf16> to vector<8x32xbf16>
    %88 = vector.shape_cast %85 : vector<8x32xbf16> to vector<1x8x32xbf16>
    tpu.vector_store %arg3[%c0_24, %c0_25, %c0_26], %88 {strides = array<i32>} : memref<1x8x32xbf16, #tpu.memory_space<vmem>>, vector<1x8x32xbf16>,
    return
  }
  func.func @transform_0(%arg0: i32) -> (i32, i32, i32) {
    %c0_i32 = arith.constant 0 : i32
    %c0_i32_0 = arith.constant 0 : i32
    %c0_i32_1 = arith.constant 0 : i32
    return %arg0, %c0_i32, %c0_i32_0 : i32, i32, i32
  }
  func.func @transform_1(%arg0: i32) -> (i32, i32, i32) {
    %c0_i32 = arith.constant 0 : i32
    %c0_i32_0 = arith.constant 0 : i32
    %c0_i32_1 = arith.constant 0 : i32
    return %arg0, %c0_i32, %c0_i32_0 : i32, i32, i32
  }
  func.func @transform_2(%arg0: i32) -> (i32, i32, i32) {
    %c0_i32 = arith.constant 0 : i32
    %c0_i32_0 = arith.constant 0 : i32
    %c0_i32_1 = arith.constant 0 : i32
    return %arg0, %c0_i32, %c0_i32_0 : i32, i32, i32
  }
}

module attributes {stable_mosaic.version = 11 : i64} {
  func.func @_linear_kernel(%arg0: i32, %arg1: i32, %arg2: i32, %arg3: memref<16x32xbf16, #tpu.memory_space<vmem>>, %arg4: memref<32x96xbf16, #tpu.memory_space<vmem>>, %arg5: memref<1x96xf32, #tpu.memory_space<vmem>>, %arg6: memref<16x96xbf16, #tpu.memory_space<vmem>>, %arg7: memref<16x96xf32, #tpu.memory_space<vmem>>) attributes {dimension_semantics = [#tpu.dimension_semantics<parallel>, #tpu.dimension_semantics<parallel>, #tpu.dimension_semantics<arbitrary>], iteration_bounds = array<i64: 1, 1, 1>, scalar_prefetch = 0 : i64, scratch_operands = 1 : i64, tpu.core_type = #tpu.core_type<tc>, window_params = [{transform_indices = @transform_0, window_bounds = array<i64: 16, 32>}, {transform_indices = @transform_1, window_bounds = array<i64: 32, 96>}, {transform_indices = @transform_2, window_bounds = array<i64: 1, 96>}, {transform_indices = @transform_3, window_bounds = array<i64: 16, 96>}]} {
    %c0_i32 = arith.constant 0 : i32
    %0 = arith.cmpi eq, %arg2, %c0_i32 : i32
    %1 = arith.extui %0 : i1 to i32
    %c0_i32_0 = arith.constant 0 : i32
    %2 = arith.cmpi ne, %1, %c0_i32_0 : i32
    scf.if %2 {
      %cst_10 = arith.constant 0.000000e+00 : f32
      %12 = vector.broadcast %cst_10 : f32 to vector<16x96xf32>
      %c0_11 = arith.constant 0 : index
      %c0_12 = arith.constant 0 : index
      %13 = vector.load %arg7[%c0_11, %c0_12] : memref<16x96xf32, #tpu.memory_space<vmem>>, vector<16x96xf32>
      tpu.vector_store %arg7[%c0_11, %c0_12], %12 {strides = array<i32>} : memref<16x96xf32, #tpu.memory_space<vmem>>, vector<16x96xf32>,
    } else {
    }
    %c0 = arith.constant 0 : index
    %c0_1 = arith.constant 0 : index
    %3 = vector.load %arg7[%c0, %c0_1] : memref<16x96xf32, #tpu.memory_space<vmem>>, vector<16x96xf32>
    %c0_2 = arith.constant 0 : index
    %c0_3 = arith.constant 0 : index
    %4 = vector.load %arg3[%c0_2, %c0_3] : memref<16x32xbf16, #tpu.memory_space<vmem>>, vector<16x32xbf16>
    %c0_4 = arith.constant 0 : index
    %c0_5 = arith.constant 0 : index
    %5 = vector.load %arg4[%c0_4, %c0_5] : memref<32x96xbf16, #tpu.memory_space<vmem>>, vector<32x96xbf16>
    %cst = arith.constant dense<0.000000e+00> : vector<16x96xf32>
    %6 = tpu.matmul %4, %5, %cst {dimension_numbers = #tpu.dot_dimension_numbers<[1], [0], [0], [1], [0, 0, 1, 1], [], []>} : vector<16x32xbf16>, vector<32x96xbf16>, vector<16x96xf32> -> vector<16x96xf32>
    %7 = arith.addf %3, %6 : vector<16x96xf32>
    %c0_6 = arith.constant 0 : index
    %c0_7 = arith.constant 0 : index
    %8 = vector.load %arg7[%c0_6, %c0_7] : memref<16x96xf32, #tpu.memory_space<vmem>>, vector<16x96xf32>
    tpu.vector_store %arg7[%c0_6, %c0_7], %7 {strides = array<i32>} : memref<16x96xf32, #tpu.memory_space<vmem>>, vector<16x96xf32>,
    %c0_i32_8 = arith.constant 0 : i32
    %9 = arith.cmpi eq, %arg2, %c0_i32_8 : i32
    %10 = arith.extui %9 : i1 to i32
    %c0_i32_9 = arith.constant 0 : i32
    %11 = arith.cmpi ne, %10, %c0_i32_9 : i32
    scf.if %11 {
      %c0_10 = arith.constant 0 : index
      %c0_11 = arith.constant 0 : index
      %12 = vector.load %arg7[%c0_10, %c0_11] : memref<16x96xf32, #tpu.memory_space<vmem>>, vector<16x96xf32>
      %c0_12 = arith.constant 0 : index
      %c0_13 = arith.constant 0 : index
      %13 = vector.load %arg5[%c0_12, %c0_13] : memref<1x96xf32, #tpu.memory_space<vmem>>, vector<1x96xf32>
      %14 = vector.broadcast %13 : vector<1x96xf32> to vector<16x96xf32>
      %15 = arith.addf %12, %14 : vector<16x96xf32>
      %16 = arith.truncf %15 : vector<16x96xf32> to vector<16x96xbf16>
      %c0_14 = arith.constant 0 : index
      %c0_15 = arith.constant 0 : index
      %17 = vector.load %arg6[%c0_14, %c0_15] : memref<16x96xbf16, #tpu.memory_space<vmem>>, vector<16x96xbf16>
      tpu.vector_store %arg6[%c0_14, %c0_15], %16 {strides = array<i32>} : memref<16x96xbf16, #tpu.memory_space<vmem>>, vector<16x96xbf16>,
    } else {
    }
    return
  }
  func.func @transform_0(%arg0: i32, %arg1: i32, %arg2: i32) -> (i32, i32) {
    %c0_i32 = arith.constant 0 : i32
    return %arg0, %arg2 : i32, i32
  }
  func.func @transform_1(%arg0: i32, %arg1: i32, %arg2: i32) -> (i32, i32) {
    %c0_i32 = arith.constant 0 : i32
    return %arg2, %arg1 : i32, i32
  }
  func.func @transform_2(%arg0: i32, %arg1: i32, %arg2: i32) -> (i32, i32) {
    %c0_i32 = arith.constant 0 : i32
    %c0_i32_0 = arith.constant 0 : i32
    return %c0_i32, %arg1 : i32, i32
  }
  func.func @transform_3(%arg0: i32, %arg1: i32, %arg2: i32) -> (i32, i32) {
    %c0_i32 = arith.constant 0 : i32
    return %arg0, %arg1 : i32, i32
  }
}

module attributes {stable_mosaic.version = 11 : i64} {
  func.func @_linear_add_ln_kernel(%arg0: i32, %arg1: i32, %arg2: memref<16x32xbf16, #tpu.memory_space<vmem>>, %arg3: memref<32x32xbf16, #tpu.memory_space<vmem>>, %arg4: memref<1x32xf32, #tpu.memory_space<vmem>>, %arg5: memref<16x32xbf16, #tpu.memory_space<vmem>>, %arg6: memref<1x32xf32, #tpu.memory_space<vmem>>, %arg7: memref<1x32xf32, #tpu.memory_space<vmem>>, %arg8: memref<16x32xbf16, #tpu.memory_space<vmem>>, %arg9: memref<16x32xf32, #tpu.memory_space<vmem>>) attributes {dimension_semantics = [#tpu.dimension_semantics<parallel>, #tpu.dimension_semantics<arbitrary>], iteration_bounds = array<i64: 1, 1>, scalar_prefetch = 0 : i64, scratch_operands = 1 : i64, tpu.core_type = #tpu.core_type<tc>, window_params = [{transform_indices = @transform_0, window_bounds = array<i64: 16, 32>}, {transform_indices = @transform_1, window_bounds = array<i64: 32, 32>}, {pipeline_mode = #tpu.pipeline_mode<synchronous>, transform_indices = @transform_2, window_bounds = array<i64: 1, 32>}, {transform_indices = @transform_3, window_bounds = array<i64: 16, 32>}, {pipeline_mode = #tpu.pipeline_mode<synchronous>, transform_indices = @transform_4, window_bounds = array<i64: 1, 32>}, {pipeline_mode = #tpu.pipeline_mode<synchronous>, transform_indices = @transform_5, window_bounds = array<i64: 1, 32>}, {transform_indices = @transform_6, window_bounds = array<i64: 16, 32>}]} {
    %c0_i32 = arith.constant 0 : i32
    %0 = arith.cmpi eq, %arg1, %c0_i32 : i32
    %1 = arith.extui %0 : i1 to i32
    %c0_i32_0 = arith.constant 0 : i32
    %2 = arith.cmpi ne, %1, %c0_i32_0 : i32
    scf.if %2 {
      %cst_10 = arith.constant 0.000000e+00 : f32
      %12 = vector.broadcast %cst_10 : f32 to vector<16x32xf32>
      %c0_11 = arith.constant 0 : index
      %c0_12 = arith.constant 0 : index
      %13 = vector.load %arg9[%c0_11, %c0_12] : memref<16x32xf32, #tpu.memory_space<vmem>>, vector<16x32xf32>
      tpu.vector_store %arg9[%c0_11, %c0_12], %12 {strides = array<i32>} : memref<16x32xf32, #tpu.memory_space<vmem>>, vector<16x32xf32>,
    } else {
    }
    %c0 = arith.constant 0 : index
    %c0_1 = arith.constant 0 : index
    %3 = vector.load %arg9[%c0, %c0_1] : memref<16x32xf32, #tpu.memory_space<vmem>>, vector<16x32xf32>
    %c0_2 = arith.constant 0 : index
    %c0_3 = arith.constant 0 : index
    %4 = vector.load %arg2[%c0_2, %c0_3] : memref<16x32xbf16, #tpu.memory_space<vmem>>, vector<16x32xbf16>
    %c0_4 = arith.constant 0 : index
    %c0_5 = arith.constant 0 : index
    %5 = vector.load %arg3[%c0_4, %c0_5] : memref<32x32xbf16, #tpu.memory_space<vmem>>, vector<32x32xbf16>
    %cst = arith.constant dense<0.000000e+00> : vector<16x32xf32>
    %6 = tpu.matmul %4, %5, %cst {dimension_numbers = #tpu.dot_dimension_numbers<[1], [0], [0], [1], [0, 0, 1, 1], [], []>} : vector<16x32xbf16>, vector<32x32xbf16>, vector<16x32xf32> -> vector<16x32xf32>
    %7 = arith.addf %3, %6 : vector<16x32xf32>
    %c0_6 = arith.constant 0 : index
    %c0_7 = arith.constant 0 : index
    %8 = vector.load %arg9[%c0_6, %c0_7] : memref<16x32xf32, #tpu.memory_space<vmem>>, vector<16x32xf32>
    tpu.vector_store %arg9[%c0_6, %c0_7], %7 {strides = array<i32>} : memref<16x32xf32, #tpu.memory_space<vmem>>, vector<16x32xf32>,
    %c0_i32_8 = arith.constant 0 : i32
    %9 = arith.cmpi eq, %arg1, %c0_i32_8 : i32
    %10 = arith.extui %9 : i1 to i32
    %c0_i32_9 = arith.constant 0 : i32
    %11 = arith.cmpi ne, %10, %c0_i32_9 : i32
    scf.if %11 {
      %c0_10 = arith.constant 0 : index
      %c0_11 = arith.constant 0 : index
      %12 = vector.load %arg9[%c0_10, %c0_11] : memref<16x32xf32, #tpu.memory_space<vmem>>, vector<16x32xf32>
      %c0_12 = arith.constant 0 : index
      %c0_13 = arith.constant 0 : index
      %13 = vector.load %arg4[%c0_12, %c0_13] : memref<1x32xf32, #tpu.memory_space<vmem>>, vector<1x32xf32>
      %14 = vector.broadcast %13 : vector<1x32xf32> to vector<16x32xf32>
      %15 = arith.addf %12, %14 : vector<16x32xf32>
      %c0_14 = arith.constant 0 : index
      %c0_15 = arith.constant 0 : index
      %16 = vector.load %arg5[%c0_14, %c0_15] : memref<16x32xbf16, #tpu.memory_space<vmem>>, vector<16x32xbf16>
      %17 = arith.extf %16 : vector<16x32xbf16> to vector<16x32xf32>
      %18 = arith.addf %15, %17 : vector<16x32xf32>
      %cst_16 = arith.constant dense<0.000000e+00> : vector<16xf32>
      %19 = vector.multi_reduction <add>, %18, %cst_16 [1] : vector<16x32xf32> to vector<16xf32>
      %20 = vector.shape_cast %19 : vector<16xf32> to vector<16x1xf32>
      %cst_17 = arith.constant 3.200000e+01 : f32
      %21 = vector.broadcast %cst_17 : f32 to vector<16x1xf32>
      %22 = arith.divf %20, %21 : vector<16x1xf32>
      %23 = vector.broadcast %22 : vector<16x1xf32> to vector<16x32xf32>
      %24 = arith.subf %18, %23 : vector<16x32xf32>
      %25 = arith.mulf %24, %24 : vector<16x32xf32>
      %cst_18 = arith.constant dense<0.000000e+00> : vector<16xf32>
      %26 = vector.multi_reduction <add>, %25, %cst_18 [1] : vector<16x32xf32> to vector<16xf32>
      %27 = vector.shape_cast %26 : vector<16xf32> to vector<16x1xf32>
      %cst_19 = arith.constant 3.200000e+01 : f32
      %28 = vector.broadcast %cst_19 : f32 to vector<16x1xf32>
      %29 = arith.divf %27, %28 : vector<16x1xf32>
      %30 = vector.broadcast %22 : vector<16x1xf32> to vector<16x32xf32>
      %31 = arith.subf %18, %30 : vector<16x32xf32>
      %cst_20 = arith.constant 9.99999996E-13 : f32
      %32 = vector.broadcast %cst_20 : f32 to vector<16x1xf32>
      %33 = arith.addf %29, %32 : vector<16x1xf32>
      %34 = math.rsqrt %33 : vector<16x1xf32>
      %35 = vector.broadcast %34 : vector<16x1xf32> to vector<16x32xf32>
      %36 = arith.mulf %31, %35 : vector<16x32xf32>
      %c0_21 = arith.constant 0 : index
      %c0_22 = arith.constant 0 : index
      %37 = vector.load %arg6[%c0_21, %c0_22] : memref<1x32xf32, #tpu.memory_space<vmem>>, vector<1x32xf32>
      %38 = vector.broadcast %37 : vector<1x32xf32> to vector<16x32xf32>
      %39 = arith.mulf %36, %38 : vector<16x32xf32>
      %c0_23 = arith.constant 0 : index
      %c0_24 = arith.constant 0 : index
      %40 = vector.load %arg7[%c0_23, %c0_24] : memref<1x32xf32, #tpu.memory_space<vmem>>, vector<1x32xf32>
      %41 = vector.broadcast %40 : vector<1x32xf32> to vector<16x32xf32>
      %42 = arith.addf %39, %41 : vector<16x32xf32>
      %43 = arith.truncf %42 : vector<16x32xf32> to vector<16x32xbf16>
      %c0_25 = arith.constant 0 : index
      %c0_26 = arith.constant 0 : index
      %44 = vector.load %arg8[%c0_25, %c0_26] : memref<16x32xbf16, #tpu.memory_space<vmem>>, vector<16x32xbf16>
      tpu.vector_store %arg8[%c0_25, %c0_26], %43 {strides = array<i32>} : memref<16x32xbf16, #tpu.memory_space<vmem>>, vector<16x32xbf16>,
    } else {
    }
    return
  }
  func.func @transform_0(%arg0: i32, %arg1: i32) -> (i32, i32) {
    %c0_i32 = arith.constant 0 : i32
    return %arg0, %arg1 : i32, i32
  }
  func.func @transform_1(%arg0: i32, %arg1: i32) -> (i32, i32) {
    %c0_i32 = arith.constant 0 : i32
    %c0_i32_0 = arith.constant 0 : i32
    return %arg1, %c0_i32 : i32, i32
  }
  func.func @transform_2(%arg0: i32, %arg1: i32) -> (i32, i32) {
    %c0_i32 = arith.constant 0 : i32
    %c0_i32_0 = arith.constant 0 : i32
    %c0_i32_1 = arith.constant 0 : i32
    return %c0_i32, %c0_i32_0 : i32, i32
  }
  func.func @transform_3(%arg0: i32, %arg1: i32) -> (i32, i32) {
    %c0_i32 = arith.constant 0 : i32
    %c0_i32_0 = arith.constant 0 : i32
    return %arg0, %c0_i32 : i32, i32
  }
  func.func @transform_4(%arg0: i32, %arg1: i32) -> (i32, i32) {
    %c0_i32 = arith.constant 0 : i32
    %c0_i32_0 = arith.constant 0 : i32
    %c0_i32_1 = arith.constant 0 : i32
    return %c0_i32, %c0_i32_0 : i32, i32
  }
  func.func @transform_5(%arg0: i32, %arg1: i32) -> (i32, i32) {
    %c0_i32 = arith.constant 0 : i32
    %c0_i32_0 = arith.constant 0 : i32
    %c0_i32_1 = arith.constant 0 : i32
    return %c0_i32, %c0_i32_0 : i32, i32
  }
  func.func @transform_6(%arg0: i32, %arg1: i32) -> (i32, i32) {
    %c0_i32 = arith.constant 0 : i32
    %c0_i32_0 = arith.constant 0 : i32
    return %arg0, %c0_i32 : i32, i32
  }
}

module attributes {stable_mosaic.version = 11 : i64} {
  func.func @_linear_kernel(%arg0: i32, %arg1: i32, %arg2: i32, %arg3: memref<16x32xbf16, #tpu.memory_space<vmem>>, %arg4: memref<32x64xbf16, #tpu.memory_space<vmem>>, %arg5: memref<1x64xf32, #tpu.memory_space<vmem>>, %arg6: memref<16x64xbf16, #tpu.memory_space<vmem>>, %arg7: memref<16x64xf32, #tpu.memory_space<vmem>>) attributes {dimension_semantics = [#tpu.dimension_semantics<parallel>, #tpu.dimension_semantics<parallel>, #tpu.dimension_semantics<arbitrary>], iteration_bounds = array<i64: 1, 1, 1>, scalar_prefetch = 0 : i64, scratch_operands = 1 : i64, tpu.core_type = #tpu.core_type<tc>, window_params = [{transform_indices = @transform_0, window_bounds = array<i64: 16, 32>}, {transform_indices = @transform_1, window_bounds = array<i64: 32, 64>}, {transform_indices = @transform_2, window_bounds = array<i64: 1, 64>}, {transform_indices = @transform_3, window_bounds = array<i64: 16, 64>}]} {
    %c0_i32 = arith.constant 0 : i32
    %0 = arith.cmpi eq, %arg2, %c0_i32 : i32
    %1 = arith.extui %0 : i1 to i32
    %c0_i32_0 = arith.constant 0 : i32
    %2 = arith.cmpi ne, %1, %c0_i32_0 : i32
    scf.if %2 {
      %cst_10 = arith.constant 0.000000e+00 : f32
      %12 = vector.broadcast %cst_10 : f32 to vector<16x64xf32>
      %c0_11 = arith.constant 0 : index
      %c0_12 = arith.constant 0 : index
      %13 = vector.load %arg7[%c0_11, %c0_12] : memref<16x64xf32, #tpu.memory_space<vmem>>, vector<16x64xf32>
      tpu.vector_store %arg7[%c0_11, %c0_12], %12 {strides = array<i32>} : memref<16x64xf32, #tpu.memory_space<vmem>>, vector<16x64xf32>,
    } else {
    }
    %c0 = arith.constant 0 : index
    %c0_1 = arith.constant 0 : index
    %3 = vector.load %arg7[%c0, %c0_1] : memref<16x64xf32, #tpu.memory_space<vmem>>, vector<16x64xf32>
    %c0_2 = arith.constant 0 : index
    %c0_3 = arith.constant 0 : index
    %4 = vector.load %arg3[%c0_2, %c0_3] : memref<16x32xbf16, #tpu.memory_space<vmem>>, vector<16x32xbf16>
    %c0_4 = arith.constant 0 : index
    %c0_5 = arith.constant 0 : index
    %5 = vector.load %arg4[%c0_4, %c0_5] : memref<32x64xbf16, #tpu.memory_space<vmem>>, vector<32x64xbf16>
    %cst = arith.constant dense<0.000000e+00> : vector<16x64xf32>
    %6 = tpu.matmul %4, %5, %cst {dimension_numbers = #tpu.dot_dimension_numbers<[1], [0], [0], [1], [0, 0, 1, 1], [], []>} : vector<16x32xbf16>, vector<32x64xbf16>, vector<16x64xf32> -> vector<16x64xf32>
    %7 = arith.addf %3, %6 : vector<16x64xf32>
    %c0_6 = arith.constant 0 : index
    %c0_7 = arith.constant 0 : index
    %8 = vector.load %arg7[%c0_6, %c0_7] : memref<16x64xf32, #tpu.memory_space<vmem>>, vector<16x64xf32>
    tpu.vector_store %arg7[%c0_6, %c0_7], %7 {strides = array<i32>} : memref<16x64xf32, #tpu.memory_space<vmem>>, vector<16x64xf32>,
    %c0_i32_8 = arith.constant 0 : i32
    %9 = arith.cmpi eq, %arg2, %c0_i32_8 : i32
    %10 = arith.extui %9 : i1 to i32
    %c0_i32_9 = arith.constant 0 : i32
    %11 = arith.cmpi ne, %10, %c0_i32_9 : i32
    scf.if %11 {
      %c0_10 = arith.constant 0 : index
      %c0_11 = arith.constant 0 : index
      %12 = vector.load %arg7[%c0_10, %c0_11] : memref<16x64xf32, #tpu.memory_space<vmem>>, vector<16x64xf32>
      %c0_12 = arith.constant 0 : index
      %c0_13 = arith.constant 0 : index
      %13 = vector.load %arg5[%c0_12, %c0_13] : memref<1x64xf32, #tpu.memory_space<vmem>>, vector<1x64xf32>
      %14 = vector.broadcast %13 : vector<1x64xf32> to vector<16x64xf32>
      %15 = arith.addf %12, %14 : vector<16x64xf32>
      %16 = arith.mulf %15, %15 : vector<16x64xf32>
      %17 = arith.mulf %15, %16 : vector<16x64xf32>
      %cst_14 = arith.constant 4.471500e-02 : f32
      %18 = vector.broadcast %cst_14 : f32 to vector<16x64xf32>
      %19 = arith.mulf %18, %17 : vector<16x64xf32>
      %20 = arith.addf %15, %19 : vector<16x64xf32>
      %cst_15 = arith.constant 0.797884583 : f32
      %21 = vector.broadcast %cst_15 : f32 to vector<16x64xf32>
      %22 = arith.mulf %21, %20 : vector<16x64xf32>
      %23 = math.tanh %22 : vector<16x64xf32>
      %cst_16 = arith.constant 1.000000e+00 : f32
      %24 = vector.broadcast %cst_16 : f32 to vector<16x64xf32>
      %25 = arith.addf %24, %23 : vector<16x64xf32>
      %cst_17 = arith.constant 5.000000e-01 : f32
      %26 = vector.broadcast %cst_17 : f32 to vector<16x64xf32>
      %27 = arith.mulf %26, %25 : vector<16x64xf32>
      %28 = arith.mulf %15, %27 : vector<16x64xf32>
      %29 = arith.truncf %28 : vector<16x64xf32> to vector<16x64xbf16>
      %c0_18 = arith.constant 0 : index
      %c0_19 = arith.constant 0 : index
      %30 = vector.load %arg6[%c0_18, %c0_19] : memref<16x64xbf16, #tpu.memory_space<vmem>>, vector<16x64xbf16>
      tpu.vector_store %arg6[%c0_18, %c0_19], %29 {strides = array<i32>} : memref<16x64xbf16, #tpu.memory_space<vmem>>, vector<16x64xbf16>,
    } else {
    }
    return
  }
  func.func @transform_0(%arg0: i32, %arg1: i32, %arg2: i32) -> (i32, i32) {
    %c0_i32 = arith.constant 0 : i32
    return %arg0, %arg2 : i32, i32
  }
  func.func @transform_1(%arg0: i32, %arg1: i32, %arg2: i32) -> (i32, i32) {
    %c0_i32 = arith.constant 0 : i32
    return %arg2, %arg1 : i32, i32
  }
  func.func @transform_2(%arg0: i32, %arg1: i32, %arg2: i32) -> (i32, i32) {
    %c0_i32 = arith.constant 0 : i32
    %c0_i32_0 = arith.constant 0 : i32
    return %c0_i32, %arg1 : i32, i32
  }
  func.func @transform_3(%arg0: i32, %arg1: i32, %arg2: i32) -> (i32, i32) {
    %c0_i32 = arith.constant 0 : i32
    return %arg0, %arg1 : i32, i32
  }
}

module attributes {stable_mosaic.version = 11 : i64} {
  func.func @_linear_add_ln_kernel(%arg0: i32, %arg1: i32, %arg2: memref<16x64xbf16, #tpu.memory_space<vmem>>, %arg3: memref<64x32xbf16, #tpu.memory_space<vmem>>, %arg4: memref<1x32xf32, #tpu.memory_space<vmem>>, %arg5: memref<16x32xbf16, #tpu.memory_space<vmem>>, %arg6: memref<1x32xf32, #tpu.memory_space<vmem>>, %arg7: memref<1x32xf32, #tpu.memory_space<vmem>>, %arg8: memref<16x32xbf16, #tpu.memory_space<vmem>>, %arg9: memref<16x32xf32, #tpu.memory_space<vmem>>) attributes {dimension_semantics = [#tpu.dimension_semantics<parallel>, #tpu.dimension_semantics<arbitrary>], iteration_bounds = array<i64: 1, 1>, scalar_prefetch = 0 : i64, scratch_operands = 1 : i64, tpu.core_type = #tpu.core_type<tc>, window_params = [{transform_indices = @transform_0, window_bounds = array<i64: 16, 64>}, {transform_indices = @transform_1, window_bounds = array<i64: 64, 32>}, {pipeline_mode = #tpu.pipeline_mode<synchronous>, transform_indices = @transform_2, window_bounds = array<i64: 1, 32>}, {transform_indices = @transform_3, window_bounds = array<i64: 16, 32>}, {pipeline_mode = #tpu.pipeline_mode<synchronous>, transform_indices = @transform_4, window_bounds = array<i64: 1, 32>}, {pipeline_mode = #tpu.pipeline_mode<synchronous>, transform_indices = @transform_5, window_bounds = array<i64: 1, 32>}, {transform_indices = @transform_6, window_bounds = array<i64: 16, 32>}]} {
    %c0_i32 = arith.constant 0 : i32
    %0 = arith.cmpi eq, %arg1, %c0_i32 : i32
    %1 = arith.extui %0 : i1 to i32
    %c0_i32_0 = arith.constant 0 : i32
    %2 = arith.cmpi ne, %1, %c0_i32_0 : i32
    scf.if %2 {
      %cst_10 = arith.constant 0.000000e+00 : f32
      %12 = vector.broadcast %cst_10 : f32 to vector<16x32xf32>
      %c0_11 = arith.constant 0 : index
      %c0_12 = arith.constant 0 : index
      %13 = vector.load %arg9[%c0_11, %c0_12] : memref<16x32xf32, #tpu.memory_space<vmem>>, vector<16x32xf32>
      tpu.vector_store %arg9[%c0_11, %c0_12], %12 {strides = array<i32>} : memref<16x32xf32, #tpu.memory_space<vmem>>, vector<16x32xf32>,
    } else {
    }
    %c0 = arith.constant 0 : index
    %c0_1 = arith.constant 0 : index
    %3 = vector.load %arg9[%c0, %c0_1] : memref<16x32xf32, #tpu.memory_space<vmem>>, vector<16x32xf32>
    %c0_2 = arith.constant 0 : index
    %c0_3 = arith.constant 0 : index
    %4 = vector.load %arg2[%c0_2, %c0_3] : memref<16x64xbf16, #tpu.memory_space<vmem>>, vector<16x64xbf16>
    %c0_4 = arith.constant 0 : index
    %c0_5 = arith.constant 0 : index
    %5 = vector.load %arg3[%c0_4, %c0_5] : memref<64x32xbf16, #tpu.memory_space<vmem>>, vector<64x32xbf16>
    %cst = arith.constant dense<0.000000e+00> : vector<16x32xf32>
    %6 = tpu.matmul %4, %5, %cst {dimension_numbers = #tpu.dot_dimension_numbers<[1], [0], [0], [1], [0, 0, 1, 1], [], []>} : vector<16x64xbf16>, vector<64x32xbf16>, vector<16x32xf32> -> vector<16x32xf32>
    %7 = arith.addf %3, %6 : vector<16x32xf32>
    %c0_6 = arith.constant 0 : index
    %c0_7 = arith.constant 0 : index
    %8 = vector.load %arg9[%c0_6, %c0_7] : memref<16x32xf32, #tpu.memory_space<vmem>>, vector<16x32xf32>
    tpu.vector_store %arg9[%c0_6, %c0_7], %7 {strides = array<i32>} : memref<16x32xf32, #tpu.memory_space<vmem>>, vector<16x32xf32>,
    %c0_i32_8 = arith.constant 0 : i32
    %9 = arith.cmpi eq, %arg1, %c0_i32_8 : i32
    %10 = arith.extui %9 : i1 to i32
    %c0_i32_9 = arith.constant 0 : i32
    %11 = arith.cmpi ne, %10, %c0_i32_9 : i32
    scf.if %11 {
      %c0_10 = arith.constant 0 : index
      %c0_11 = arith.constant 0 : index
      %12 = vector.load %arg9[%c0_10, %c0_11] : memref<16x32xf32, #tpu.memory_space<vmem>>, vector<16x32xf32>
      %c0_12 = arith.constant 0 : index
      %c0_13 = arith.constant 0 : index
      %13 = vector.load %arg4[%c0_12, %c0_13] : memref<1x32xf32, #tpu.memory_space<vmem>>, vector<1x32xf32>
      %14 = vector.broadcast %13 : vector<1x32xf32> to vector<16x32xf32>
      %15 = arith.addf %12, %14 : vector<16x32xf32>
      %c0_14 = arith.constant 0 : index
      %c0_15 = arith.constant 0 : index
      %16 = vector.load %arg5[%c0_14, %c0_15] : memref<16x32xbf16, #tpu.memory_space<vmem>>, vector<16x32xbf16>
      %17 = arith.extf %16 : vector<16x32xbf16> to vector<16x32xf32>
      %18 = arith.addf %15, %17 : vector<16x32xf32>
      %cst_16 = arith.constant dense<0.000000e+00> : vector<16xf32>
      %19 = vector.multi_reduction <add>, %18, %cst_16 [1] : vector<16x32xf32> to vector<16xf32>
      %20 = vector.shape_cast %19 : vector<16xf32> to vector<16x1xf32>
      %cst_17 = arith.constant 3.200000e+01 : f32
      %21 = vector.broadcast %cst_17 : f32 to vector<16x1xf32>
      %22 = arith.divf %20, %21 : vector<16x1xf32>
      %23 = vector.broadcast %22 : vector<16x1xf32> to vector<16x32xf32>
      %24 = arith.subf %18, %23 : vector<16x32xf32>
      %25 = arith.mulf %24, %24 : vector<16x32xf32>
      %cst_18 = arith.constant dense<0.000000e+00> : vector<16xf32>
      %26 = vector.multi_reduction <add>, %25, %cst_18 [1] : vector<16x32xf32> to vector<16xf32>
      %27 = vector.shape_cast %26 : vector<16xf32> to vector<16x1xf32>
      %cst_19 = arith.constant 3.200000e+01 : f32
      %28 = vector.broadcast %cst_19 : f32 to vector<16x1xf32>
      %29 = arith.divf %27, %28 : vector<16x1xf32>
      %30 = vector.broadcast %22 : vector<16x1xf32> to vector<16x32xf32>
      %31 = arith.subf %18, %30 : vector<16x32xf32>
      %cst_20 = arith.constant 9.99999996E-13 : f32
      %32 = vector.broadcast %cst_20 : f32 to vector<16x1xf32>
      %33 = arith.addf %29, %32 : vector<16x1xf32>
      %34 = math.rsqrt %33 : vector<16x1xf32>
      %35 = vector.broadcast %34 : vector<16x1xf32> to vector<16x32xf32>
      %36 = arith.mulf %31, %35 : vector<16x32xf32>
      %c0_21 = arith.constant 0 : index
      %c0_22 = arith.constant 0 : index
      %37 = vector.load %arg6[%c0_21, %c0_22] : memref<1x32xf32, #tpu.memory_space<vmem>>, vector<1x32xf32>
      %38 = vector.broadcast %37 : vector<1x32xf32> to vector<16x32xf32>
      %39 = arith.mulf %36, %38 : vector<16x32xf32>
      %c0_23 = arith.constant 0 : index
      %c0_24 = arith.constant 0 : index
      %40 = vector.load %arg7[%c0_23, %c0_24] : memref<1x32xf32, #tpu.memory_space<vmem>>, vector<1x32xf32>
      %41 = vector.broadcast %40 : vector<1x32xf32> to vector<16x32xf32>
      %42 = arith.addf %39, %41 : vector<16x32xf32>
      %43 = arith.truncf %42 : vector<16x32xf32> to vector<16x32xbf16>
      %c0_25 = arith.constant 0 : index
      %c0_26 = arith.constant 0 : index
      %44 = vector.load %arg8[%c0_25, %c0_26] : memref<16x32xbf16, #tpu.memory_space<vmem>>, vector<16x32xbf16>
      tpu.vector_store %arg8[%c0_25, %c0_26], %43 {strides = array<i32>} : memref<16x32xbf16, #tpu.memory_space<vmem>>, vector<16x32xbf16>,
    } else {
    }
    return
  }
  func.func @transform_0(%arg0: i32, %arg1: i32) -> (i32, i32) {
    %c0_i32 = arith.constant 0 : i32
    return %arg0, %arg1 : i32, i32
  }
  func.func @transform_1(%arg0: i32, %arg1: i32) -> (i32, i32) {
    %c0_i32 = arith.constant 0 : i32
    %c0_i32_0 = arith.constant 0 : i32
    return %arg1, %c0_i32 : i32, i32
  }
  func.func @transform_2(%arg0: i32, %arg1: i32) -> (i32, i32) {
    %c0_i32 = arith.constant 0 : i32
    %c0_i32_0 = arith.constant 0 : i32
    %c0_i32_1 = arith.constant 0 : i32
    return %c0_i32, %c0_i32_0 : i32, i32
  }
  func.func @transform_3(%arg0: i32, %arg1: i32) -> (i32, i32) {
    %c0_i32 = arith.constant 0 : i32
    %c0_i32_0 = arith.constant 0 : i32
    return %arg0, %c0_i32 : i32, i32
  }
  func.func @transform_4(%arg0: i32, %arg1: i32) -> (i32, i32) {
    %c0_i32 = arith.constant 0 : i32
    %c0_i32_0 = arith.constant 0 : i32
    %c0_i32_1 = arith.constant 0 : i32
    return %c0_i32, %c0_i32_0 : i32, i32
  }
  func.func @transform_5(%arg0: i32, %arg1: i32) -> (i32, i32) {
    %c0_i32 = arith.constant 0 : i32
    %c0_i32_0 = arith.constant 0 : i32
    %c0_i32_1 = arith.constant 0 : i32
    return %c0_i32, %c0_i32_0 : i32, i32
  }
  func.func @transform_6(%arg0: i32, %arg1: i32) -> (i32, i32) {
    %c0_i32 = arith.constant 0 : i32
    %c0_i32_0 = arith.constant 0 : i32
    return %arg0, %c0_i32 : i32, i32
  }
}

module attributes {stable_mosaic.version = 11 : i64} {
  func.func @_entity_head_kernel(%arg0: i32, %arg1: memref<2x32xbf16, #tpu.memory_space<vmem>>, %arg2: memref<2x800xbf16, #tpu.memory_space<vmem>>, %arg3: memref<800x800xbf16, #tpu.memory_space<vmem>>, %arg4: memref<1x800xf32, #tpu.memory_space<vmem>>, %arg5: memref<32x32xbf16, #tpu.memory_space<vmem>>, %arg6: memref<800x32xbf16, #tpu.memory_space<vmem>>, %arg7: memref<1x32xf32, #tpu.memory_space<vmem>>, %arg8: memref<2x32xf32, #tpu.memory_space<vmem>>) attributes {dimension_semantics = [#tpu.dimension_semantics<arbitrary>], iteration_bounds = array<i64: 1>, scalar_prefetch = 0 : i64, scratch_operands = 0 : i64, tpu.core_type = #tpu.core_type<tc>, window_params = [{pipeline_mode = #tpu.pipeline_mode<synchronous>, transform_indices = @transform_0, window_bounds = array<i64: 2, 32>}, {pipeline_mode = #tpu.pipeline_mode<synchronous>, transform_indices = @transform_1, window_bounds = array<i64: 2, 800>}, {pipeline_mode = #tpu.pipeline_mode<synchronous>, transform_indices = @transform_2, window_bounds = array<i64: 800, 800>}, {pipeline_mode = #tpu.pipeline_mode<synchronous>, transform_indices = @transform_3, window_bounds = array<i64: 1, 800>}, {pipeline_mode = #tpu.pipeline_mode<synchronous>, transform_indices = @transform_4, window_bounds = array<i64: 32, 32>}, {pipeline_mode = #tpu.pipeline_mode<synchronous>, transform_indices = @transform_5, window_bounds = array<i64: 800, 32>}, {pipeline_mode = #tpu.pipeline_mode<synchronous>, transform_indices = @transform_6, window_bounds = array<i64: 1, 32>}, {pipeline_mode = #tpu.pipeline_mode<synchronous>, transform_indices = @transform_7, window_bounds = array<i64: 2, 32>}]} {
    %c0 = arith.constant 0 : index
    %c0_0 = arith.constant 0 : index
    %0 = vector.load %arg2[%c0, %c0_0] : memref<2x800xbf16, #tpu.memory_space<vmem>>, vector<2x800xbf16>
    %c0_1 = arith.constant 0 : index
    %c0_2 = arith.constant 0 : index
    %1 = vector.load %arg3[%c0_1, %c0_2] : memref<800x800xbf16, #tpu.memory_space<vmem>>, vector<800x800xbf16>
    %cst = arith.constant dense<0.000000e+00> : vector<2x800xf32>
    %2 = tpu.matmul %0, %1, %cst {dimension_numbers = #tpu.dot_dimension_numbers<[1], [0], [0], [1], [0, 0, 1, 1], [], []>} : vector<2x800xbf16>, vector<800x800xbf16>, vector<2x800xf32> -> vector<2x800xf32>
    %c0_3 = arith.constant 0 : index
    %c0_4 = arith.constant 0 : index
    %3 = vector.load %arg4[%c0_3, %c0_4] : memref<1x800xf32, #tpu.memory_space<vmem>>, vector<1x800xf32>
    %4 = vector.broadcast %3 : vector<1x800xf32> to vector<2x800xf32>
    %5 = arith.addf %2, %4 : vector<2x800xf32>
    %6 = math.tanh %5 : vector<2x800xf32>
    %c0_5 = arith.constant 0 : index
    %c0_6 = arith.constant 0 : index
    %7 = vector.load %arg1[%c0_5, %c0_6] : memref<2x32xbf16, #tpu.memory_space<vmem>>, vector<2x32xbf16>
    %c0_7 = arith.constant 0 : index
    %c0_8 = arith.constant 0 : index
    %8 = vector.load %arg5[%c0_7, %c0_8] : memref<32x32xbf16, #tpu.memory_space<vmem>>, vector<32x32xbf16>
    %cst_9 = arith.constant dense<0.000000e+00> : vector<2x32xf32>
    %9 = tpu.matmul %7, %8, %cst_9 {dimension_numbers = #tpu.dot_dimension_numbers<[1], [0], [0], [1], [0, 0, 1, 1], [], []>} : vector<2x32xbf16>, vector<32x32xbf16>, vector<2x32xf32> -> vector<2x32xf32>
    %10 = arith.truncf %6 : vector<2x800xf32> to vector<2x800xbf16>
    %c0_10 = arith.constant 0 : index
    %c0_11 = arith.constant 0 : index
    %11 = vector.load %arg6[%c0_10, %c0_11] : memref<800x32xbf16, #tpu.memory_space<vmem>>, vector<800x32xbf16>
    %cst_12 = arith.constant dense<0.000000e+00> : vector<2x32xf32>
    %12 = tpu.matmul %10, %11, %cst_12 {dimension_numbers = #tpu.dot_dimension_numbers<[1], [0], [0], [1], [0, 0, 1, 1], [], []>} : vector<2x800xbf16>, vector<800x32xbf16>, vector<2x32xf32> -> vector<2x32xf32>
    %13 = arith.addf %9, %12 : vector<2x32xf32>
    %c0_13 = arith.constant 0 : index
    %c0_14 = arith.constant 0 : index
    %14 = vector.load %arg7[%c0_13, %c0_14] : memref<1x32xf32, #tpu.memory_space<vmem>>, vector<1x32xf32>
    %15 = vector.broadcast %14 : vector<1x32xf32> to vector<2x32xf32>
    %16 = arith.addf %13, %15 : vector<2x32xf32>
    %c0_15 = arith.constant 0 : index
    %c0_16 = arith.constant 0 : index
    %17 = vector.load %arg8[%c0_15, %c0_16] : memref<2x32xf32, #tpu.memory_space<vmem>>, vector<2x32xf32>
    tpu.vector_store %arg8[%c0_15, %c0_16], %16 {strides = array<i32>} : memref<2x32xf32, #tpu.memory_space<vmem>>, vector<2x32xf32>,
    return
  }
  func.func @transform_0(%arg0: i32) -> (i32, i32) {
    %c0_i32 = arith.constant 0 : i32
    %c0_i32_0 = arith.constant 0 : i32
    %c0_i32_1 = arith.constant 0 : i32
    return %c0_i32, %c0_i32_0 : i32, i32
  }
  func.func @transform_1(%arg0: i32) -> (i32, i32) {
    %c0_i32 = arith.constant 0 : i32
    %c0_i32_0 = arith.constant 0 : i32
    %c0_i32_1 = arith.constant 0 : i32
    return %c0_i32, %c0_i32_0 : i32, i32
  }
  func.func @transform_2(%arg0: i32) -> (i32, i32) {
    %c0_i32 = arith.constant 0 : i32
    %c0_i32_0 = arith.constant 0 : i32
    %c0_i32_1 = arith.constant 0 : i32
    return %c0_i32, %c0_i32_0 : i32, i32
  }
  func.func @transform_3(%arg0: i32) -> (i32, i32) {
    %c0_i32 = arith.constant 0 : i32
    %c0_i32_0 = arith.constant 0 : i32
    %c0_i32_1 = arith.constant 0 : i32
    return %c0_i32, %c0_i32_0 : i32, i32
  }
  func.func @transform_4(%arg0: i32) -> (i32, i32) {
    %c0_i32 = arith.constant 0 : i32
    %c0_i32_0 = arith.constant 0 : i32
    %c0_i32_1 = arith.constant 0 : i32
    return %c0_i32, %c0_i32_0 : i32, i32
  }
  func.func @transform_5(%arg0: i32) -> (i32, i32) {
    %c0_i32 = arith.constant 0 : i32
    %c0_i32_0 = arith.constant 0 : i32
    %c0_i32_1 = arith.constant 0 : i32
    return %c0_i32, %c0_i32_0 : i32, i32
  }
  func.func @transform_6(%arg0: i32) -> (i32, i32) {
    %c0_i32 = arith.constant 0 : i32
    %c0_i32_0 = arith.constant 0 : i32
    %c0_i32_1 = arith.constant 0 : i32
    return %c0_i32, %c0_i32_0 : i32, i32
  }
  func.func @transform_7(%arg0: i32) -> (i32, i32) {
    %c0_i32 = arith.constant 0 : i32
    %c0_i32_0 = arith.constant 0 : i32
    %c0_i32_1 = arith.constant 0 : i32
    return %c0_i32, %c0_i32_0 : i32, i32
  }
}

</mosaic_0001>

<bundles_post_ra>
// kernel: _forward.12
= control target key start
LH: loop header
LB: loop body
LE: loop exit
PB: predicated region body
PF: predicated region fallthrough
CT: control target
= control target key end

     0   :  { %8 = vsyncpa [#allocation3], 0  ;;  %s203_s0 = inlined_call_operand.vmem [shape: f32[16,32], index: 0, kind: input, shape index: {}]   ;;  %s204_s1 = inlined_call_operand.hbm [shape: f32[1,32], index: 1, kind: input, shape index: {}]   ;;  %s205_s2 = inlined_call_operand.hbm [shape: f32[1,32], index: 2, kind: input, shape index: {}]   ;;  %s206_s3 = inlined_call_operand.vmem [shape: bf16[16,32], index: 3, kind: output, shape index: {}]  }
   0x1   :  { %9 = vsyncpa [#allocation5], 0  ;;  %s159_s12 = smov [#allocation2]   ;;  %s160_s14 = smov [#allocation4]  }
   0x2   :  { %s18_s13 = sshll.u32 %s159_s12, 4  ;;  %s28_s15 = sshll.u32 %s160_s14, 4  ;;  %s19_s13 = int_to_ptr.vmem [resolvable:$true] %s18_s13  ;;  %s29_s15 = int_to_ptr.vmem [resolvable:$true] %s28_s15 }
   0x3   :  { %s123_s16 = scalar_lea.vmem %s19_s13, 16  ;;  %s127_s17 = scalar_lea.vmem %s19_s13, 32 }
   0x4   :  { %p124_p0 = scmp.ne.s32.totalorder %s19_s13, %s123_s16  ;;  %p128_p1 = scmp.lt.s32.totalorder %s19_s13, %s19_s13 }
   0x5   :  { %p129_p2 = scmp.lt.s32.totalorder %s127_s17, %s123_s16 }
   0x7   :  { %p130_p3 = por %p129_p2, %p128_p1 }
   0x9   :  { %p131_p4 = pnand %p130_p3, %p124_p0 }
   0xb   :  { %134 = shalt.err (!%p131_p4)
}
   0xc   :  { %21 = dma.hbm_to_vmem [thread:$0]  %s204_s1, 16, %s19_s13, [#allocation3]  }
   0xd   :  { %s143_s20 = scalar_lea.vmem %s29_s15, 16  ;;  %s147_s21 = scalar_lea.vmem %s29_s15, 32 }
   0xe   :  { %p144_p5 = scmp.ne.s32.totalorder %s29_s15, %s143_s20  ;;  %p148_p6 = scmp.lt.s32.totalorder %s29_s15, %s29_s15 }
   0xf   :  { %p149_p7 = scmp.lt.s32.totalorder %s147_s21, %s143_s20 }
  0x11   :  { %p150_p8 = por %p149_p7, %p148_p6 }
  0x13   :  { %p151_p9 = pnand %p150_p8, %p144_p5 }
  0x15   :  { %154 = shalt.err (!%p151_p9)
}
  0x16   :  { %31 = dma.hbm_to_vmem [thread:$0]  %s205_s2, 16, %s29_s15, [#allocation5]  }
  0x17   :  { %155 = dma.done.wait [#allocation3], 16  }
  0x18   :  { %156 = vsyncadd [#allocation3], 4294967280 }
  0x19   :  { %157 = dma.done.wait [#allocation5], 16  }
  0x1a   :  { %158 = vsyncadd [#allocation5], 4294967280  ;;  %vm40_vm0 = vcmask 261120   ;;  %v38_v0 = vld [vmem:[%s203_s0] sm:$0xff]  ;;  %v39_v1 = vld [vmem:[%s203_s0 + $0x8] sm:$0xff]  ;;  %vm94_vm1 = vcmask 257024  }
  0x1b   :  { %v41_v2 = vsel %vm40_vm0, %v38_v0, 0.0  ;;  %v44_v3 = vsel %vm40_vm0, %v39_v1, 0.0  ;;  %v103_v21 = vld [vmem:[#allocation2] ss:$0 sm:$0xff]  ;;  %v104_v23 = vld [vmem:[#allocation4] ss:$0 sm:$0xff] }
  0x1c   :  { %42 = vadd.xlane.f32.xlu0 %v41_v2 }
  0x20   :  { %45 = vadd.xlane.f32.xlu0 %v44_v3 }
  0xa5   :  { %v43_v4 = vpop.xlane.xlu0 %42 }
  0xa6   :  { %v48_v5 = vmul.f32 0.03125, %v43_v4 }
  0xa8   :  { %v50_v6 = vsub.f32 %v38_v0, %v48_v5 }
  0xa9   :  { %v46_v7 = vpop.xlane.xlu0 %45 }
  0xaa   :  { %v49_v8 = vmul.f32 0.03125, %v46_v7  ;;  %v52_v9 = vmul.f32 %v50_v6, %v50_v6 }
  0xac   :  { %v51_v10 = vsub.f32 %v39_v1, %v49_v8  ;;  %v54_v11 = vsel %vm40_vm0, %v52_v9, 0.0 }
  0xad   :  { %55 = vadd.xlane.f32.xlu1 %v54_v11 }
  0xae   :  { %v53_v12 = vmul.f32 %v51_v10, %v51_v10 }
  0xb0   :  { %v57_v13 = vsel %vm40_vm0, %v53_v12, 0.0 }
  0xb1   :  { %58 = vadd.xlane.f32.xlu1 %v57_v13 }
 0x136   :  { %v56_v14 = vpop.xlane.xlu1 %55 }
 0x137   :  { %v60_v15 = vmul.f32 0.03125, %v56_v14 }
 0x139   :  { %v62_v16 = vadd.f32 1e-12, %v60_v15 }
 0x13a   :  { %v59_v17 = vpop.xlane.xlu1 %58 }
 0x13b   :  { %111 = vrsqrt.f32 %v62_v16  ;;  %v61_v18 = vmul.f32 0.03125, %v59_v17 }
 0x13d   :  { %v63_v19 = vadd.f32 1e-12, %v61_v18 }
 0x13f   :  { %113 = vrsqrt.f32 %v63_v19 }
 0x148   :  { %v112_v20 = vpop.eup %111 }
 0x149   :  { %v66_v22 = vmul.f32 %v112_v20, %v50_v6 }
 0x14b   :  { %v75_v24 = vmul.f32 %v103_v21, %v66_v22 }
 0x14c   :  { %v114_v25 = vpop.eup %113 }
 0x14d   :  { %v84_v26 = vadd.f32 %v104_v23, %v75_v24  ;;  %v67_v27 = vmul.f32 %v114_v25, %v51_v10 }
 0x14f   :  { %v107_v28 = vpack.c.bf16 %v84_v26, %v84_v26  ;;  %v76_v29 = vmul.f32 %v103_v21, %v67_v27 }
 0x151   :  { %95 = vst.msk [vmem:[%s206_s3] sm:$0xf] %vm94_vm1, %v107_v28  ;;  %v85_v30 = vadd.f32 %v104_v23, %v76_v29 }
 0x153   :  { %v108_v31 = vpack.c.bf16 %v85_v30, %v85_v30 }
 0x155   :  { %96 = vst.msk [vmem:[%s206_s3 + $0x4] sm:$0xf] %vm94_vm1, %v108_v31 }
 0x156   :  { %101 = vsyncpa [#allocation3], 1 }
 0x157   :  { %102 = vsyncpa [#allocation5], 1 }

// kernel: _forward.13
= control target key start
LH: loop header
LB: loop body
LE: loop exit
PB: predicated region body
PF: predicated region fallthrough
CT: control target
= control target key end

     0   :  { %8 = vsyncpa [#allocation4], 0  ;;  %s272_s0 = inlined_call_operand.vmem [shape: bf16[16,32], index: 0, kind: input, shape index: {}]   ;;  %s273_s1 = inlined_call_operand.hbm [shape: bf16[32,96], index: 1, kind: input, shape index: {}]   ;;  %s274_s2 = inlined_call_operand.hbm [shape: f32[1,96], index: 2, kind: input, shape index: {}]   ;;  %s275_s3 = inlined_call_operand.vmem [shape: bf16[16,96], index: 3, kind: output, shape index: {}]  }
   0x1   :  { %9 = vsyncpa [#allocation6], 0  ;;  %s227_s12 = smov [#allocation3]  }
   0x2   :  { %s17_s13 = sshll.u32 %s227_s12, 4  ;;  %s18_s13 = int_to_ptr.vmem [resolvable:$true] %s17_s13 }
   0x3   :  { %s191_s14 = scalar_lea.vmem %s18_s13, 256  ;;  %p196_p1 = scmp.lt.s32.totalorder %s18_s13, %s18_s13 }
   0x4   :  { %p192_p0 = scmp.ne.s32.totalorder %s18_s13, %s191_s14  ;;  %p197_p2 = scmp.lt.s32.totalorder %s191_s14, %s191_s14 }
   0x6   :  { %p198_p3 = por %p197_p2, %p196_p1 }
   0x8   :  { %p199_p4 = pnand %p198_p3, %p192_p0 }
   0xa   :  { %202 = shalt.err (!%p199_p4)
}
   0xb   :  { %s228_s15 = smov 64   ;;  %s229_s16 = smov 4  }
   0xc   :  { %23 = dma.hbm_to_vmem [thread:$0]  %s273_s1, 256, %s18_s13, [#allocation4], %s228_s15, %s228_s15, %s229_s16  }
   0xd   :  { %s230_s19 = smov [#allocation5]  }
   0xe   :  { %s30_s20 = sshll.u32 %s230_s19, 4  ;;  %s31_s20 = int_to_ptr.vmem [resolvable:$true] %s30_s20 }
   0xf   :  { %s211_s21 = scalar_lea.vmem %s31_s20, 16  ;;  %s215_s22 = scalar_lea.vmem %s31_s20, 32 }
  0x10   :  { %p212_p5 = scmp.ne.s32.totalorder %s31_s20, %s211_s21  ;;  %p216_p6 = scmp.lt.s32.totalorder %s31_s20, %s31_s20 }
  0x11   :  { %p217_p7 = scmp.lt.s32.totalorder %s215_s22, %s211_s21 }
  0x13   :  { %p218_p8 = por %p217_p7, %p216_p6 }
  0x15   :  { %p219_p9 = pnand %p218_p8, %p212_p5 }
  0x17   :  { %222 = shalt.err (!%p219_p9)
}
  0x18   :  { %33 = dma.hbm_to_vmem [thread:$0]  %s274_s2, 16, %s31_s20, [#allocation6]  }
  0x19   :  { %223 = dma.done.wait [#allocation4], 256  }
  0x1a   :  { %224 = vsyncadd [#allocation4], 4294967040 }
  0x1b   :  { %225 = dma.done.wait [#allocation6], 16  }
  0x1c   :  { %226 = vsyncadd [#allocation6], 4294967280  ;;  %vm45_vm0 = vcmask 785408   ;;  %v231_v0 = vmov 0.0   ;;  %vm232_vm1 = vmmov 0   ;;  %v180_v1 = vld [vmem:[#allocation3 + $0x8] sm:$0xff]  }
  0x1d   :  { %46 = vst.msk [vmem:[#allocation2] sm:$0xff] %vm45_vm0, %v231_v0  ;;  %47 = vst.msk [vmem:[#allocation2 + $0x8] sm:$0xff] %vm45_vm0, %v231_v0  ;;  %166 = vmatprep.subr.bf16.mxu0 %v231_v0  ;;  %170 = vmatprep.mubr.msk.bf16.mxu0 %vm232_vm1, %v231_v0  ;;  %v181_v2 = vld [vmem:[#allocation3] sm:$0xff]   ;;  %v182_v3 = vld [vmem:[%s272_s0] sm:$0xff]   ;;  %vm73_vm2 = vcmask 261120   ;;  %vm145_vm3 = vcmask 781312  }
  0x1e   :  { %167 = vmatpush3.bf16.msra.mxu0 %v180_v1  ;;  %v158_v12 = vld [vmem:[#allocation5] ss:$0 sm:$0xff] }
  0x1f   :  { %168 = vmatprep.subr.bf16.mxu0 %v231_v0 }
  0x22   :  { %169 = vmatpush3.bf16.msra.mxu0 %v181_v2 }
  0x24   :  { %v48_v4 = vld [vmem:[#allocation2] sm:$0xff]  ;;  %v49_v8 = vld [vmem:[#allocation2 + $0x8] sm:$0xff] }
  0x25   :  { %171 = vmatmul.mubr.msk.bf16.vlgmr.msra.gmra.mxu0 %vm73_vm2, %v182_v3 }
  0xe5   :  { %v111_v5 = vpop.f32.mrf.mxu0 }
  0xe6   :  { %v118_v6 = vadd.f32 %v111_v5, %v48_v4 }
  0xe7   :  { %v172_v7 = vpop.f32.mrf.mxu0 }
  0xe8   :  { %121 = vst.msk [vmem:[#allocation2] sm:$0xff] %vm45_vm0, %v118_v6 }
  0xe9   :  { %v114_v9 = vpop.f32.mrf.mxu0 }
  0xea   :  { %v119_v10 = vadd.f32 %v114_v9, %v49_v8 }
  0xeb   :  { %v173_v11 = vpop.f32.mrf.mxu0 }
  0xec   :  { %122 = vst.msk [vmem:[#allocation2 + $0x8] sm:$0xff] %vm45_vm0, %v119_v10 }
  0xef   :  { %v126_v13 = vld [vmem:[#allocation2] sm:$0xff] }
  0xf0   :  { %v135_v14 = vadd.f32 %v158_v12, %v126_v13 }
  0xf2   :  { %v161_v15 = vpack.c.bf16 %v135_v14, %v135_v14 }
  0xf3   :  { %v127_v16 = vld [vmem:[#allocation2 + $0x8] sm:$0xff] }
  0xf4   :  { %146 = vst.msk [vmem:[%s275_s3] sm:$0xf] %vm145_vm3, %v161_v15  ;;  %v136_v17 = vadd.f32 %v158_v12, %v127_v16 }
  0xf6   :  { %v162_v18 = vpack.c.bf16 %v136_v17, %v136_v17 }
  0xf8   :  { %147 = vst.msk [vmem:[%s275_s3 + $0x4] sm:$0xf] %vm145_vm3, %v162_v18 }
  0xf9   :  { %152 = vsyncpa [#allocation4], 1 }
  0xfa   :  { %153 = vsyncpa [#allocation6], 1 }

// kernel: _forward.15
= control target key start
LH: loop header
LB: loop body
LE: loop exit
PB: predicated region body
PF: predicated region fallthrough
CT: control target
= control target key end

     0   :  { %11 = vsyncpa [#allocation4], 0  ;;  %s440_s0 = inlined_call_operand.vmem [shape: bf16[16,32], index: 0, kind: input, shape index: {}]   ;;  %s441_s1 = inlined_call_operand.hbm [shape: bf16[32,32], index: 1, kind: input, shape index: {}]   ;;  %s442_s2 = inlined_call_operand.hbm [shape: f32[1,32], index: 2, kind: input, shape index: {}]   ;;  %s443_s3 = inlined_call_operand.vmem [shape: bf16[16,32], index: 3, kind: input, shape index: {}]   ;;  %s444_s4 = inlined_call_operand.hbm [shape: f32[1,32], index: 4, kind: input, shape index: {}]   ;;  %s445_s5 = inlined_call_operand.hbm [shape: f32[1,32], index: 5, kind: input, shape index: {}]   ;;  %s446_s6 = inlined_call_operand.vmem [shape: bf16[16,32], index: 6, kind: output, shape index: {}]  }
   0x1   :  { %12 = vsyncpa [#allocation6], 0 }
   0x2   :  { %13 = vsyncpa [#allocation9], 0  ;;  %s364_s21 = smov [#allocation5]   ;;  %s365_s23 = smov [#allocation3]  }
   0x3   :  { %s34_s22 = sshll.u32 %s364_s21, 4  ;;  %s21_s24 = sshll.u32 %s365_s23, 4  ;;  %s35_s22 = int_to_ptr.vmem [resolvable:$true] %s34_s22  ;;  %s22_s24 = int_to_ptr.vmem [resolvable:$true] %s21_s24 }
   0x4   :  { %s286_s25 = scalar_lea.vmem %s35_s22, 16  ;;  %s290_s26 = scalar_lea.vmem %s35_s22, 32 }
   0x5   :  { %p287_p0 = scmp.ne.s32.totalorder %s35_s22, %s286_s25  ;;  %p291_p1 = scmp.lt.s32.totalorder %s35_s22, %s35_s22 }
   0x6   :  { %p292_p2 = scmp.lt.s32.totalorder %s290_s26, %s286_s25 }
   0x8   :  { %p293_p3 = por %p292_p2, %p291_p1 }
   0xa   :  { %p294_p4 = pnand %p293_p3, %p287_p0 }
   0xc   :  { %297 = shalt.err (!%p294_p4)
}
   0xd   :  { %37 = dma.hbm_to_vmem [thread:$0]  %s442_s2, 16, %s35_s22, [#allocation6]  }
   0xe   :  { %s306_s29 = scalar_lea.vmem %s22_s24, 256  ;;  %p311_p6 = scmp.lt.s32.totalorder %s22_s24, %s22_s24 }
   0xf   :  { %p307_p5 = scmp.ne.s32.totalorder %s22_s24, %s306_s29  ;;  %p312_p7 = scmp.lt.s32.totalorder %s306_s29, %s306_s29 }
  0x11   :  { %p313_p8 = por %p312_p7, %p311_p6 }
  0x13   :  { %p314_p9 = pnand %p313_p8, %p307_p5 }
  0x15   :  { %317 = shalt.err (!%p314_p9)
}
  0x16   :  { %s366_s30 = smov 64   ;;  %s367_s7 = smov 4  }
  0x17   :  { %27 = dma.hbm_to_vmem [thread:$0]  %s441_s1, 256, %s22_s24, [#allocation4], %s366_s30, %s366_s30, %s367_s7  }
  0x18   :  { %s368_s10 = smov [#allocation7]   ;;  %s369_s12 = smov [#allocation8]  }
  0x19   :  { %s46_s11 = sshll.u32 %s368_s10, 4  ;;  %s56_s13 = sshll.u32 %s369_s12, 4  ;;  %s47_s11 = int_to_ptr.vmem [resolvable:$true] %s46_s11  ;;  %s57_s13 = int_to_ptr.vmem [resolvable:$true] %s56_s13 }
  0x1a   :  { %s326_s2 = scalar_lea.vmem %s47_s11, 16  ;;  %s330_s14 = scalar_lea.vmem %s47_s11, 32 }
  0x1b   :  { %p327_p10 = scmp.ne.s32.totalorder %s47_s11, %s326_s2  ;;  %p331_p11 = scmp.lt.s32.totalorder %s47_s11, %s47_s11 }
  0x1c   :  { %p332_p12 = scmp.lt.s32.totalorder %s330_s14, %s326_s2 }
  0x1e   :  { %p333_p13 = por %p332_p12, %p331_p11 }
  0x20   :  { %p334_p0 = pnand %p333_p13, %p327_p10 }
  0x22   :  { %337 = shalt.err (!%p334_p0)
}
  0x23   :  { %49 = dma.hbm_to_vmem [thread:$0]  %s444_s4, 16, %s47_s11, [#allocation6]  }
  0x24   :  { %s346_s17 = scalar_lea.vmem %s57_s13, 16  ;;  %s350_s1 = scalar_lea.vmem %s57_s13, 32 }
  0x25   :  { %p347_p1 = scmp.ne.s32.totalorder %s57_s13, %s346_s17  ;;  %p351_p2 = scmp.lt.s32.totalorder %s57_s13, %s57_s13 }
  0x26   :  { %p352_p3 = scmp.lt.s32.totalorder %s350_s1, %s346_s17 }
  0x28   :  { %p353_p4 = por %p352_p3, %p351_p2 }
  0x2a   :  { %p354_p5 = pnand %p353_p4, %p347_p1 }
  0x2c   :  { %357 = shalt.err (!%p354_p5)
}
  0x2d   :  { %59 = dma.hbm_to_vmem [thread:$0]  %s445_s5, 16, %s57_s13, [#allocation9]  }
  0x2e   :  { %358 = dma.done.wait [#allocation4], 256  }
  0x2f   :  { %359 = vsyncadd [#allocation4], 4294967040 }
  0x30   :  { %360 = dma.done.wait [#allocation6], 32  }
  0x31   :  { %361 = vsyncadd [#allocation6], 4294967264 }
  0x32   :  { %362 = dma.done.wait [#allocation9], 16  }
  0x33   :  { %363 = vsyncadd [#allocation9], 4294967280  ;;  %vm77_vm0 = vcmask 261120   ;;  %v370_v0 = vmov 0.0   ;;  %vm371_vm1 = vmmov 0   ;;  %v271_v1 = vld [vmem:[#allocation3 + $0x8] sm:$0xff]  }
  0x34   :  { %78 = vst.msk [vmem:[#allocation2] sm:$0xff] %vm77_vm0, %v370_v0  ;;  %79 = vst.msk [vmem:[#allocation2 + $0x8] sm:$0xff] %vm77_vm0, %v370_v0  ;;  %255 = vmatprep.subr.bf16.mxu0 %v370_v0  ;;  %259 = vmatprep.mubr.msk.bf16.mxu0 %vm371_vm1, %v370_v0  ;;  %v272_v2 = vld [vmem:[#allocation3] sm:$0xff]   ;;  %v273_v3 = vld [vmem:[%s440_s0] sm:$0xff]   ;;  %vm227_vm2 = vcmask 257024  }
  0x35   :  { %256 = vmatpush3.bf16.msra.mxu0 %v271_v1  ;;  %v249_v12 = vld [vmem:[%s443_s3] sm:$0xff]  }
  0x36   :  { %257 = vmatprep.subr.bf16.mxu0 %v370_v0  ;;  %v241_v13 = vld [vmem:[#allocation5] ss:$0 sm:$0xff]  ;;  %v250_v14 = vunpack.c.l.bf16 %v249_v12  ;;  %v251_v18 = vunpack.c.h.bf16 %v249_v12  ;;  %v242_v41 = vld [vmem:[#allocation7] ss:$0 sm:$0xff]  ;;  %v243_v43 = vld [vmem:[#allocation8] ss:$0 sm:$0xff] }
  0x39   :  { %258 = vmatpush3.bf16.msra.mxu0 %v272_v2 }
  0x3b   :  { %v80_v4 = vld [vmem:[#allocation2] sm:$0xff]  ;;  %v81_v8 = vld [vmem:[#allocation2 + $0x8] sm:$0xff] }
  0x3c   :  { %260 = vmatmul.mubr.msk.bf16.vlgmr.msra.gmra.mxu0 %vm77_vm0, %v273_v3 }
  0xfc   :  { %v143_v5 = vpop.f32.mrf.mxu0 }
  0xfd   :  { %v150_v6 = vadd.f32 %v143_v5, %v80_v4 }
  0xfe   :  { %v261_v7 = vpop.f32.mrf.mxu0 }
  0xff   :  { %152 = vst.msk [vmem:[#allocation2] sm:$0xff] %vm77_vm0, %v150_v6 }
 0x100   :  { %v146_v9 = vpop.f32.mrf.mxu0 }
 0x101   :  { %v151_v10 = vadd.f32 %v146_v9, %v81_v8 }
 0x102   :  { %v262_v11 = vpop.f32.mrf.mxu0 }
 0x103   :  { %153 = vst.msk [vmem:[#allocation2 + $0x8] sm:$0xff] %vm77_vm0, %v151_v10 }
 0x106   :  { %v157_v15 = vld [vmem:[#allocation2] sm:$0xff] }
 0x107   :  { %v166_v16 = vadd.f32 %v241_v13, %v157_v15 }
 0x109   :  { %v172_v17 = vadd.f32 %v250_v14, %v166_v16 }
 0x10a   :  { %v158_v19 = vld [vmem:[#allocation2 + $0x8] sm:$0xff] }
 0x10b   :  { %v174_v20 = vsel %vm77_vm0, %v172_v17, 0.0  ;;  %v167_v21 = vadd.f32 %v241_v13, %v158_v19 }
 0x10c   :  { %175 = vadd.xlane.f32.xlu0 %v174_v20 }
 0x10d   :  { %v173_v22 = vadd.f32 %v251_v18, %v167_v21 }
 0x10f   :  { %v177_v23 = vsel %vm77_vm0, %v173_v22, 0.0 }
 0x110   :  { %178 = vadd.xlane.f32.xlu0 %v177_v23 }
 0x195   :  { %v176_v24 = vpop.xlane.xlu0 %175 }
 0x196   :  { %v181_v25 = vmul.f32 0.03125, %v176_v24 }
 0x198   :  { %v183_v26 = vsub.f32 %v172_v17, %v181_v25 }
 0x199   :  { %v179_v27 = vpop.xlane.xlu0 %178 }
 0x19a   :  { %v182_v28 = vmul.f32 0.03125, %v179_v27  ;;  %v185_v29 = vmul.f32 %v183_v26, %v183_v26 }
 0x19c   :  { %v184_v30 = vsub.f32 %v173_v22, %v182_v28  ;;  %v187_v31 = vsel %vm77_vm0, %v185_v29, 0.0 }
 0x19d   :  { %188 = vadd.xlane.f32.xlu1 %v187_v31 }
 0x19e   :  { %v186_v32 = vmul.f32 %v184_v30, %v184_v30 }
 0x1a0   :  { %v190_v33 = vsel %vm77_vm0, %v186_v32, 0.0 }
 0x1a1   :  { %191 = vadd.xlane.f32.xlu1 %v190_v33 }
 0x226   :  { %v189_v34 = vpop.xlane.xlu1 %188 }
 0x227   :  { %v193_v35 = vmul.f32 0.03125, %v189_v34 }
 0x229   :  { %v195_v36 = vadd.f32 1e-12, %v193_v35 }
 0x22a   :  { %v192_v37 = vpop.xlane.xlu1 %191 }
 0x22b   :  { %274 = vrsqrt.f32 %v195_v36  ;;  %v194_v38 = vmul.f32 0.03125, %v192_v37 }
 0x22d   :  { %v196_v39 = vadd.f32 1e-12, %v194_v38 }
 0x22f   :  { %276 = vrsqrt.f32 %v196_v39 }
 0x238   :  { %v275_v40 = vpop.eup %274 }
 0x239   :  { %v199_v42 = vmul.f32 %v275_v40, %v183_v26 }
 0x23b   :  { %v208_v44 = vmul.f32 %v242_v41, %v199_v42 }
 0x23c   :  { %v277_v45 = vpop.eup %276 }
 0x23d   :  { %v217_v46 = vadd.f32 %v243_v43, %v208_v44  ;;  %v200_v47 = vmul.f32 %v277_v45, %v184_v30 }
 0x23f   :  { %v246_v48 = vpack.c.bf16 %v217_v46, %v217_v46  ;;  %v209_v49 = vmul.f32 %v242_v41, %v200_v47 }
 0x241   :  { %228 = vst.msk [vmem:[%s446_s6] sm:$0xf] %vm227_vm2, %v246_v48  ;;  %v218_v50 = vadd.f32 %v243_v43, %v209_v49 }
 0x243   :  { %v247_v51 = vpack.c.bf16 %v218_v50, %v218_v50 }
 0x245   :  { %229 = vst.msk [vmem:[%s446_s6 + $0x4] sm:$0xf] %vm227_vm2, %v247_v51 }
 0x246   :  { %234 = vsyncpa [#allocation4], 1 }
 0x247   :  { %235 = vsyncpa [#allocation6], 1 }
 0x248   :  { %236 = vsyncpa [#allocation9], 1 }

// kernel: _forward.14
= control target key start
LH: loop header
LB: loop body
LE: loop exit
PB: predicated region body
PF: predicated region fallthrough
CT: control target
= control target key end

     0   :  { %s856_s9 = smov 0   ;;  %s952_s0 = inlined_call_operand.vmem [shape: bf16[2,8,96], index: 0, kind: input, shape index: {}]   ;;  %s953_s1 = inlined_call_operand.vmem [shape: f32[2,1,8], index: 1, kind: input, shape index: {}]   ;;  %s954_s2 = inlined_call_operand.vmem [shape: bf16[2,8,32], index: 2, kind: output, shape index: {}]  }
   0x1 LB: > { %s692_s10 = sadd.s32 4294967295, %s823_s9   ;;  %p696_p0 = scmp.ge.s32.totalorder %s823_s9, 1  ;;  %s823_s9 = sphi %s856_s9, %s12_s9  }
   0x2   : > { %p119_p1 = scmp.lt.s32.totalorder %s823_s9, 3 }
   0x4   : > { %p120_p2 = pnand %p696_p0, %p119_p1 }
   0x5   : > { %p142_p3 = scmp.lt.s32.totalorder (!%p120_p2), %s692_s10, 1  ;;  %s827_s15 = smov (!%p120_p2), 96  }
   0x6   : > { %123 = sbr.rel (%p120_p2) target bundleno = 1539 (0x603), region = 28  ;;  %s828_s16 = smov (!%p120_p2), 64  }
   0x7   : > { %s829_s17 = smov (!%p120_p2), 88   ;;  %s830_s21 = smov (!%p120_p2), 72  }
   0x8   : > { %s831_s22 = smov (!%p120_p2), 120   ;;  %s832_s23 = smov (!%p120_p2), 80  }
   0x9   : > { %s833_s24 = smov (!%p120_p2), 112   ;;  %s834_s25 = smov (!%p120_p2), 104  }
   0xa   : > { %s835_s26 = smov (!%p120_p2), 56   ;;  %s836_s27 = smov (!%p120_p2), 48  }
   0xb   : > { %v825_v0 = vmov 0.0   ;;  %vm826_vm0 = vmmov 0   ;;  %s956_s10 = smov (!%p142_p3, %s692_s10), 1  ;;  %vm169_vm1 = vcmask 64512   ;;  %vm233_vm2 = vcmask 1043456   ;;  %s837_s28 = smov 40  }
   0xc   : > { %728 = vmatprep.subr.bf16.mxu0 %v825_v0  ;;  %730 = vmatprep.mubr.msk.bf16.mxu0 %vm826_vm0, %v825_v0  ;;  %s697_s11 = sshll.u32 %s956_s10, 2  ;;  %s148_s20 = scalar_lea.vmem %s953_s1, %s956_s10  ;;  %vm623_vm3 = vcmask 130048   ;;  %vm625_vm4 = vcmask 195584   ;;  %vm628_vm5 = vcmask 257024  }
   0xd   : > { %734 = vmatprep.subr.bf16.mxu1 %v825_v0  ;;  %736 = vmatprep.mubr.msk.bf16.mxu1 %vm826_vm0, %v825_v0  ;;  %s145_s14 = scalar_lea.vmem %s952_s0, %s697_s11  ;;  %v892_v6 = vld [vmem:[%s148_s20] ss:$0 sm:$0xff]  ;;  %s838_s29 = smov 8  }
   0xe   : > { %v155_v1 = vld [vmem:[%s145_s14] sm:$0xf]  ;;  %s839_s30 = smov 16   ;;  %s840_s3 = smov 24  }
   0xf   : > { %v878_v2 = vcombine.low %v155_v1, %v155_v1  ;;  %v157_v5 = vmul.bf16 1052065461, %v155_v1  ;;  %s152_s6 = scalar_lea.vmem %s954_s2, %s697_s11 }
  0x11   : > { %167 = vrot.lane.b32.xlu0 %v878_v2, %s827_s15  ;;  %228 = vrot.lane.b32.xlu1 %v878_v2, %s828_s16  ;;  %v703_v20 = vcombine.low %v157_v5, %v157_v5 }
  0x15   : > { %282 = vrot.lane.b32.xlu1 %v878_v2, %s829_s17 }
  0x83   : > { %v168_v3 = vpop.permute.xlu0 %167  ;;  %v229_v13 = vpop.permute.xlu1 %228 }
  0x84   : > { %v174_v4 = vsel %vm169_vm1, %v168_v3, 0  ;;  %v235_v14 = vsel %vm233_vm2, %v229_v13, 0 }
  0x85   : > { %729 = vmatpush3.bf16.xpose.msra.mxu0 %v174_v4  ;;  %735 = vmatpush3.bf16.msra.mxu1 %v235_v14 }
  0x86   : > { %746 = vmatprep.subr.bf16.mxu0 %v825_v0  ;;  %740 = vmatprep.subr.bf16.mxu1 %v825_v0 }
  0x87   : > { %v283_v21 = vpop.permute.xlu1 %282 }
  0x88   : > { %v288_v27 = vsel %vm169_vm1, %v283_v21, 0 }
  0x8c   : > { %731 = vmatmul.mubr.msk.bf16.vlgmr.msra.gmra.mxu0 %vm169_vm1, %v157_v5 }
  0x8d   : > { %748 = vmatprep.mubr.msk.bf16.mxu0 %vm826_vm0, %v825_v0 }
 0x14c   : > { %v210_v7 = vpop.f32.mrf.mxu0 }
 0x14d   : > { %v211_v8 = vadd.f32 %v892_v6, %v210_v7 }
 0x14e   : > { %v732_v9 = vpop.f32.mrf.mxu0 }
 0x14f   : > { %v216_v10 = vsel %vm169_vm1, %v211_v8, -inf }
 0x150   : > { %217 = vmax.xlane.f32.xlu0 %v216_v10  ;;  %v213_v11 = vpop.f32.mrf.mxu0 }
 0x152   : > { %v733_v12 = vpop.f32.mrf.mxu0 }
 0x166   : > { %502 = vrot.lane.b32.xlu0 %v878_v2, %s830_s21 }
 0x1d9   : > { %v218_v15 = vpop.xlane.xlu0 %217 }
 0x1da   : > { %v219_v16 = vsub.f32 %v211_v8, %v218_v15 }
 0x1dc   : > { %v220_v17 = vmul.f32 1.442695, %v219_v16 }
 0x1dd   : > { %v503_v30 = vpop.permute.xlu0 %502 }
 0x1de   : > { %801 = vpow2.f32 %v220_v17  ;;  %v508_v32 = vsel %vm169_vm1, %v503_v30, 0 }
 0x1eb   : > { %v802_v18 = vpop.eup %801 }
 0x1ec   : > { %v222_v19 = vsel %vm169_vm1, %v802_v18, 0.0 }
 0x1ed   : > { %223 = vadd.xlane.f32.xlu1 %v222_v19 }
 0x1fe   : > { %280 = vrot.lane.b32.xlu1 %v703_v20, %s831_s22 }
 0x202   : > { %392 = vrot.lane.b32.xlu1 %v878_v2, %s832_s23 }
 0x206   : > { %390 = vrot.lane.b32.xlu1 %v703_v20, %s833_s24 }
 0x20a   : > { %500 = vrot.lane.b32.xlu1 %v703_v20, %s834_s25 }
 0x276   : > { %v224_v22 = vpop.xlane.xlu1 %223 }
 0x277   : > { %803 = vrcp.f32 %v224_v22 }
 0x27a   : > { %v281_v25 = vpop.permute.xlu1 %280 }
 0x27e   : > { %v393_v28 = vpop.permute.xlu1 %392 }
 0x27f   : > { %v398_v29 = vsel %vm169_vm1, %v393_v28, 0 }
 0x282   : > { %v391_v31 = vpop.permute.xlu1 %390 }
 0x284   : > { %v804_v23 = vpop.eup %803 }
 0x285   : > { %v226_v24 = vmul.f32 %v804_v23, %v802_v18 }
 0x286   : > { %v501_v33 = vpop.permute.xlu1 %500 }
 0x287   : > { %v227_v26 = vpack.c.bf16 %v226_v24, %v226_v24 }
 0x289   : > { %737 = vmatmul.mubr.msk.bf16.vlgmr.msra.gmra.mxu1 %vm169_vm1, %v227_v26 }
 0x28a   : > { %741 = vmatpush3.bf16.xpose.msra.mxu1 %v288_v27  ;;  %742 = vmatprep.mubr.msk.bf16.mxu1 %vm826_vm0, %v825_v0 }
 0x28b   : > { %752 = vmatprep.subr.bf16.mxu1 %v825_v0 }
 0x291   : > { %743 = vmatmul.mubr.msk.bf16.vlgmr.msra.gmra.mxu1 %vm169_vm1, %v281_v25 }
 0x292   : > { %753 = vmatpush3.bf16.xpose.msra.mxu1 %v398_v29  ;;  %754 = vmatprep.mubr.msk.bf16.mxu1 %vm826_vm0, %v825_v0 }
 0x293   : > { %764 = vmatprep.subr.bf16.mxu1 %v825_v0 }
 0x299   : > { %755 = vmatmul.mubr.msk.bf16.vlgmr.msra.gmra.mxu1 %vm169_vm1, %v391_v31 }
 0x29a   : > { %765 = vmatpush3.bf16.xpose.msra.mxu1 %v508_v32  ;;  %766 = vmatprep.mubr.msk.bf16.mxu1 %vm826_vm0, %v825_v0 }
 0x2a1   : > { %767 = vmatmul.mubr.msk.bf16.vlgmr.msra.gmra.mxu1 %vm169_vm1, %v501_v33 }
 0x349   : > { %v916_v34 = vpop.f32.mrf.mxu1 }
 0x34b   : > { %v738_v35 = vpop.f32.mrf.mxu1 }
 0x34d   : > { %v274_v36 = vpop.f32.mrf.mxu1 }
 0x34f   : > { %v739_v37 = vpop.f32.mrf.mxu1 }
 0x351   : > { %v324_v38 = vpop.f32.mrf.mxu1 }
 0x352   : > { %v325_v39 = vadd.f32 %v892_v6, %v324_v38 }
 0x353   : > { %v744_v40 = vpop.f32.mrf.mxu1 }
 0x354   : > { %v330_v41 = vsel %vm169_vm1, %v325_v39, -inf }
 0x355   : > { %331 = vmax.xlane.f32.xlu1 %v330_v41  ;;  %v327_v42 = vpop.f32.mrf.mxu1 }
 0x357   : > { %v745_v43 = vpop.f32.mrf.mxu1 }
 0x359   : > { %v434_v44 = vpop.f32.mrf.mxu1 }
 0x35a   : > { %v435_v45 = vadd.f32 %v892_v6, %v434_v44 }
 0x35b   : > { %v756_v46 = vpop.f32.mrf.mxu1 }
 0x35c   : > { %v440_v47 = vsel %vm169_vm1, %v435_v45, -inf }
 0x35d   : > { %441 = vmax.xlane.f32.xlu0 %v440_v47  ;;  %v437_v48 = vpop.f32.mrf.mxu1 }
 0x35f   : > { %v757_v49 = vpop.f32.mrf.mxu1 }
 0x361   : > { %v544_v50 = vpop.f32.mrf.mxu1 }
 0x362   : > { %v545_v51 = vadd.f32 %v892_v6, %v544_v50 }
 0x363   : > { %v768_v52 = vpop.f32.mrf.mxu1 }
 0x364   : > { %v550_v53 = vsel %vm169_vm1, %v545_v51, -inf }
 0x365   : > { %551 = vmax.xlane.f32.xlu1 %v550_v53  ;;  %v547_v54 = vpop.f32.mrf.mxu1 }
 0x367   : > { %v769_v55 = vpop.f32.mrf.mxu1 }
 0x3de   : > { %v332_v56 = vpop.xlane.xlu1 %331 }
 0x3df   : > { %v333_v57 = vsub.f32 %v325_v39, %v332_v56 }
 0x3e1   : > { %v334_v58 = vmul.f32 1.442695, %v333_v57 }
 0x3e3   : > { %805 = vpow2.f32 %v334_v58 }
 0x3e6   : > { %v442_v4 = vpop.xlane.xlu0 %441 }
 0x3e7   : > { %v443_v5 = vsub.f32 %v435_v45, %v442_v4 }
 0x3e9   : > { %v444_v6 = vmul.f32 1.442695, %v443_v5 }
 0x3ee   : > { %v552_v59 = vpop.xlane.xlu1 %551 }
 0x3ef   : > { %v553_v60 = vsub.f32 %v545_v51, %v552_v59 }
 0x3f0   : > { %v806_v61 = vpop.eup %805 }
 0x3f1   : > { %v554_v62 = vmul.f32 1.442695, %v553_v60  ;;  %v336_v63 = vsel %vm169_vm1, %v806_v61, 0.0 }
 0x3f2   : > { %337 = vadd.xlane.f32.xlu1 %v336_v63 }
 0x3f3   : > { %807 = vpow2.f32 %v554_v62 }
 0x3f4   : > { %809 = vpow2.f32 %v444_v6 }
 0x400   : > { %v808_v1 = vpop.eup %807 }
 0x401   : > { %v556_v3 = vsel %vm169_vm1, %v808_v1, 0.0  ;;  %v810_v7 = vpop.eup %809 }
 0x402   : > { %557 = vadd.xlane.f32.xlu0 %v556_v3  ;;  %v446_v8 = vsel %vm169_vm1, %v810_v7, 0.0 }
 0x403   : > { %342 = vrot.lane.b32.xlu1 %v878_v2, %s835_s26 }
 0x418   : > { %452 = vrot.lane.b32.xlu0 %v878_v2, %s836_s27 }
 0x427   : > { %447 = vadd.xlane.f32.xlu1 %v446_v8 }
 0x438   : > { %562 = vrot.lane.b32.xlu1 %v878_v2, %s837_s28 }
 0x47b   : > { %v338_v9 = vpop.xlane.xlu1 %337 }
 0x47c   : > { %811 = vrcp.f32 %v338_v9 }
 0x47f   : > { %v343_v10 = vpop.permute.xlu1 %342 }
 0x480   : > { %v348_v11 = vsel %vm233_vm2, %v343_v10, 0 }
 0x481   : > { %747 = vmatpush3.bf16.msra.mxu0 %v348_v11 }
 0x482   : > { %758 = vmatprep.subr.bf16.mxu0 %v825_v0 }
 0x489   : > { %v812_v12 = vpop.eup %811 }
 0x48a   : > { %v340_v13 = vmul.f32 %v812_v12, %v806_v61 }
 0x48b   : > { %v558_v14 = vpop.xlane.xlu0 %557 }
 0x48c   : > { %v341_v15 = vpack.c.bf16 %v340_v13, %v340_v13 }
 0x48e   : > { %749 = vmatmul.mubr.msk.bf16.vlgmr.msra.gmra.mxu0 %vm169_vm1, %v341_v15 }
 0x48f   : > { %v453_v16 = vpop.permute.xlu0 %452  ;;  %760 = vmatprep.mubr.msk.bf16.mxu0 %vm826_vm0, %v825_v0 }
 0x490   : > { %v458_v2 = vsel %vm233_vm2, %v453_v16, 0 }
 0x491   : > { %759 = vmatpush3.bf16.msra.mxu0 %v458_v2 }
 0x492   : > { %770 = vmatprep.subr.bf16.mxu0 %v825_v0 }
 0x4b0   : > { %v448_v17 = vpop.xlane.xlu1 %447 }
 0x4b1   : > { %813 = vrcp.f32 %v448_v17 }
 0x4b2   : > { %815 = vrcp.f32 %v558_v14 }
 0x4b4   : > { %v563_v19 = vpop.permute.xlu1 %562 }
 0x4b5   : > { %v568_v21 = vsel %vm233_vm2, %v563_v19, 0 }
 0x4be   : > { %v814_v18 = vpop.eup %813 }
 0x4bf   : > { %v450_v20 = vmul.f32 %v814_v18, %v810_v7  ;;  %v816_v23 = vpop.eup %815 }
 0x4c0   : > { %v560_v24 = vmul.f32 %v816_v23, %v808_v1 }
 0x4c1   : > { %v451_v22 = vpack.c.bf16 %v450_v20, %v450_v20 }
 0x4c2   : > { %v561_v25 = vpack.c.bf16 %v560_v24, %v560_v24 }
 0x4c3   : > { %761 = vmatmul.mubr.msk.bf16.vlgmr.msra.gmra.mxu0 %vm169_vm1, %v451_v22 }
 0x4c4   : > { %771 = vmatpush3.bf16.msra.mxu0 %v568_v21  ;;  %772 = vmatprep.mubr.msk.bf16.mxu0 %vm826_vm0, %v825_v0 }
 0x4cb   : > { %773 = vmatmul.mubr.msk.bf16.vlgmr.msra.gmra.mxu0 %vm169_vm1, %v561_v25 }
 0x54e   : > { %v384_v26 = vpop.f32.mrf.mxu0 }
 0x54f   : > { %611 = vrot.lane.b32.xlu1 %v384_v26, %s838_s29 }
 0x550   : > { %v750_v27 = vpop.f32.mrf.mxu0 }
 0x552   : > { %v387_v28 = vpop.f32.mrf.mxu0 }
 0x554   : > { %v751_v29 = vpop.f32.mrf.mxu0 }
 0x583   : > { %v494_v30 = vpop.f32.mrf.mxu0 }
 0x584   : > { %615 = vrot.lane.b32.xlu0 %v494_v30, %s839_s30 }
 0x585   : > { %v762_v31 = vpop.f32.mrf.mxu0 }
 0x587   : > { %v497_v32 = vpop.f32.mrf.mxu0 }
 0x589   : > { %v763_v33 = vpop.f32.mrf.mxu0 }
 0x58b   : > { %v604_v35 = vpop.f32.mrf.mxu0 }
 0x58c   : > { %619 = vrot.lane.b32.xlu1 %v604_v35, %s840_s3 }
 0x58d   : > { %v774_v0 = vpop.f32.mrf.mxu0 }
 0x58f   : > { %v607_v36 = vpop.f32.mrf.mxu0 }
 0x591   : > { %v775_v37 = vpop.f32.mrf.mxu0 }
 0x5c1   : > { %v612_v38 = vpop.permute.xlu1 %611 }
 0x5c2   : > { %v622_v40 = vsel %vm169_vm1, %v916_v34, %v612_v38 }
 0x5f6   : > { %v616_v39 = vpop.permute.xlu0 %615 }
 0x5f7   : > { %v624_v41 = vsel %vm623_vm3, %v622_v40, %v616_v39 }
 0x5fe   : > { %v620_v42 = vpop.permute.xlu1 %619 }
 0x5ff   : > { %v626_v43 = vsel %vm625_vm4, %v624_v41, %v620_v42 }
 0x600   : > { %v627_v44 = vpack.c.bf16 %v626_v43, %v626_v43 }
 0x602   : > { %629 = vst.msk [vmem:[%s152_s6] sm:$0xf] %vm628_vm5, %v627_v44 }
 0x603 PF: > { %s12_s9 = sadd.s32 1, %s823_s9  }
 0x604   : > { %p9_p4 = scmp.ge.s32.totalorder %s12_s9, 4  }
 0x606   :  { %11 = sbr.rel (!%p9_p4) target bundleno = 1 (0x1), region = 61 }

// kernel: _forward.16
= control target key start
LH: loop header
LB: loop body
LE: loop exit
PB: predicated region body
PF: predicated region fallthrough
CT: control target
= control target key end

     0   :  { %8 = vsyncpa [#allocation4], 0  ;;  %s294_s0 = inlined_call_operand.vmem [shape: bf16[16,32], index: 0, kind: input, shape index: {}]   ;;  %s295_s1 = inlined_call_operand.hbm [shape: bf16[32,64], index: 1, kind: input, shape index: {}]   ;;  %s296_s2 = inlined_call_operand.hbm [shape: f32[1,64], index: 2, kind: input, shape index: {}]   ;;  %s297_s3 = inlined_call_operand.vmem [shape: bf16[16,64], index: 3, kind: output, shape index: {}]  }
   0x1   :  { %9 = vsyncpa [#allocation6], 0  ;;  %s249_s12 = smov [#allocation3]  }
   0x2   :  { %s17_s13 = sshll.u32 %s249_s12, 4  ;;  %s18_s13 = int_to_ptr.vmem [resolvable:$true] %s17_s13 }
   0x3   :  { %s213_s14 = scalar_lea.vmem %s18_s13, 256  ;;  %p218_p1 = scmp.lt.s32.totalorder %s18_s13, %s18_s13 }
   0x4   :  { %p214_p0 = scmp.ne.s32.totalorder %s18_s13, %s213_s14  ;;  %p219_p2 = scmp.lt.s32.totalorder %s213_s14, %s213_s14 }
   0x6   :  { %p220_p3 = por %p219_p2, %p218_p1 }
   0x8   :  { %p221_p4 = pnand %p220_p3, %p214_p0 }
   0xa   :  { %224 = shalt.err (!%p221_p4)
}
   0xb   :  { %s250_s15 = smov 64   ;;  %s251_s16 = smov 4  }
   0xc   :  { %23 = dma.hbm_to_vmem [thread:$0]  %s295_s1, 256, %s18_s13, [#allocation4], %s250_s15, %s250_s15, %s251_s16  }
   0xd   :  { %s252_s19 = smov [#allocation5]  }
   0xe   :  { %s30_s20 = sshll.u32 %s252_s19, 4  ;;  %s31_s20 = int_to_ptr.vmem [resolvable:$true] %s30_s20 }
   0xf   :  { %s233_s21 = scalar_lea.vmem %s31_s20, 16  ;;  %s237_s22 = scalar_lea.vmem %s31_s20, 32 }
  0x10   :  { %p234_p5 = scmp.ne.s32.totalorder %s31_s20, %s233_s21  ;;  %p238_p6 = scmp.lt.s32.totalorder %s31_s20, %s31_s20 }
  0x11   :  { %p239_p7 = scmp.lt.s32.totalorder %s237_s22, %s233_s21 }
  0x13   :  { %p240_p8 = por %p239_p7, %p238_p6 }
  0x15   :  { %p241_p9 = pnand %p240_p8, %p234_p5 }
  0x17   :  { %244 = shalt.err (!%p241_p9)
}
  0x18   :  { %33 = dma.hbm_to_vmem [thread:$0]  %s296_s2, 16, %s31_s20, [#allocation6]  }
  0x19   :  { %245 = dma.done.wait [#allocation4], 256  }
  0x1a   :  { %246 = vsyncadd [#allocation4], 4294967040 }
  0x1b   :  { %247 = dma.done.wait [#allocation6], 16  }
  0x1c   :  { %248 = vsyncadd [#allocation6], 4294967280  ;;  %vm45_vm0 = vcmask 523264   ;;  %v253_v0 = vmov 0.0   ;;  %vm254_vm1 = vmmov 0   ;;  %v198_v1 = vld [vmem:[#allocation3 + $0x8] sm:$0xff]  }
  0x1d   :  { %46 = vst.msk [vmem:[#allocation2] sm:$0xff] %vm45_vm0, %v253_v0  ;;  %47 = vst.msk [vmem:[#allocation2 + $0x8] sm:$0xff] %vm45_vm0, %v253_v0  ;;  %184 = vmatprep.subr.bf16.mxu0 %v253_v0  ;;  %188 = vmatprep.mubr.msk.bf16.mxu0 %vm254_vm1, %v253_v0  ;;  %v199_v2 = vld [vmem:[#allocation3] sm:$0xff]   ;;  %v200_v3 = vld [vmem:[%s294_s0] sm:$0xff]   ;;  %vm73_vm2 = vcmask 261120   ;;  %vm163_vm3 = vcmask 519168  }
  0x1e   :  { %185 = vmatpush3.bf16.msra.mxu0 %v198_v1  ;;  %v176_v12 = vld [vmem:[#allocation5] ss:$0 sm:$0xff] }
  0x1f   :  { %186 = vmatprep.subr.bf16.mxu0 %v253_v0 }
  0x22   :  { %187 = vmatpush3.bf16.msra.mxu0 %v199_v2 }
  0x24   :  { %v48_v4 = vld [vmem:[#allocation2] sm:$0xff]  ;;  %v49_v8 = vld [vmem:[#allocation2 + $0x8] sm:$0xff] }
  0x25   :  { %189 = vmatmul.mubr.msk.bf16.vlgmr.msra.gmra.mxu0 %vm73_vm2, %v200_v3 }
  0xe5   :  { %v111_v5 = vpop.f32.mrf.mxu0 }
  0xe6   :  { %v118_v6 = vadd.f32 %v111_v5, %v48_v4 }
  0xe7   :  { %v190_v7 = vpop.f32.mrf.mxu0 }
  0xe8   :  { %121 = vst.msk [vmem:[#allocation2] sm:$0xff] %vm45_vm0, %v118_v6 }
  0xe9   :  { %v114_v9 = vpop.f32.mrf.mxu0 }
  0xea   :  { %v119_v10 = vadd.f32 %v114_v9, %v49_v8 }
  0xeb   :  { %v191_v11 = vpop.f32.mrf.mxu0 }
  0xec   :  { %122 = vst.msk [vmem:[#allocation2 + $0x8] sm:$0xff] %vm45_vm0, %v119_v10 }
  0xef   :  { %v126_v13 = vld [vmem:[#allocation2] sm:$0xff] }
  0xf0   :  { %v135_v14 = vadd.f32 %v176_v12, %v126_v13 }
  0xf2   :  { %v137_v15 = vmul.f32 %v135_v14, %v135_v14 }
  0xf3   :  { %v127_v16 = vld [vmem:[#allocation2 + $0x8] sm:$0xff] }
  0xf4   :  { %v139_v17 = vmul.f32 %v137_v15, %v135_v14  ;;  %v136_v18 = vadd.f32 %v176_v12, %v127_v16 }
  0xf6   :  { %v141_v19 = vmul.f32 0.044715, %v139_v17  ;;  %v138_v20 = vmul.f32 %v136_v18, %v136_v18 }
  0xf8   :  { %v143_v21 = vadd.f32 %v141_v19, %v135_v14  ;;  %v140_v22 = vmul.f32 %v138_v20, %v136_v18 }
  0xfa   :  { %v145_v23 = vmul.f32 0.7978846, %v143_v21  ;;  %v142_v24 = vmul.f32 0.044715, %v140_v22 }
  0xfc   :  { %201 = vtanh.f32 %v145_v23  ;;  %v144_v25 = vadd.f32 %v142_v24, %v136_v18 }
  0xfe   :  { %v146_v26 = vmul.f32 0.7978846, %v144_v25 }
 0x100   :  { %203 = vtanh.f32 %v146_v26 }
 0x109   :  { %v202_v27 = vpop.eup %201 }
 0x10a   :  { %v149_v28 = vadd.f32 1.0, %v202_v27 }
 0x10c   :  { %v151_v29 = vmul.f32 0.5, %v149_v28 }
 0x10d   :  { %v204_v30 = vpop.eup %203 }
 0x10e   :  { %v153_v31 = vmul.f32 %v151_v29, %v135_v14  ;;  %v150_v32 = vadd.f32 1.0, %v204_v30 }
 0x110   :  { %v179_v33 = vpack.c.bf16 %v153_v31, %v153_v31  ;;  %v152_v34 = vmul.f32 0.5, %v150_v32 }
 0x112   :  { %164 = vst.msk [vmem:[%s297_s3] sm:$0xf] %vm163_vm3, %v179_v33  ;;  %v154_v35 = vmul.f32 %v152_v34, %v136_v18 }
 0x114   :  { %v180_v36 = vpack.c.bf16 %v154_v35, %v154_v35 }
 0x116   :  { %165 = vst.msk [vmem:[%s297_s3 + $0x4] sm:$0xf] %vm163_vm3, %v180_v36 }
 0x117   :  { %170 = vsyncpa [#allocation4], 1 }
 0x118   :  { %171 = vsyncpa [#allocation6], 1 }

// kernel: _forward.17
= control target key start
LH: loop header
LB: loop body
LE: loop exit
PB: predicated region body
PF: predicated region fallthrough
CT: control target
= control target key end

     0   :  { %11 = vsyncpa [#allocation4], 0  ;;  %s432_s0 = inlined_call_operand.vmem [shape: bf16[16,64], index: 0, kind: input, shape index: {}]   ;;  %s433_s1 = inlined_call_operand.vmem [shape: bf16[64,32], index: 1, kind: input, shape index: {}]   ;;  %s434_s2 = inlined_call_operand.hbm [shape: f32[1,32], index: 2, kind: input, shape index: {}]   ;;  %s435_s3 = inlined_call_operand.vmem [shape: bf16[16,32], index: 3, kind: input, shape index: {}]   ;;  %s436_s4 = inlined_call_operand.hbm [shape: f32[1,32], index: 4, kind: input, shape index: {}]   ;;  %s437_s5 = inlined_call_operand.hbm [shape: f32[1,32], index: 5, kind: input, shape index: {}]   ;;  %s438_s6 = inlined_call_operand.vmem [shape: bf16[16,32], index: 6, kind: output, shape index: {}]  }
   0x1   :  { %12 = vsyncpa [#allocation6], 0  ;;  %s351_s21 = smov [#allocation5]   ;;  %s352_s23 = smov [#allocation3]  }
   0x2   :  { %s35_s22 = sshll.u32 %s351_s21, 4  ;;  %s23_s24 = sshll.u32 %s352_s23, 4  ;;  %s36_s22 = int_to_ptr.vmem [resolvable:$true] %s35_s22  ;;  %s24_s24 = int_to_ptr.vmem [resolvable:$true] %s23_s24 }
   0x3   :  { %s295_s25 = scalar_lea.vmem %s36_s22, 16  ;;  %s299_s26 = scalar_lea.vmem %s36_s22, 32 }
   0x4   :  { %p296_p0 = scmp.ne.s32.totalorder %s36_s22, %s295_s25  ;;  %p300_p1 = scmp.lt.s32.totalorder %s36_s22, %s36_s22 }
   0x5   :  { %p301_p2 = scmp.lt.s32.totalorder %s299_s26, %s295_s25 }
   0x7   :  { %p302_p3 = por %p301_p2, %p300_p1 }
   0x9   :  { %p303_p4 = pnand %p302_p3, %p296_p0 }
   0xb   :  { %306 = shalt.err (!%p303_p4)
}
   0xc   :  { %38 = dma.hbm_to_vmem [thread:$0]  %s436_s4, 16, %s36_s22, [#allocation6]  }
   0xd   :  { %s315_s29 = scalar_lea.vmem %s24_s24, 16  ;;  %s319_s30 = scalar_lea.vmem %s24_s24, 32 }
   0xe   :  { %p316_p5 = scmp.ne.s32.totalorder %s24_s24, %s315_s29  ;;  %p320_p6 = scmp.lt.s32.totalorder %s24_s24, %s24_s24 }
   0xf   :  { %p321_p7 = scmp.lt.s32.totalorder %s319_s30, %s315_s29 }
  0x11   :  { %p322_p8 = por %p321_p7, %p320_p6 }
  0x13   :  { %p323_p9 = pnand %p322_p8, %p316_p5 }
  0x15   :  { %326 = shalt.err (!%p323_p9)
}
  0x16   :  { %26 = dma.hbm_to_vmem [thread:$0]  %s434_s2, 16, %s24_s24, [#allocation4]  }
  0x17   :  { %s353_s9 = smov [#allocation7]  }
  0x18   :  { %s45_s10 = sshll.u32 %s353_s9, 4  ;;  %s46_s10 = int_to_ptr.vmem [resolvable:$true] %s45_s10 }
  0x19   :  { %s335_s11 = scalar_lea.vmem %s46_s10, 16  ;;  %s339_s12 = scalar_lea.vmem %s46_s10, 32 }
  0x1a   :  { %p336_p10 = scmp.ne.s32.totalorder %s46_s10, %s335_s11  ;;  %p340_p11 = scmp.lt.s32.totalorder %s46_s10, %s46_s10 }
  0x1b   :  { %p341_p12 = scmp.lt.s32.totalorder %s339_s12, %s335_s11 }
  0x1d   :  { %p342_p13 = por %p341_p12, %p340_p11 }
  0x1f   :  { %p343_p0 = pnand %p342_p13, %p336_p10 }
  0x21   :  { %346 = shalt.err (!%p343_p0)
}
  0x22   :  { %48 = dma.hbm_to_vmem [thread:$0]  %s437_s5, 16, %s46_s10, [#allocation6]  }
  0x23   :  { %347 = dma.done.wait [#allocation4], 16  }
  0x24   :  { %348 = vsyncadd [#allocation4], 4294967280 }
  0x25   :  { %349 = dma.done.wait [#allocation6], 32  }
  0x26   :  { %350 = vsyncadd [#allocation6], 4294967264  ;;  %vm63_vm0 = vcmask 261120   ;;  %v354_v0 = vmov 0.0   ;;  %vm355_vm1 = vmmov 0   ;;  %v278_v1 = vld [vmem:[%s433_s1 + $0x18] sm:$0xff]  }
  0x27   :  { %261 = vmatprep.subr.bf16.mxu0 %v354_v0  ;;  %269 = vmatprep.mubr.msk.bf16.mxu0 %vm355_vm1, %v354_v0  ;;  %64 = vst.msk [vmem:[#allocation2] sm:$0xff] %vm63_vm0, %v354_v0  ;;  %65 = vst.msk [vmem:[#allocation2 + $0x8] sm:$0xff] %vm63_vm0, %v354_v0  ;;  %v279_v2 = vld [vmem:[%s433_s1 + $0x10] sm:$0xff]   ;;  %v280_v3 = vld [vmem:[%s433_s1 + $0x8] sm:$0xff]   ;;  %vm107_vm2 = vcmask 523264   ;;  %vm230_vm3 = vcmask 257024  }
  0x28   :  { %262 = vmatpush3.bf16.msra.mxu0 %v278_v1  ;;  %v281_v4 = vld [vmem:[%s433_s1] sm:$0xff]   ;;  %v245_v15 = vld [vmem:[#allocation3] ss:$0 sm:$0xff]  ;;  %v246_v43 = vld [vmem:[#allocation5] ss:$0 sm:$0xff] }
  0x29   :  { %263 = vmatprep.subr.bf16.mxu0 %v354_v0  ;;  %v282_v5 = vld [vmem:[%s432_s0] sm:$0xff]   ;;  %v247_v45 = vld [vmem:[#allocation7] ss:$0 sm:$0xff] }
  0x2a   :  { %v253_v14 = vld [vmem:[%s435_s3] sm:$0xff]  }
  0x2b   :  { %v254_v16 = vunpack.c.l.bf16 %v253_v14  ;;  %v255_v20 = vunpack.c.h.bf16 %v253_v14 }
  0x2c   :  { %264 = vmatpush3.bf16.msra.mxu0 %v279_v2 }
  0x2d   :  { %265 = vmatprep.subr.bf16.mxu0 %v354_v0 }
  0x2e   :  { %v66_v6 = vld [vmem:[#allocation2] sm:$0xff]  ;;  %v67_v10 = vld [vmem:[#allocation2 + $0x8] sm:$0xff] }
  0x30   :  { %266 = vmatpush3.bf16.msra.mxu0 %v280_v3 }
  0x31   :  { %267 = vmatprep.subr.bf16.mxu0 %v354_v0 }
  0x34   :  { %268 = vmatpush3.bf16.msra.mxu0 %v281_v4 }
  0x37   :  { %270 = vmatmul.mubr.msk.bf16.vlgmr.msra.gmra.mxu0 %vm107_vm2, %v282_v5 }
  0xf7   :  { %v145_v7 = vpop.f32.mrf.mxu0 }
  0xf8   :  { %v152_v8 = vadd.f32 %v145_v7, %v66_v6 }
  0xf9   :  { %v271_v9 = vpop.f32.mrf.mxu0 }
  0xfa   :  { %155 = vst.msk [vmem:[#allocation2] sm:$0xff] %vm63_vm0, %v152_v8 }
  0xfb   :  { %v148_v11 = vpop.f32.mrf.mxu0 }
  0xfc   :  { %v153_v12 = vadd.f32 %v148_v11, %v67_v10 }
  0xfd   :  { %v272_v13 = vpop.f32.mrf.mxu0 }
  0xfe   :  { %156 = vst.msk [vmem:[#allocation2 + $0x8] sm:$0xff] %vm63_vm0, %v153_v12 }
 0x101   :  { %v160_v17 = vld [vmem:[#allocation2] sm:$0xff] }
 0x102   :  { %v169_v18 = vadd.f32 %v245_v15, %v160_v17 }
 0x104   :  { %v175_v19 = vadd.f32 %v254_v16, %v169_v18 }
 0x105   :  { %v161_v21 = vld [vmem:[#allocation2 + $0x8] sm:$0xff] }
 0x106   :  { %v177_v22 = vsel %vm63_vm0, %v175_v19, 0.0  ;;  %v170_v23 = vadd.f32 %v245_v15, %v161_v21 }
 0x107   :  { %178 = vadd.xlane.f32.xlu0 %v177_v22 }
 0x108   :  { %v176_v24 = vadd.f32 %v255_v20, %v170_v23 }
 0x10a   :  { %v180_v25 = vsel %vm63_vm0, %v176_v24, 0.0 }
 0x10b   :  { %181 = vadd.xlane.f32.xlu0 %v180_v25 }
 0x190   :  { %v179_v26 = vpop.xlane.xlu0 %178 }
 0x191   :  { %v184_v27 = vmul.f32 0.03125, %v179_v26 }
 0x193   :  { %v186_v28 = vsub.f32 %v175_v19, %v184_v27 }
 0x194   :  { %v182_v29 = vpop.xlane.xlu0 %181 }
 0x195   :  { %v185_v30 = vmul.f32 0.03125, %v182_v29  ;;  %v188_v31 = vmul.f32 %v186_v28, %v186_v28 }
 0x197   :  { %v187_v32 = vsub.f32 %v176_v24, %v185_v30  ;;  %v190_v33 = vsel %vm63_vm0, %v188_v31, 0.0 }
 0x198   :  { %191 = vadd.xlane.f32.xlu1 %v190_v33 }
 0x199   :  { %v189_v34 = vmul.f32 %v187_v32, %v187_v32 }
 0x19b   :  { %v193_v35 = vsel %vm63_vm0, %v189_v34, 0.0 }
 0x19c   :  { %194 = vadd.xlane.f32.xlu1 %v193_v35 }
 0x221   :  { %v192_v36 = vpop.xlane.xlu1 %191 }
 0x222   :  { %v196_v37 = vmul.f32 0.03125, %v192_v36 }
 0x224   :  { %v198_v38 = vadd.f32 1e-12, %v196_v37 }
 0x225   :  { %v195_v39 = vpop.xlane.xlu1 %194 }
 0x226   :  { %283 = vrsqrt.f32 %v198_v38  ;;  %v197_v40 = vmul.f32 0.03125, %v195_v39 }
 0x228   :  { %v199_v41 = vadd.f32 1e-12, %v197_v40 }
 0x22a   :  { %285 = vrsqrt.f32 %v199_v41 }
 0x233   :  { %v284_v42 = vpop.eup %283 }
 0x234   :  { %v202_v44 = vmul.f32 %v284_v42, %v186_v28 }
 0x236   :  { %v211_v46 = vmul.f32 %v246_v43, %v202_v44 }
 0x237   :  { %v286_v47 = vpop.eup %285 }
 0x238   :  { %v220_v48 = vadd.f32 %v247_v45, %v211_v46  ;;  %v203_v49 = vmul.f32 %v286_v47, %v187_v32 }
 0x23a   :  { %v250_v50 = vpack.c.bf16 %v220_v48, %v220_v48  ;;  %v212_v51 = vmul.f32 %v246_v43, %v203_v49 }
 0x23c   :  { %231 = vst.msk [vmem:[%s438_s6] sm:$0xf] %vm230_vm3, %v250_v50  ;;  %v221_v52 = vadd.f32 %v247_v45, %v212_v51 }
 0x23e   :  { %v251_v53 = vpack.c.bf16 %v221_v52, %v221_v52 }
 0x240   :  { %232 = vst.msk [vmem:[%s438_s6 + $0x4] sm:$0xf] %vm230_vm3, %v251_v53 }
 0x241   :  { %237 = vsyncpa [#allocation4], 1 }
 0x242   :  { %238 = vsyncpa [#allocation6], 1 }

// kernel: _forward.23
= control target key start
LH: loop header
LB: loop body
LE: loop exit
PB: predicated region body
PF: predicated region fallthrough
CT: control target
= control target key end

     0   :  { %12 = vsyncpa [#allocation3], 0  ;;  %s5264_s0 = inlined_call_operand.vmem [shape: bf16[2,32], index: 0, kind: input, shape index: {}]   ;;  %s5265_s1 = inlined_call_operand.vmem [shape: bf16[2,800], index: 1, kind: input, shape index: {}]   ;;  %s5266_s2 = inlined_call_operand.hbm [shape: bf16[800,800], index: 2, kind: input, shape index: {}]   ;;  %s5267_s3 = inlined_call_operand.vmem [shape: f32[1,800], index: 3, kind: input, shape index: {}]   ;;  %s5268_s4 = inlined_call_operand.hbm [shape: bf16[32,32], index: 4, kind: input, shape index: {}]   ;;  %s5269_s5 = inlined_call_operand.vmem [shape: bf16[800,32], index: 5, kind: input, shape index: {}]   ;;  %s5270_s6 = inlined_call_operand.hbm [shape: f32[1,32], index: 6, kind: input, shape index: {}]   ;;  %s5271_s7 = inlined_call_operand.hbm [shape: f32[2,32], index: 7, kind: output, shape index: {}]  }
   0x1   :  { %13 = vsyncpa [#allocation6], 0 }
   0x2   :  { %14 = vsyncpa [#allocation4], 0  ;;  %s4919_s24 = smov [#allocation5]  }
   0x3   :  { %s38_s25 = sshll.u32 %s4919_s24, 4  ;;  %s39_s25 = int_to_ptr.vmem [resolvable:$true] %s38_s25 }
   0x4   :  { %s4841_s26 = scalar_lea.vmem %s39_s25, 256  ;;  %p4846_p1 = scmp.lt.s32.totalorder %s39_s25, %s39_s25 }
   0x5   :  { %p4842_p0 = scmp.ne.s32.totalorder %s39_s25, %s4841_s26  ;;  %p4847_p2 = scmp.lt.s32.totalorder %s4841_s26, %s4841_s26 }
   0x7   :  { %p4848_p3 = por %p4847_p2, %p4846_p1 }
   0x9   :  { %p4849_p4 = pnand %p4848_p3, %p4842_p0 }
   0xb   :  { %4852 = shalt.err (!%p4849_p4)
}
   0xc   :  { %s4920_s27 = smov 64   ;;  %s4921_s28 = smov 4  }
   0xd   :  { %44 = dma.hbm_to_vmem [thread:$0]  %s5268_s4, 256, %s39_s25, [#allocation6], %s4920_s27, %s4920_s27, %s4921_s28  }
   0xe   :  { %s4922_s8 = smov [#allocation2]  }
   0xf   :  { %s24_s9 = sshll.u32 %s4922_s8, 4  ;;  %s25_s9 = int_to_ptr.vmem [resolvable:$true] %s24_s9 }
  0x10   :  { %s4861_s10 = scalar_lea.vmem %s25_s9, 44800  ;;  %p4866_p6 = scmp.lt.s32.totalorder %s25_s9, %s25_s9 }
  0x11   :  { %p4862_p5 = scmp.ne.s32.totalorder %s25_s9, %s4861_s10  ;;  %p4867_p7 = scmp.lt.s32.totalorder %s4861_s10, %s4861_s10 }
  0x13   :  { %p4868_p8 = por %p4867_p7, %p4866_p6 }
  0x15   :  { %p4869_p9 = pnand %p4868_p8, %p4862_p5 }
  0x17   :  { %4872 = shalt.err (!%p4869_p9)
}
  0x18   :  { %s4923_s11 = smov 448   ;;  %s4924_s12 = smov 28  }
  0x19   :  { %30 = dma.hbm_to_vmem [thread:$0]  %s5266_s2, 44800, %s25_s9, [#allocation3], %s4923_s11, %s4923_s11, %s4924_s12  }
  0x1a   :  { %s4925_s15 = smov [#allocation7]  }
  0x1b   :  { %s53_s16 = sshll.u32 %s4925_s15, 4  ;;  %s54_s16 = int_to_ptr.vmem [resolvable:$true] %s53_s16 }
  0x1c   :  { %s4881_s4 = scalar_lea.vmem %s54_s16, 16  ;;  %s4885_s17 = scalar_lea.vmem %s54_s16, 32 }
  0x1d   :  { %p4882_p10 = scmp.ne.s32.totalorder %s54_s16, %s4881_s4  ;;  %p4886_p11 = scmp.lt.s32.totalorder %s54_s16, %s54_s16 }
  0x1e   :  { %p4887_p12 = scmp.lt.s32.totalorder %s4885_s17, %s4881_s4 }
  0x20   :  { %p4888_p13 = por %p4887_p12, %p4886_p11 }
  0x22   :  { %p4889_p0 = pnand %p4888_p13, %p4882_p10 }
  0x24   :  { %4892 = shalt.err (!%p4889_p0)
}
  0x25   :  { %56 = dma.hbm_to_vmem [thread:$0]  %s5270_s6, 16, %s54_s16, [#allocation6]  }
  0x26   :  { %4913 = dma.done.wait [#allocation3], 44800  }
  0x27   :  { %4914 = vsyncadd [#allocation3], 4294922496 }
  0x28   :  { %4915 = dma.done.wait [#allocation6], 272  }
  0x29   :  { %4916 = vsyncadd [#allocation6], 4294967024  ;;  %v4265_v0 = vld [vmem:[#allocation2 + $0x18c] ss:$28 sps:$4 sm:$0xff]   ;;  %v4271_v4 = vld [vmem:[#allocation2 + $0x154] ss:$28 sps:$4 sm:$0xff]   ;;  %v470_v36 = vlaneseq }
  0x2a   :  { %v4267_v1 = vld [vmem:[#allocation2 + $0x50c] ss:$28 sps:$4 sm:$0xff]   ;;  %2364 = vmatprep.subr.bf16.mxu0 %v4265_v0  ;;  %v4273_v5 = vld [vmem:[#allocation2 + $0x4d4] ss:$28 sps:$4 sm:$0xff]   ;;  %v4277_v8 = vld [vmem:[#allocation2 + $0x11c] ss:$28 sps:$4 sm:$0xff]  }
  0x2b   :  { %v4269_v2 = vld [vmem:[#allocation2 + $0x188] ss:$28 sps:$4 sm:$0xff]   ;;  %2405 = vmatprep.subr.bf16.mxu1 %v4267_v1  ;;  %v4275_v6 = vld [vmem:[#allocation2 + $0x150] ss:$28 sps:$4 sm:$0xff]   ;;  %v4279_v9 = vld [vmem:[#allocation2 + $0x49c] ss:$28 sps:$4 sm:$0xff]  }
  0x2c   :  { %v4270_v3 = vld [vmem:[#allocation2 + $0x508] ss:$28 sps:$4 sm:$0xff]   ;;  %2365 = vmatpush1.bf16.msra.mxu0 %v4269_v2  ;;  %v4276_v7 = vld [vmem:[#allocation2 + $0x4d0] ss:$28 sps:$4 sm:$0xff]   ;;  %v4281_v10 = vld [vmem:[#allocation2 + $0x118] ss:$28 sps:$4 sm:$0xff]  }
  0x2d   :  { %2406 = vmatpush1.bf16.msra.mxu1 %v4270_v3  ;;  %2366 = vmatprep.subr.bf16.mxu0 %v4271_v4  ;;  %v4282_v11 = vld [vmem:[#allocation2 + $0x498] ss:$28 sps:$4 sm:$0xff]   ;;  %v4283_v12 = vld [vmem:[#allocation2 + $0xe4] ss:$28 sps:$4 sm:$0xff]   ;;  %v4289_v16 = vld [vmem:[#allocation2 + $0xac] ss:$28 sps:$4 sm:$0xff]  }
  0x2e   :  { %2407 = vmatprep.subr.bf16.mxu1 %v4273_v5  ;;  %v4285_v13 = vld [vmem:[#allocation2 + $0x464] ss:$28 sps:$4 sm:$0xff]   ;;  %v4291_v17 = vld [vmem:[#allocation2 + $0x42c] ss:$28 sps:$4 sm:$0xff]   ;;  %v4295_v20 = vld [vmem:[#allocation2 + $0x74] ss:$28 sps:$4 sm:$0xff]  }
  0x2f   :  { %v4287_v14 = vld [vmem:[#allocation2 + $0xe0] ss:$28 sps:$4 sm:$0xff]   ;;  %v4293_v18 = vld [vmem:[#allocation2 + $0xa8] ss:$28 sps:$4 sm:$0xff]   ;;  %v4297_v21 = vld [vmem:[#allocation2 + $0x3f4] ss:$28 sps:$4 sm:$0xff]  }
  0x30   :  { %2367 = vmatpush1.bf16.msra.mxu0 %v4275_v6  ;;  %v4288_v15 = vld [vmem:[#allocation2 + $0x460] ss:$28 sps:$4 sm:$0xff]   ;;  %v4294_v19 = vld [vmem:[#allocation2 + $0x428] ss:$28 sps:$4 sm:$0xff]   ;;  %v4299_v22 = vld [vmem:[#allocation2 + $0x70] ss:$28 sps:$4 sm:$0xff]  }
  0x31   :  { %2408 = vmatpush1.bf16.msra.mxu1 %v4276_v7  ;;  %2368 = vmatprep.subr.bf16.mxu0 %v4277_v8  ;;  %v4300_v23 = vld [vmem:[#allocation2 + $0x3f0] ss:$28 sps:$4 sm:$0xff]   ;;  %v4301_v24 = vld [vmem:[#allocation2 + $0x3c] ss:$28 sps:$4 sm:$0xff]   ;;  %v4307_v28 = vld [vmem:[#allocation2 + $0x4] ss:$28 sps:$4 sm:$0xff]  }
  0x32   :  { %2409 = vmatprep.subr.bf16.mxu1 %v4279_v9  ;;  %v4303_v25 = vld [vmem:[#allocation2 + $0x3bc] ss:$28 sps:$4 sm:$0xff]   ;;  %v4309_v29 = vld [vmem:[#allocation2 + $0x384] ss:$28 sps:$4 sm:$0xff]   ;;  %v4313_v32 = vld [vmem:[#allocation2 + $0x34c] ss:$28 sps:$4 sm:$0xff]  }
  0x33   :  { %v4305_v26 = vld [vmem:[#allocation2 + $0x38] ss:$28 sps:$4 sm:$0xff]   ;;  %v4311_v30 = vld [vmem:[#allocation2] ss:$28 sps:$4 sm:$0xff]   ;;  %v4315_v33 = vld [vmem:[#allocation2 + $0x6cc] ss:$28 sps:$4 sm:$0xff]  }
  0x34   :  { %2369 = vmatpush1.bf16.msra.mxu0 %v4281_v10  ;;  %v4306_v27 = vld [vmem:[#allocation2 + $0x3b8] ss:$28 sps:$4 sm:$0xff]   ;;  %v4312_v31 = vld [vmem:[#allocation2 + $0x380] ss:$28 sps:$4 sm:$0xff]   ;;  %v4317_v34 = vld [vmem:[#allocation2 + $0x348] ss:$28 sps:$4 sm:$0xff]  }
  0x35   :  { %2410 = vmatpush1.bf16.msra.mxu1 %v4282_v11  ;;  %2370 = vmatprep.subr.bf16.mxu0 %v4283_v12  ;;  %v4318_v35 = vld [vmem:[#allocation2 + $0x6c8] ss:$28 sps:$4 sm:$0xff]   ;;  %v4926_v37 = vmov 1966171168   ;;  %v4319_v39 = vld [vmem:[#allocation2 + $0x314] ss:$28 sps:$4 sm:$0xff]  }
  0x36   :  { %2411 = vmatprep.subr.bf16.mxu1 %v4285_v13  ;;  %v508_v38 = vunpack.c.l.s4 %v4926_v37  ;;  %v4321_v40 = vld [vmem:[#allocation2 + $0x694] ss:$28 sps:$4 sm:$0xff]   ;;  %v4980_v42 = vshrl.u32 %v470_v36, 7  ;;  %v4325_v45 = vld [vmem:[#allocation2 + $0x2dc] ss:$28 sps:$4 sm:$0xff]   ;;  %vm2360_vm0 = vcmask 261120  }
  0x37   :  { %v4323_v41 = vld [vmem:[#allocation2 + $0x310] ss:$28 sps:$4 sm:$0xff]   ;;  %v4327_v46 = vld [vmem:[#allocation2 + $0x65c] ss:$28 sps:$4 sm:$0xff]   ;;  %v4331_v50 = vld [vmem:[#allocation2 + $0x2a4] ss:$28 sps:$4 sm:$0xff]  }
  0x38   :  { %2371 = vmatpush1.bf16.msra.mxu0 %v4287_v14  ;;  %v509_v43 = vunpack.c.0.s8 %v508_v38  ;;  %v4324_v44 = vld [vmem:[#allocation2 + $0x690] ss:$28 sps:$4 sm:$0xff]   ;;  %v4329_v47 = vld [vmem:[#allocation2 + $0x2d8] ss:$28 sps:$4 sm:$0xff]   ;;  %v4333_v51 = vld [vmem:[#allocation2 + $0x624] ss:$28 sps:$4 sm:$0xff]  }
  0x39   :  { %2412 = vmatpush1.bf16.msra.mxu1 %v4288_v15  ;;  %2372 = vmatprep.subr.bf16.mxu0 %v4289_v16  ;;  %v4330_v48 = vld [vmem:[#allocation2 + $0x658] ss:$28 sps:$4 sm:$0xff]   ;;  %v67_v52 = vld [vmem:[%s5265_s1] sm:$0x7f]  ;;  %v4337_v56 = vld [vmem:[#allocation2 + $0x26c] ss:$28 sps:$4 sm:$0xff]  }
  0x3a   :  { %2413 = vmatprep.subr.bf16.mxu1 %v4291_v17  ;;  %v4983_v49 = vsub.s32 %v509_v43, %v4980_v42  ;;  %v4335_v53 = vld [vmem:[#allocation2 + $0x2a0] ss:$28 sps:$4 sm:$0xff]   ;;  %v4339_v57 = vld [vmem:[#allocation2 + $0x5ec] ss:$28 sps:$4 sm:$0xff]   ;;  %v4343_v62 = vld [vmem:[#allocation2 + $0x234] ss:$28 sps:$4 sm:$0xff]   ;;  %v506_v7 = vcombine.high %v67_v52, %v67_v52 }
  0x3b   :  { %v4336_v55 = vld [vmem:[#allocation2 + $0x620] ss:$28 sps:$4 sm:$0xff]   ;;  %v4341_v59 = vld [vmem:[#allocation2 + $0x268] ss:$28 sps:$4 sm:$0xff]   ;;  %v4345_v63 = vld [vmem:[#allocation2 + $0x5b4] ss:$28 sps:$4 sm:$0xff]  }
  0x3c   :  { %2373 = vmatpush1.bf16.msra.mxu0 %v4293_v18  ;;  %v513_v54 = vrot.slane %v67_v52, %v4983_v49  ;;  %v4342_v61 = vld [vmem:[#allocation2 + $0x5e8] ss:$28 sps:$4 sm:$0xff]   ;;  %v4347_v1 = vld [vmem:[#allocation2 + $0x230] ss:$28 sps:$4 sm:$0xff]   ;;  %v4349_v3 = vld [vmem:[#allocation2 + $0x1fc] ss:$28 sps:$4 sm:$0xff]   ;;  %v520_v13 = vrot.slane %v506_v7, %v4983_v49 }
  0x3d   :  { %2414 = vmatpush1.bf16.msra.mxu1 %v4294_v19  ;;  %2374 = vmatprep.subr.bf16.mxu0 %v4295_v20  ;;  %v4348_v2 = vld [vmem:[#allocation2 + $0x5b0] ss:$28 sps:$4 sm:$0xff]   ;;  %v4351_v4 = vld [vmem:[#allocation2 + $0x57c] ss:$28 sps:$4 sm:$0xff]   ;;  %v4355_v8 = vld [vmem:[#allocation2 + $0x1c4] ss:$28 sps:$4 sm:$0xff]  }
  0x3e   :  { %2415 = vmatprep.subr.bf16.mxu1 %v4297_v21  ;;  %v521_v58 = vcombine.high %v513_v54, %v513_v54  ;;  %v4353_v5 = vld [vmem:[#allocation2 + $0x1f8] ss:$28 sps:$4 sm:$0xff]   ;;  %v4357_v9 = vld [vmem:[#allocation2 + $0x544] ss:$28 sps:$4 sm:$0xff]   ;;  %v4999_v11 = vrot.slane %v513_v54, %v4983_v49  ;;  %v4364_v14 = vld [vmem:[#allocation2 + $0x88c] ss:$28 sps:$4 sm:$0xff]   ;;  %v522_v16 = vcombine.high %v520_v13, %v520_v13 }
  0x3f   :  { %v4354_v6 = vld [vmem:[#allocation2 + $0x578] ss:$28 sps:$4 sm:$0xff]   ;;  %v4359_v10 = vld [vmem:[#allocation2 + $0x1c0] ss:$28 sps:$4 sm:$0xff]   ;;  %v4362_v17 = vld [vmem:[#allocation2 + $0x888] ss:$28 sps:$4 sm:$0xff]  }
  0x40   :  { %2375 = vmatpush1.bf16.msra.mxu0 %v4299_v22  ;;  %v4990_v60 = vrot.slane %v521_v58, %v4983_v49  ;;  %v4360_v12 = vld [vmem:[#allocation2 + $0x540] ss:$28 sps:$4 sm:$0xff]   ;;  %v5004_v18 = vcombine.high %v4999_v11, %v4999_v11  ;;  %v4365_v19 = vld [vmem:[#allocation2 + $0xab8] ss:$28 sps:$4 sm:$0xff]   ;;  %v5007_v22 = vrot.slane %v522_v16, %v4983_v49  ;;  %v4388_v36 = vld [vmem:[#allocation2 + $0x7ac] ss:$28 sps:$4 sm:$0xff]  }
  0x41   :  { %2416 = vmatpush1.bf16.msra.mxu1 %v4300_v23  ;;  %2376 = vmatprep.subr.bf16.mxu0 %v4301_v24  ;;  %v4367_v15 = vld [vmem:[#allocation2 + $0xabc] ss:$28 sps:$4 sm:$0xff]   ;;  %v4370_v20 = vld [vmem:[#allocation2 + $0x854] ss:$28 sps:$4 sm:$0xff]   ;;  %v4373_v21 = vld [vmem:[#allocation2 + $0xa84] ss:$28 sps:$4 sm:$0xff]   ;;  %v5010_v23 = vrot.slane %v520_v13, %v4983_v49 }
  0x42   :  { %2417 = vmatprep.subr.bf16.mxu1 %v4303_v25  ;;  %v4994_v0 = vcombine.high %v4990_v60, %v4990_v60  ;;  %2396 = vmatprep.mubr.bf16.mxu0 %v4990_v60  ;;  %v4368_v24 = vld [vmem:[#allocation2 + $0x850] ss:$28 sps:$4 sm:$0xff]   ;;  %v4371_v25 = vld [vmem:[#allocation2 + $0xa80] ss:$28 sps:$4 sm:$0xff]   ;;  %v4386_v38 = vld [vmem:[#allocation2 + $0x7a8] ss:$28 sps:$4 sm:$0xff]  }
  0x43   :  { %v4391_v37 = vld [vmem:[#allocation2 + $0x124] ss:$28 sps:$4 sm:$0xff]   ;;  %v4392_v43 = vld [vmem:[#allocation2 + $0x770] ss:$28 sps:$4 sm:$0xff]   ;;  %v4407_v52 = vld [vmem:[#allocation2 + $0x78] ss:$28 sps:$4 sm:$0xff]  }
  0x44   :  { %2377 = vmatpush1.bf16.msra.mxu0 %v4305_v26  ;;  %2437 = vmatprep.mubr.bf16.mxu1 %v4994_v0  ;;  %v4376_v26 = vld [vmem:[#allocation2 + $0x81c] ss:$28 sps:$4 sm:$0xff]   ;;  %v4406_v49 = vld [vmem:[#allocation2 + $0x704] ss:$28 sps:$4 sm:$0xff]   ;;  %v4421_v58 = vld [vmem:[#allocation2 + $0xc] ss:$28 sps:$4 sm:$0xff]  }
  0x45   :  { %2418 = vmatpush1.bf16.msra.mxu1 %v4306_v27  ;;  %2378 = vmatprep.subr.bf16.mxu0 %v4307_v28  ;;  %v4379_v27 = vld [vmem:[#allocation2 + $0x194] ss:$28 sps:$4 sm:$0xff]   ;;  %v4927_v28 = vmov 0   ;;  %v4415_v54 = vld [vmem:[#allocation2 + $0x44] ss:$28 sps:$4 sm:$0xff]   ;;  %vm4929_vm1 = vmmov 0  }
  0x46   :  { %2419 = vmatprep.subr.bf16.mxu1 %v4309_v29  ;;  %v4374_v29 = vld [vmem:[#allocation2 + $0x818] ss:$28 sps:$4 sm:$0xff]   ;;  %v4436_v7 = vld [vmem:[#allocation2 + $0x96c] ss:$28 sps:$4 sm:$0xff]   ;;  %vm3661_vm2 = vcmask 254976  }
  0x47   :  { %v4445_v13 = vld [vmem:[#allocation2 + $0x2ac] ss:$28 sps:$4 sm:$0xff]   ;;  %v4448_v16 = vld [vmem:[#allocation2 + $0x8fc] ss:$28 sps:$4 sm:$0xff]  }
  0x48   :  { %2379 = vmatpush1.bf16.msra.mxu0 %v4311_v30  ;;  %v5018_v30 = vcombine.high %v5010_v23, %v5010_v23 }
  0x49   :  { %2420 = vmatpush1.bf16.msra.mxu1 %v4312_v31  ;;  %2380 = vmatprep.subr.bf16.mxu0 %v4313_v32  ;;  %v4377_v31 = vld [vmem:[#allocation2 + $0x190] ss:$28 sps:$4 sm:$0xff]   ;;  %v4382_v32 = vld [vmem:[#allocation2 + $0x7e4] ss:$28 sps:$4 sm:$0xff]  }
  0x4a   :  { %2421 = vmatprep.subr.bf16.mxu1 %v4315_v33  ;;  %v4385_v33 = vld [vmem:[#allocation2 + $0x15c] ss:$28 sps:$4 sm:$0xff]  }
  0x4c   :  { %2381 = vmatpush2.bf16.msra.mxu0 %v4317_v34  ;;  %v4380_v34 = vld [vmem:[#allocation2 + $0x7e0] ss:$28 sps:$4 sm:$0xff]  }
  0x4d   :  { %2422 = vmatpush2.bf16.msra.mxu1 %v4318_v35  ;;  %2382 = vmatprep.subr.bf16.mxu0 %v4319_v39  ;;  %v4383_v35 = vld [vmem:[#allocation2 + $0x158] ss:$28 sps:$4 sm:$0xff]   ;;  %v4389_v39 = vld [vmem:[#allocation2 + $0x120] ss:$28 sps:$4 sm:$0xff]  }
  0x4e   :  { %2423 = vmatprep.subr.bf16.mxu1 %v4321_v40  ;;  %v4394_v40 = vld [vmem:[#allocation2 + $0x774] ss:$28 sps:$4 sm:$0xff]  }
  0x50   :  { %2383 = vmatpush2.bf16.msra.mxu0 %v4323_v41  ;;  %v4397_v41 = vld [vmem:[#allocation2 + $0xec] ss:$28 sps:$4 sm:$0xff]  }
  0x51   :  { %2424 = vmatpush2.bf16.msra.mxu1 %v4324_v44  ;;  %2384 = vmatprep.subr.bf16.mxu0 %v4325_v45  ;;  %v4395_v44 = vld [vmem:[#allocation2 + $0xe8] ss:$28 sps:$4 sm:$0xff]   ;;  %v4400_v45 = vld [vmem:[#allocation2 + $0x73c] ss:$28 sps:$4 sm:$0xff]  }
  0x52   :  { %2425 = vmatprep.subr.bf16.mxu1 %v4327_v46  ;;  %v4403_v46 = vld [vmem:[#allocation2 + $0xb4] ss:$28 sps:$4 sm:$0xff]  }
  0x54   :  { %2385 = vmatpush2.bf16.msra.mxu0 %v4329_v47  ;;  %v4398_v47 = vld [vmem:[#allocation2 + $0x738] ss:$28 sps:$4 sm:$0xff]  }
  0x55   :  { %2426 = vmatpush2.bf16.msra.mxu1 %v4330_v48  ;;  %2386 = vmatprep.subr.bf16.mxu0 %v4331_v50  ;;  %v4401_v48 = vld [vmem:[#allocation2 + $0xb0] ss:$28 sps:$4 sm:$0xff]   ;;  %v4409_v50 = vld [vmem:[#allocation2 + $0x7c] ss:$28 sps:$4 sm:$0xff]  }
  0x56   :  { %2427 = vmatprep.subr.bf16.mxu1 %v4333_v51  ;;  %v4404_v51 = vld [vmem:[#allocation2 + $0x700] ss:$28 sps:$4 sm:$0xff]  }
  0x58   :  { %2387 = vmatpush2.bf16.msra.mxu0 %v4335_v53  ;;  %v4412_v53 = vld [vmem:[#allocation2 + $0xa4c] ss:$28 sps:$4 sm:$0xff]  }
  0x59   :  { %2428 = vmatpush2.bf16.msra.mxu1 %v4336_v55  ;;  %2388 = vmatprep.subr.bf16.mxu0 %v4337_v56  ;;  %v4410_v55 = vld [vmem:[#allocation2 + $0xa48] ss:$28 sps:$4 sm:$0xff]   ;;  %v4413_v56 = vld [vmem:[#allocation2 + $0x40] ss:$28 sps:$4 sm:$0xff]  }
  0x5a   :  { %2429 = vmatprep.subr.bf16.mxu1 %v4339_v57  ;;  %v4418_v57 = vld [vmem:[#allocation2 + $0xa14] ss:$28 sps:$4 sm:$0xff]  }
  0x5c   :  { %2389 = vmatpush2.bf16.msra.mxu0 %v4341_v59  ;;  %v4416_v59 = vld [vmem:[#allocation2 + $0xa10] ss:$28 sps:$4 sm:$0xff]  }
  0x5d   :  { %2430 = vmatpush2.bf16.msra.mxu1 %v4342_v61  ;;  %2390 = vmatprep.subr.bf16.mxu0 %v4343_v62  ;;  %v4419_v61 = vld [vmem:[#allocation2 + $0x8] ss:$28 sps:$4 sm:$0xff]   ;;  %v4424_v62 = vld [vmem:[#allocation2 + $0x9dc] ss:$28 sps:$4 sm:$0xff]  }
  0x5e   :  { %2431 = vmatprep.subr.bf16.mxu1 %v4345_v63  ;;  %v4427_v63 = vld [vmem:[#allocation2 + $0x354] ss:$28 sps:$4 sm:$0xff]  }
  0x60   :  { %2391 = vmatpush2.bf16.msra.mxu0 %v4347_v1  ;;  %v4422_v1 = vld [vmem:[#allocation2 + $0x9d8] ss:$28 sps:$4 sm:$0xff]  }
  0x61   :  { %2432 = vmatpush2.bf16.msra.mxu1 %v4348_v2  ;;  %2392 = vmatprep.subr.bf16.mxu0 %v4349_v3  ;;  %v4425_v2 = vld [vmem:[#allocation2 + $0x350] ss:$28 sps:$4 sm:$0xff]   ;;  %v4430_v3 = vld [vmem:[#allocation2 + $0x9a4] ss:$28 sps:$4 sm:$0xff]  }
  0x62   :  { %2433 = vmatprep.subr.bf16.mxu1 %v4351_v4  ;;  %v4433_v4 = vld [vmem:[#allocation2 + $0x31c] ss:$28 sps:$4 sm:$0xff]  }
  0x64   :  { %2393 = vmatpush2.bf16.msra.mxu0 %v4353_v5  ;;  %v4428_v5 = vld [vmem:[#allocation2 + $0x9a0] ss:$28 sps:$4 sm:$0xff]  }
  0x65   :  { %2434 = vmatpush2.bf16.msra.mxu1 %v4354_v6  ;;  %2394 = vmatprep.subr.bf16.mxu0 %v4355_v8  ;;  %v4431_v6 = vld [vmem:[#allocation2 + $0x318] ss:$28 sps:$4 sm:$0xff]   ;;  %v4439_v8 = vld [vmem:[#allocation2 + $0x2e4] ss:$28 sps:$4 sm:$0xff]  }
  0x66   :  { %2435 = vmatprep.subr.bf16.mxu1 %v4357_v9  ;;  %v4434_v9 = vld [vmem:[#allocation2 + $0x968] ss:$28 sps:$4 sm:$0xff]  }
  0x68   :  { %2395 = vmatpush2.bf16.msra.mxu0 %v4359_v10  ;;  %v4437_v10 = vld [vmem:[#allocation2 + $0x2e0] ss:$28 sps:$4 sm:$0xff]  }
  0x69   :  { %2436 = vmatpush2.bf16.msra.mxu1 %v4360_v12  ;;  %2446 = vmatprep.subr.bf16.mxu0 %v4364_v14  ;;  %v4442_v12 = vld [vmem:[#allocation2 + $0x934] ss:$28 sps:$4 sm:$0xff]  }
  0x6a   :  { %2499 = vmatprep.subr.bf16.mxu1 %v4367_v15  ;;  %v4440_v14 = vld [vmem:[#allocation2 + $0x930] ss:$28 sps:$4 sm:$0xff]   ;;  %v4443_v15 = vld [vmem:[#allocation2 + $0x2a8] ss:$28 sps:$4 sm:$0xff]  }
  0x6b   :  { %2397 = vmatmul.mubr.bf16.vlgmr.msra.gmra.mxu0 %v4999_v11 }
  0x6c   :  { %2438 = vmatmul.mubr.bf16.vlgmr.msra.gmra.mxu1 %v5004_v18  ;;  %2447 = vmatpush1.bf16.msra.mxu0 %v4362_v17  ;;  %v4451_v17 = vld [vmem:[#allocation2 + $0x274] ss:$28 sps:$4 sm:$0xff]  }
  0x6d   :  { %2500 = vmatpush1.bf16.msra.mxu1 %v4365_v19  ;;  %2448 = vmatprep.subr.bf16.mxu0 %v4370_v20  ;;  %v4446_v19 = vld [vmem:[#allocation2 + $0x8f8] ss:$28 sps:$4 sm:$0xff]   ;;  %v4449_v20 = vld [vmem:[#allocation2 + $0x270] ss:$28 sps:$4 sm:$0xff]  }
  0x6e   :  { %2501 = vmatprep.subr.bf16.mxu1 %v4373_v21  ;;  %2519 = vmatprep.mubr.bf16.mxu1 %v4927_v28  ;;  %v4454_v21 = vld [vmem:[#allocation2 + $0x8c4] ss:$28 sps:$4 sm:$0xff]  }
  0x6f   :  { %2478 = vmatprep.mubr.bf16.mxu0 %v5007_v22 }
  0x70   :  { %2449 = vmatpush1.bf16.msra.mxu0 %v4368_v24  ;;  %v4457_v24 = vld [vmem:[#allocation2 + $0x23c] ss:$28 sps:$4 sm:$0xff]  }
  0x71   :  { %2502 = vmatpush1.bf16.msra.mxu1 %v4371_v25  ;;  %2450 = vmatprep.subr.bf16.mxu0 %v4376_v26  ;;  %v4452_v25 = vld [vmem:[#allocation2 + $0x8c0] ss:$28 sps:$4 sm:$0xff]   ;;  %v4455_v26 = vld [vmem:[#allocation2 + $0x238] ss:$28 sps:$4 sm:$0xff]  }
  0x72   :  { %2528 = vmatprep.subr.bf16.mxu1 %v4379_v27  ;;  %v4460_v27 = vld [vmem:[#allocation2 + $0x204] ss:$28 sps:$4 sm:$0xff]  }
  0x74   :  { %4029 = vmatmul.mubr.msk.bf16.vlgmr.msra.gmra.mxu1 %vm2360_vm0, %v5018_v30  ;;  %2451 = vmatpush1.bf16.msra.mxu0 %v4374_v29  ;;  %v4463_v29 = vld [vmem:[#allocation2 + $0x514] ss:$28 sps:$4 sm:$0xff]  }
  0x75   :  { %2529 = vmatpush1.bf16.msra.mxu1 %v4377_v31  ;;  %2452 = vmatprep.subr.bf16.mxu0 %v4382_v32  ;;  %v4458_v31 = vld [vmem:[#allocation2 + $0x200] ss:$28 sps:$4 sm:$0xff]   ;;  %v4461_v32 = vld [vmem:[#allocation2 + $0x510] ss:$28 sps:$4 sm:$0xff]  }
  0x76   :  { %2530 = vmatprep.subr.bf16.mxu1 %v4385_v33  ;;  %2560 = vmatprep.mubr.bf16.mxu1 %v4990_v60  ;;  %v4466_v33 = vld [vmem:[#allocation2 + $0x1cc] ss:$28 sps:$4 sm:$0xff]  }
  0x78   :  { %2453 = vmatpush1.bf16.msra.mxu0 %v4380_v34  ;;  %v4469_v34 = vld [vmem:[#allocation2 + $0x4dc] ss:$28 sps:$4 sm:$0xff]  }
  0x79   :  { %2531 = vmatpush1.bf16.msra.mxu1 %v4383_v35  ;;  %2454 = vmatprep.subr.bf16.mxu0 %v4388_v36  ;;  %v4464_v35 = vld [vmem:[#allocation2 + $0x1c8] ss:$28 sps:$4 sm:$0xff]   ;;  %v4467_v36 = vld [vmem:[#allocation2 + $0x4d8] ss:$28 sps:$4 sm:$0xff]  }
  0x7a   :  { %2532 = vmatprep.subr.bf16.mxu1 %v4391_v37  ;;  %v4472_v37 = vld [vmem:[#allocation2 + $0x4a4] ss:$28 sps:$4 sm:$0xff]  }
  0x7c   :  { %2455 = vmatpush1.bf16.msra.mxu0 %v4386_v38  ;;  %v4475_v38 = vld [vmem:[#allocation2 + $0x894] ss:$28 sps:$4 sm:$0xff]  }
  0x7d   :  { %2533 = vmatpush1.bf16.msra.mxu1 %v4389_v39  ;;  %2456 = vmatprep.subr.bf16.mxu0 %v4394_v40  ;;  %v4470_v39 = vld [vmem:[#allocation2 + $0x4a0] ss:$28 sps:$4 sm:$0xff]   ;;  %v4473_v40 = vld [vmem:[#allocation2 + $0x890] ss:$28 sps:$4 sm:$0xff]  }
  0x7e   :  { %2534 = vmatprep.subr.bf16.mxu1 %v4397_v41  ;;  %v4478_v41 = vld [vmem:[#allocation2 + $0x46c] ss:$28 sps:$4 sm:$0xff]  }
  0x80   :  { %2457 = vmatpush1.bf16.msra.mxu0 %v4392_v43  ;;  %v4481_v43 = vld [vmem:[#allocation2 + $0x85c] ss:$28 sps:$4 sm:$0xff]  }
  0x81   :  { %2535 = vmatpush1.bf16.msra.mxu1 %v4395_v44  ;;  %2458 = vmatprep.subr.bf16.mxu0 %v4400_v45  ;;  %v4476_v44 = vld [vmem:[#allocation2 + $0x468] ss:$28 sps:$4 sm:$0xff]   ;;  %v4479_v45 = vld [vmem:[#allocation2 + $0x858] ss:$28 sps:$4 sm:$0xff]  }
  0x82   :  { %2536 = vmatprep.subr.bf16.mxu1 %v4403_v46  ;;  %v4484_v46 = vld [vmem:[#allocation2 + $0x434] ss:$28 sps:$4 sm:$0xff]  }
  0x84   :  { %2459 = vmatpush1.bf16.msra.mxu0 %v4398_v47  ;;  %v4487_v47 = vld [vmem:[#allocation2 + $0x824] ss:$28 sps:$4 sm:$0xff]  }
  0x85   :  { %2537 = vmatpush1.bf16.msra.mxu1 %v4401_v48  ;;  %2460 = vmatprep.subr.bf16.mxu0 %v4406_v49  ;;  %v4482_v48 = vld [vmem:[#allocation2 + $0x430] ss:$28 sps:$4 sm:$0xff]   ;;  %v4485_v49 = vld [vmem:[#allocation2 + $0x820] ss:$28 sps:$4 sm:$0xff]  }
  0x86   :  { %2538 = vmatprep.subr.bf16.mxu1 %v4409_v50  ;;  %v4490_v50 = vld [vmem:[#allocation2 + $0x3fc] ss:$28 sps:$4 sm:$0xff]  }
  0x88   :  { %2461 = vmatpush1.bf16.msra.mxu0 %v4404_v51  ;;  %v4493_v51 = vld [vmem:[#allocation2 + $0x7ec] ss:$28 sps:$4 sm:$0xff]  }
  0x89   :  { %2539 = vmatpush1.bf16.msra.mxu1 %v4407_v52  ;;  %2462 = vmatprep.subr.bf16.mxu0 %v4412_v53  ;;  %v4488_v52 = vld [vmem:[#allocation2 + $0x3f8] ss:$28 sps:$4 sm:$0xff]   ;;  %v4491_v53 = vld [vmem:[#allocation2 + $0x7e8] ss:$28 sps:$4 sm:$0xff]  }
  0x8a   :  { %2540 = vmatprep.subr.bf16.mxu1 %v4415_v54  ;;  %v4496_v54 = vld [vmem:[#allocation2 + $0x3c4] ss:$28 sps:$4 sm:$0xff]  }
  0x8c   :  { %2463 = vmatpush2.bf16.msra.mxu0 %v4410_v55  ;;  %v4499_v55 = vld [vmem:[#allocation2 + $0x7b4] ss:$28 sps:$4 sm:$0xff]  }
  0x8d   :  { %2541 = vmatpush1.bf16.msra.mxu1 %v4413_v56  ;;  %2464 = vmatprep.subr.bf16.mxu0 %v4418_v57  ;;  %v4494_v56 = vld [vmem:[#allocation2 + $0x3c0] ss:$28 sps:$4 sm:$0xff]   ;;  %v4497_v57 = vld [vmem:[#allocation2 + $0x7b0] ss:$28 sps:$4 sm:$0xff]  }
  0x8e   :  { %2542 = vmatprep.subr.bf16.mxu1 %v4421_v58  ;;  %v4502_v58 = vld [vmem:[#allocation2 + $0x38c] ss:$28 sps:$4 sm:$0xff]  }
  0x90   :  { %2465 = vmatpush2.bf16.msra.mxu0 %v4416_v59  ;;  %v4505_v59 = vld [vmem:[#allocation2 + $0x77c] ss:$28 sps:$4 sm:$0xff]  }
  0x91   :  { %2543 = vmatpush1.bf16.msra.mxu1 %v4419_v61  ;;  %2466 = vmatprep.subr.bf16.mxu0 %v4424_v62  ;;  %v4500_v61 = vld [vmem:[#allocation2 + $0x388] ss:$28 sps:$4 sm:$0xff]   ;;  %v4503_v62 = vld [vmem:[#allocation2 + $0x778] ss:$28 sps:$4 sm:$0xff]  }
  0x92   :  { %2544 = vmatprep.subr.bf16.mxu1 %v4427_v63  ;;  %v4508_v63 = vld [vmem:[#allocation2 + $0x6d4] ss:$28 sps:$4 sm:$0xff]  }
  0x94   :  { %2467 = vmatpush2.bf16.msra.mxu0 %v4422_v1  ;;  %v4511_v1 = vld [vmem:[#allocation2 + $0x744] ss:$28 sps:$4 sm:$0xff]  }
  0x95   :  { %2545 = vmatpush2.bf16.msra.mxu1 %v4425_v2  ;;  %2468 = vmatprep.subr.bf16.mxu0 %v4430_v3  ;;  %v4506_v2 = vld [vmem:[#allocation2 + $0x6d0] ss:$28 sps:$4 sm:$0xff]   ;;  %v4509_v3 = vld [vmem:[#allocation2 + $0x740] ss:$28 sps:$4 sm:$0xff]  }
  0x96   :  { %2546 = vmatprep.subr.bf16.mxu1 %v4433_v4  ;;  %v4514_v4 = vld [vmem:[#allocation2 + $0x69c] ss:$28 sps:$4 sm:$0xff]  }
  0x98   :  { %2469 = vmatpush2.bf16.msra.mxu0 %v4428_v5  ;;  %v4517_v5 = vld [vmem:[#allocation2 + $0x70c] ss:$28 sps:$4 sm:$0xff]  }
  0x99   :  { %2547 = vmatpush2.bf16.msra.mxu1 %v4431_v6  ;;  %2470 = vmatprep.subr.bf16.mxu0 %v4436_v7  ;;  %v4512_v6 = vld [vmem:[#allocation2 + $0x698] ss:$28 sps:$4 sm:$0xff]   ;;  %v4515_v7 = vld [vmem:[#allocation2 + $0x708] ss:$28 sps:$4 sm:$0xff]  }
  0x9a   :  { %2548 = vmatprep.subr.bf16.mxu1 %v4439_v8  ;;  %v4520_v8 = vld [vmem:[#allocation2 + $0x664] ss:$28 sps:$4 sm:$0xff]  }
  0x9c   :  { %2471 = vmatpush2.bf16.msra.mxu0 %v4434_v9  ;;  %v4523_v9 = vld [vmem:[#allocation2 + $0xa54] ss:$28 sps:$4 sm:$0xff]  }
  0x9d   :  { %2549 = vmatpush2.bf16.msra.mxu1 %v4437_v10  ;;  %2472 = vmatprep.subr.bf16.mxu0 %v4442_v12  ;;  %v4518_v10 = vld [vmem:[#allocation2 + $0x660] ss:$28 sps:$4 sm:$0xff]   ;;  %v4521_v12 = vld [vmem:[#allocation2 + $0xa50] ss:$28 sps:$4 sm:$0xff]  }
  0x9e   :  { %2550 = vmatprep.subr.bf16.mxu1 %v4445_v13  ;;  %v4526_v13 = vld [vmem:[#allocation2 + $0x62c] ss:$28 sps:$4 sm:$0xff]  }
  0xa0   :  { %2473 = vmatpush2.bf16.msra.mxu0 %v4440_v14  ;;  %v4529_v14 = vld [vmem:[#allocation2 + $0xa1c] ss:$28 sps:$4 sm:$0xff]  }
  0xa1   :  { %2551 = vmatpush2.bf16.msra.mxu1 %v4443_v15  ;;  %2474 = vmatprep.subr.bf16.mxu0 %v4448_v16  ;;  %v4524_v15 = vld [vmem:[#allocation2 + $0x628] ss:$28 sps:$4 sm:$0xff]   ;;  %v4527_v16 = vld [vmem:[#allocation2 + $0xa18] ss:$28 sps:$4 sm:$0xff]  }
  0xa2   :  { %2552 = vmatprep.subr.bf16.mxu1 %v4451_v17  ;;  %v4532_v17 = vld [vmem:[#allocation2 + $0x5f4] ss:$28 sps:$4 sm:$0xff]  }
  0xa4   :  { %2475 = vmatpush2.bf16.msra.mxu0 %v4446_v19  ;;  %v4535_v19 = vld [vmem:[#allocation2 + $0x9e4] ss:$28 sps:$4 sm:$0xff]  }
  0xa5   :  { %2553 = vmatpush2.bf16.msra.mxu1 %v4449_v20  ;;  %2476 = vmatprep.subr.bf16.mxu0 %v4454_v21  ;;  %v4530_v20 = vld [vmem:[#allocation2 + $0x5f0] ss:$28 sps:$4 sm:$0xff]   ;;  %v4533_v21 = vld [vmem:[#allocation2 + $0x9e0] ss:$28 sps:$4 sm:$0xff]  }
  0xa6   :  { %2554 = vmatprep.subr.bf16.mxu1 %v4457_v24  ;;  %v4538_v24 = vld [vmem:[#allocation2 + $0x5bc] ss:$28 sps:$4 sm:$0xff]  }
  0xa8   :  { %2477 = vmatpush2.bf16.msra.mxu0 %v4452_v25  ;;  %v4541_v25 = vld [vmem:[#allocation2 + $0x9ac] ss:$28 sps:$4 sm:$0xff]  }
  0xa9   :  { %2555 = vmatpush2.bf16.msra.mxu1 %v4455_v26  ;;  %2569 = vmatprep.subr.bf16.mxu0 %v4463_v29  ;;  %v4536_v26 = vld [vmem:[#allocation2 + $0x5b8] ss:$28 sps:$4 sm:$0xff]   ;;  %v4544_v29 = vld [vmem:[#allocation2 + $0x584] ss:$28 sps:$4 sm:$0xff]  }
  0xaa   :  { %2556 = vmatprep.subr.bf16.mxu1 %v4460_v27  ;;  %v4539_v27 = vld [vmem:[#allocation2 + $0x9a8] ss:$28 sps:$4 sm:$0xff]  }
  0xab   :  { %2479 = vmatmul.mubr.bf16.vlgmr.msra.gmra.mxu0 %v5010_v23 }
  0xac   :  { %2570 = vmatpush1.bf16.msra.mxu0 %v4461_v32  ;;  %2601 = vmatprep.mubr.bf16.mxu0 %v4994_v0  ;;  %v4542_v32 = vld [vmem:[#allocation2 + $0x580] ss:$28 sps:$4 sm:$0xff]  }
  0xad   :  { %2557 = vmatpush2.bf16.msra.mxu1 %v4458_v31  ;;  %2571 = vmatprep.subr.bf16.mxu0 %v4469_v34  ;;  %v4547_v31 = vld [vmem:[#allocation2 + $0x974] ss:$28 sps:$4 sm:$0xff]   ;;  %v4550_v34 = vld [vmem:[#allocation2 + $0x54c] ss:$28 sps:$4 sm:$0xff]  }
  0xae   :  { %2558 = vmatprep.subr.bf16.mxu1 %v4466_v33  ;;  %v4545_v33 = vld [vmem:[#allocation2 + $0x970] ss:$28 sps:$4 sm:$0xff]  }
  0xb0   :  { %2572 = vmatpush1.bf16.msra.mxu0 %v4467_v36  ;;  %v4548_v36 = vld [vmem:[#allocation2 + $0x548] ss:$28 sps:$4 sm:$0xff]  }
  0xb1   :  { %2559 = vmatpush2.bf16.msra.mxu1 %v4464_v35  ;;  %2573 = vmatprep.subr.bf16.mxu0 %v4472_v37  ;;  %v4553_v35 = vld [vmem:[#allocation2 + $0x93c] ss:$28 sps:$4 sm:$0xff]  }
  0xb2   :  { %2610 = vmatprep.subr.bf16.mxu1 %v4475_v38  ;;  %v4551_v37 = vld [vmem:[#allocation2 + $0x938] ss:$28 sps:$4 sm:$0xff]   ;;  %v4556_v38 = vld [vmem:[#allocation2 + $0x904] ss:$28 sps:$4 sm:$0xff]  }
  0xb4   :  { %2561 = vmatmul.mubr.bf16.vlgmr.msra.gmra.mxu1 %v4999_v11  ;;  %2574 = vmatpush1.bf16.msra.mxu0 %v4470_v39  ;;  %v4559_v39 = vld [vmem:[#allocation2 + $0xac4] ss:$28 sps:$4 sm:$0xff]  }
  0xb5   :  { %2611 = vmatpush1.bf16.msra.mxu1 %v4473_v40  ;;  %2575 = vmatprep.subr.bf16.mxu0 %v4478_v41  ;;  %v4554_v40 = vld [vmem:[#allocation2 + $0x900] ss:$28 sps:$4 sm:$0xff]  }
  0xb6   :  { %2612 = vmatprep.subr.bf16.mxu1 %v4481_v43  ;;  %2642 = vmatprep.mubr.bf16.mxu1 %v5007_v22  ;;  %v4557_v41 = vld [vmem:[#allocation2 + $0xac0] ss:$28 sps:$4 sm:$0xff]   ;;  %v4562_v43 = vld [vmem:[#allocation2 + $0x8cc] ss:$28 sps:$4 sm:$0xff]  }
  0xb8   :  { %2576 = vmatpush1.bf16.msra.mxu0 %v4476_v44  ;;  %v4565_v44 = vld [vmem:[#allocation2 + $0xa8c] ss:$28 sps:$4 sm:$0xff]  }
  0xb9   :  { %2613 = vmatpush1.bf16.msra.mxu1 %v4479_v45  ;;  %2577 = vmatprep.subr.bf16.mxu0 %v4484_v46  ;;  %v4560_v45 = vld [vmem:[#allocation2 + $0x8c8] ss:$28 sps:$4 sm:$0xff]  }
  0xba   :  { %2614 = vmatprep.subr.bf16.mxu1 %v4487_v47  ;;  %v4563_v46 = vld [vmem:[#allocation2 + $0xa88] ss:$28 sps:$4 sm:$0xff]   ;;  %v4568_v47 = vld [vmem:[#allocation2 + $0x19c] ss:$28 sps:$4 sm:$0xff]  }
  0xbc   :  { %2578 = vmatpush1.bf16.msra.mxu0 %v4482_v48  ;;  %v4571_v48 = vld [vmem:[#allocation2 + $0x51c] ss:$28 sps:$4 sm:$0xff]  }
  0xbd   :  { %2615 = vmatpush1.bf16.msra.mxu1 %v4485_v49  ;;  %2579 = vmatprep.subr.bf16.mxu0 %v4490_v50  ;;  %v4566_v49 = vld [vmem:[#allocation2 + $0x198] ss:$28 sps:$4 sm:$0xff]  }
  0xbe   :  { %2616 = vmatprep.subr.bf16.mxu1 %v4493_v51  ;;  %v4569_v50 = vld [vmem:[#allocation2 + $0x518] ss:$28 sps:$4 sm:$0xff]   ;;  %v4574_v51 = vld [vmem:[#allocation2 + $0x164] ss:$28 sps:$4 sm:$0xff]  }
  0xc0   :  { %2580 = vmatpush1.bf16.msra.mxu0 %v4488_v52  ;;  %v4577_v52 = vld [vmem:[#allocation2 + $0x4e4] ss:$28 sps:$4 sm:$0xff]  }
  0xc1   :  { %2617 = vmatpush1.bf16.msra.mxu1 %v4491_v53  ;;  %2581 = vmatprep.subr.bf16.mxu0 %v4496_v54  ;;  %v4572_v53 = vld [vmem:[#allocation2 + $0x160] ss:$28 sps:$4 sm:$0xff]  }
  0xc2   :  { %2618 = vmatprep.subr.bf16.mxu1 %v4499_v55  ;;  %v4575_v54 = vld [vmem:[#allocation2 + $0x4e0] ss:$28 sps:$4 sm:$0xff]   ;;  %v4580_v55 = vld [vmem:[#allocation2 + $0x12c] ss:$28 sps:$4 sm:$0xff]  }
  0xc4   :  { %2582 = vmatpush1.bf16.msra.mxu0 %v4494_v56  ;;  %v4583_v56 = vld [vmem:[#allocation2 + $0x4ac] ss:$28 sps:$4 sm:$0xff]  }
  0xc5   :  { %2619 = vmatpush1.bf16.msra.mxu1 %v4497_v57  ;;  %2583 = vmatprep.subr.bf16.mxu0 %v4502_v58  ;;  %v4578_v57 = vld [vmem:[#allocation2 + $0x128] ss:$28 sps:$4 sm:$0xff]  }
  0xc6   :  { %2620 = vmatprep.subr.bf16.mxu1 %v4505_v59  ;;  %v4581_v58 = vld [vmem:[#allocation2 + $0x4a8] ss:$28 sps:$4 sm:$0xff]   ;;  %v4586_v59 = vld [vmem:[#allocation2 + $0xf4] ss:$28 sps:$4 sm:$0xff]  }
  0xc8   :  { %2584 = vmatpush1.bf16.msra.mxu0 %v4500_v61  ;;  %v4589_v61 = vld [vmem:[#allocation2 + $0x474] ss:$28 sps:$4 sm:$0xff]  }
  0xc9   :  { %2621 = vmatpush1.bf16.msra.mxu1 %v4503_v62  ;;  %2585 = vmatprep.subr.bf16.mxu0 %v4508_v63  ;;  %v4584_v62 = vld [vmem:[#allocation2 + $0xf0] ss:$28 sps:$4 sm:$0xff]  }
  0xca   :  { %2622 = vmatprep.subr.bf16.mxu1 %v4511_v1  ;;  %v4587_v63 = vld [vmem:[#allocation2 + $0x470] ss:$28 sps:$4 sm:$0xff]   ;;  %v4592_v1 = vld [vmem:[#allocation2 + $0xbc] ss:$28 sps:$4 sm:$0xff]  }
  0xcc   :  { %2586 = vmatpush2.bf16.msra.mxu0 %v4506_v2  ;;  %v4595_v2 = vld [vmem:[#allocation2 + $0x43c] ss:$28 sps:$4 sm:$0xff]  }
  0xcd   :  { %2623 = vmatpush1.bf16.msra.mxu1 %v4509_v3  ;;  %2587 = vmatprep.subr.bf16.mxu0 %v4514_v4  ;;  %v4590_v3 = vld [vmem:[#allocation2 + $0xb8] ss:$28 sps:$4 sm:$0xff]  }
  0xce   :  { %2624 = vmatprep.subr.bf16.mxu1 %v4517_v5  ;;  %v4593_v4 = vld [vmem:[#allocation2 + $0x438] ss:$28 sps:$4 sm:$0xff]   ;;  %v4598_v5 = vld [vmem:[#allocation2 + $0x84] ss:$28 sps:$4 sm:$0xff]  }
  0xd0   :  { %2588 = vmatpush2.bf16.msra.mxu0 %v4512_v6  ;;  %v4601_v6 = vld [vmem:[#allocation2 + $0x404] ss:$28 sps:$4 sm:$0xff]  }
  0xd1   :  { %2625 = vmatpush1.bf16.msra.mxu1 %v4515_v7  ;;  %2589 = vmatprep.subr.bf16.mxu0 %v4520_v8  ;;  %v4596_v7 = vld [vmem:[#allocation2 + $0x80] ss:$28 sps:$4 sm:$0xff]  }
  0xd2   :  { %2626 = vmatprep.subr.bf16.mxu1 %v4523_v9  ;;  %v4599_v8 = vld [vmem:[#allocation2 + $0x400] ss:$28 sps:$4 sm:$0xff]   ;;  %v4604_v9 = vld [vmem:[#allocation2 + $0x4c] ss:$28 sps:$4 sm:$0xff]  }
  0xd4   :  { %2590 = vmatpush2.bf16.msra.mxu0 %v4518_v10  ;;  %v4607_v10 = vld [vmem:[#allocation2 + $0x3cc] ss:$28 sps:$4 sm:$0xff]  }
  0xd5   :  { %2627 = vmatpush2.bf16.msra.mxu1 %v4521_v12  ;;  %2591 = vmatprep.subr.bf16.mxu0 %v4526_v13  ;;  %v4602_v12 = vld [vmem:[#allocation2 + $0x48] ss:$28 sps:$4 sm:$0xff]  }
  0xd6   :  { %2628 = vmatprep.subr.bf16.mxu1 %v4529_v14  ;;  %v4605_v13 = vld [vmem:[#allocation2 + $0x3c8] ss:$28 sps:$4 sm:$0xff]   ;;  %v4610_v14 = vld [vmem:[#allocation2 + $0x14] ss:$28 sps:$4 sm:$0xff]  }
  0xd8   :  { %2592 = vmatpush2.bf16.msra.mxu0 %v4524_v15  ;;  %v4613_v15 = vld [vmem:[#allocation2 + $0x394] ss:$28 sps:$4 sm:$0xff]  }
  0xd9   :  { %2629 = vmatpush2.bf16.msra.mxu1 %v4527_v16  ;;  %2593 = vmatprep.subr.bf16.mxu0 %v4532_v17  ;;  %v4608_v16 = vld [vmem:[#allocation2 + $0x10] ss:$28 sps:$4 sm:$0xff]   ;;  %v472_v17 = vsub.s32 0, %v4980_v42 }
  0xda   :  { %2630 = vmatprep.subr.bf16.mxu1 %v4535_v19  ;;  %v4611_v19 = vld [vmem:[#allocation2 + $0x390] ss:$28 sps:$4 sm:$0xff]  }
  0xdc   :  { %2594 = vmatpush2.bf16.msra.mxu0 %v4530_v20  ;;  %v4616_v20 = vld [vmem:[#allocation2 + $0x35c] ss:$28 sps:$4 sm:$0xff]  }
  0xdd   :  { %2631 = vmatpush2.bf16.msra.mxu1 %v4533_v21  ;;  %2595 = vmatprep.subr.bf16.mxu0 %v4538_v24  ;;  %v4619_v21 = vld [vmem:[#allocation2 + $0x6dc] ss:$28 sps:$4 sm:$0xff]  }
  0xde   :  { %2632 = vmatprep.subr.bf16.mxu1 %v4541_v25  ;;  %v4614_v24 = vld [vmem:[#allocation2 + $0x358] ss:$28 sps:$4 sm:$0xff]  }
  0xdf   :  { %v4617_v25 = vld [vmem:[#allocation2 + $0x6d8] ss:$28 sps:$4 sm:$0xff]  }
  0xe0   :  { %2596 = vmatpush2.bf16.msra.mxu0 %v4536_v26  ;;  %v4622_v26 = vld [vmem:[#allocation2 + $0x324] ss:$28 sps:$4 sm:$0xff]  }
  0xe1   :  { %2633 = vmatpush2.bf16.msra.mxu1 %v4539_v27  ;;  %2597 = vmatprep.subr.bf16.mxu0 %v4544_v29  ;;  %v4625_v27 = vld [vmem:[#allocation2 + $0x6a4] ss:$28 sps:$4 sm:$0xff]  }
  0xe2   :  { %2634 = vmatprep.subr.bf16.mxu1 %v4547_v31  ;;  %v4620_v29 = vld [vmem:[#allocation2 + $0x320] ss:$28 sps:$4 sm:$0xff]  }
  0xe3   :  { %v4623_v31 = vld [vmem:[#allocation2 + $0x6a0] ss:$28 sps:$4 sm:$0xff]  }
  0xe4   :  { %2598 = vmatpush2.bf16.msra.mxu0 %v4542_v32  ;;  %v4628_v32 = vld [vmem:[#allocation2 + $0x2ec] ss:$28 sps:$4 sm:$0xff]  }
  0xe5   :  { %2635 = vmatpush2.bf16.msra.mxu1 %v4545_v33  ;;  %2599 = vmatprep.subr.bf16.mxu0 %v4550_v34  ;;  %v4631_v33 = vld [vmem:[#allocation2 + $0x66c] ss:$28 sps:$4 sm:$0xff]  }
  0xe6   :  { %2636 = vmatprep.subr.bf16.mxu1 %v4553_v35  ;;  %v4626_v34 = vld [vmem:[#allocation2 + $0x2e8] ss:$28 sps:$4 sm:$0xff]  }
  0xe7   :  { %v4629_v35 = vld [vmem:[#allocation2 + $0x668] ss:$28 sps:$4 sm:$0xff]  }
  0xe8   :  { %2600 = vmatpush2.bf16.msra.mxu0 %v4548_v36  ;;  %v4634_v36 = vld [vmem:[#allocation2 + $0x2b4] ss:$28 sps:$4 sm:$0xff]  }
  0xe9   :  { %2637 = vmatpush2.bf16.msra.mxu1 %v4551_v37  ;;  %2663 = vmatprep.subr.bf16.mxu0 %v4559_v39  ;;  %v4637_v37 = vld [vmem:[#allocation2 + $0x634] ss:$28 sps:$4 sm:$0xff]  }
  0xea   :  { %2638 = vmatprep.subr.bf16.mxu1 %v4556_v38  ;;  %v4632_v38 = vld [vmem:[#allocation2 + $0x2b0] ss:$28 sps:$4 sm:$0xff]  }
  0xeb   :  { %2602 = vmatmul.mubr.bf16.vlgmr.msra.gmra.mxu0 %v5004_v18  ;;  %v4635_v39 = vld [vmem:[#allocation2 + $0x630] ss:$28 sps:$4 sm:$0xff]  }
  0xec   :  { %2664 = vmatpush1.bf16.msra.mxu0 %v4557_v41  ;;  %2683 = vmatprep.mubr.bf16.mxu0 %v4927_v28  ;;  %v4643_v41 = vld [vmem:[#allocation2 + $0x5fc] ss:$28 sps:$4 sm:$0xff]  }
  0xed   :  { %2639 = vmatpush2.bf16.msra.mxu1 %v4554_v40  ;;  %2665 = vmatprep.subr.bf16.mxu0 %v4565_v44  ;;  %v4640_v40 = vld [vmem:[#allocation2 + $0x27c] ss:$28 sps:$4 sm:$0xff]  }
  0xee   :  { %2640 = vmatprep.subr.bf16.mxu1 %v4562_v43  ;;  %v4638_v43 = vld [vmem:[#allocation2 + $0x278] ss:$28 sps:$4 sm:$0xff]  }
  0xef   :  { %v4641_v44 = vld [vmem:[#allocation2 + $0x5f8] ss:$28 sps:$4 sm:$0xff]  }
  0xf0   :  { %2666 = vmatpush1.bf16.msra.mxu0 %v4563_v46  ;;  %v4649_v46 = vld [vmem:[#allocation2 + $0x5c4] ss:$28 sps:$4 sm:$0xff]  }
  0xf1   :  { %2641 = vmatpush2.bf16.msra.mxu1 %v4560_v45  ;;  %2692 = vmatprep.subr.bf16.mxu0 %v4568_v47  ;;  %v4646_v45 = vld [vmem:[#allocation2 + $0x244] ss:$28 sps:$4 sm:$0xff]  }
  0xf2   :  { %2733 = vmatprep.subr.bf16.mxu1 %v4571_v48  ;;  %v4644_v47 = vld [vmem:[#allocation2 + $0x240] ss:$28 sps:$4 sm:$0xff]  }
  0xf3   :  { %4030 = vmatmul.mubr.msk.bf16.vlgmr.msra.gmra.mxu0 %vm2360_vm0, %v5018_v30  ;;  %v4647_v48 = vld [vmem:[#allocation2 + $0x5c0] ss:$28 sps:$4 sm:$0xff]  }
  0xf4   :  { %2643 = vmatmul.mubr.bf16.vlgmr.msra.gmra.mxu1 %v5010_v23  ;;  %2693 = vmatpush1.bf16.msra.mxu0 %v4566_v49  ;;  %v5038_v49 = vld [vmem:[%s5267_s3] sm:$0x7f] }
  0xf5   :  { %2734 = vmatpush1.bf16.msra.mxu1 %v4569_v50  ;;  %2694 = vmatprep.subr.bf16.mxu0 %v4574_v51  ;;  %v4652_v50 = vld [vmem:[#allocation2 + $0x20c] ss:$28 sps:$4 sm:$0xff]  }
  0xf6   :  { %2735 = vmatprep.subr.bf16.mxu1 %v4577_v52  ;;  %2724 = vmatprep.mubr.bf16.mxu0 %v4990_v60  ;;  %v4655_v51 = vld [vmem:[#allocation2 + $0x58c] ss:$28 sps:$4 sm:$0xff]  }
  0xf7   :  { %2765 = vmatprep.mubr.bf16.mxu1 %v4994_v0  ;;  %v4650_v52 = vld [vmem:[#allocation2 + $0x208] ss:$28 sps:$4 sm:$0xff]  }
  0xf8   :  { %2695 = vmatpush1.bf16.msra.mxu0 %v4572_v53  ;;  %v4653_v53 = vld [vmem:[#allocation2 + $0x588] ss:$28 sps:$4 sm:$0xff]  }
  0xf9   :  { %2736 = vmatpush1.bf16.msra.mxu1 %v4575_v54  ;;  %2696 = vmatprep.subr.bf16.mxu0 %v4580_v55  ;;  %v473_v54 = vrot.slane %v5038_v49, %v472_v17  ;;  %v4658_v55 = vld [vmem:[#allocation2 + $0x1d4] ss:$28 sps:$4 sm:$0xff]   ;;  %v4676_v17 = vld [vmem:[#allocation2 + $0x82c] ss:$28 sps:$4 sm:$0xff]  }
  0xfa   :  { %2737 = vmatprep.subr.bf16.mxu1 %v4583_v56  ;;  %v4661_v56 = vld [vmem:[#allocation2 + $0x554] ss:$28 sps:$4 sm:$0xff]  }
  0xfc   :  { %2697 = vmatpush1.bf16.msra.mxu0 %v4578_v57  ;;  %v4656_v57 = vld [vmem:[#allocation2 + $0x1d0] ss:$28 sps:$4 sm:$0xff]  }
  0xfd   :  { %2738 = vmatpush1.bf16.msra.mxu1 %v4581_v58  ;;  %2698 = vmatprep.subr.bf16.mxu0 %v4586_v59 }
  0xfe   :  { %2739 = vmatprep.subr.bf16.mxu1 %v4589_v61  ;;  %v4659_v61 = vld [vmem:[#allocation2 + $0x550] ss:$28 sps:$4 sm:$0xff]  }
 0x100   :  { %2699 = vmatpush1.bf16.msra.mxu0 %v4584_v62 }
 0x101   :  { %2740 = vmatpush1.bf16.msra.mxu1 %v4587_v63  ;;  %2700 = vmatprep.subr.bf16.mxu0 %v4592_v1  ;;  %v4664_v63 = vld [vmem:[#allocation2 + $0x89c] ss:$28 sps:$4 sm:$0xff]  }
 0x102   :  { %2741 = vmatprep.subr.bf16.mxu1 %v4595_v2 }
 0x104   :  { %2701 = vmatpush1.bf16.msra.mxu0 %v4590_v3  ;;  %v4667_v3 = vld [vmem:[#allocation2 + $0xacc] ss:$28 sps:$4 sm:$0xff]  }
 0x105   :  { %2742 = vmatpush1.bf16.msra.mxu1 %v4593_v4  ;;  %2702 = vmatprep.subr.bf16.mxu0 %v4598_v5  ;;  %v4662_v5 = vld [vmem:[#allocation2 + $0x898] ss:$28 sps:$4 sm:$0xff]  }
 0x106   :  { %2743 = vmatprep.subr.bf16.mxu1 %v4601_v6 }
 0x108   :  { %2703 = vmatpush1.bf16.msra.mxu0 %v4596_v7  ;;  %v4665_v7 = vld [vmem:[#allocation2 + $0xac8] ss:$28 sps:$4 sm:$0xff]  }
 0x109   :  { %2744 = vmatpush1.bf16.msra.mxu1 %v4599_v8  ;;  %2704 = vmatprep.subr.bf16.mxu0 %v4604_v9  ;;  %v4670_v9 = vld [vmem:[#allocation2 + $0x864] ss:$28 sps:$4 sm:$0xff]  }
 0x10a   :  { %2745 = vmatprep.subr.bf16.mxu1 %v4607_v10 }
 0x10c   :  { %2705 = vmatpush1.bf16.msra.mxu0 %v4602_v12  ;;  %v4673_v12 = vld [vmem:[#allocation2 + $0xa94] ss:$28 sps:$4 sm:$0xff]  }
 0x10d   :  { %2746 = vmatpush1.bf16.msra.mxu1 %v4605_v13  ;;  %2706 = vmatprep.subr.bf16.mxu0 %v4610_v14  ;;  %v4668_v14 = vld [vmem:[#allocation2 + $0x860] ss:$28 sps:$4 sm:$0xff]  }
 0x10e   :  { %2747 = vmatprep.subr.bf16.mxu1 %v4613_v15  ;;  %v4671_v15 = vld [vmem:[#allocation2 + $0xa90] ss:$28 sps:$4 sm:$0xff]  }
 0x110   :  { %2707 = vmatpush1.bf16.msra.mxu0 %v4608_v16 }
 0x111   :  { %2748 = vmatpush1.bf16.msra.mxu1 %v4611_v19  ;;  %2708 = vmatprep.subr.bf16.mxu0 %v4616_v20  ;;  %v4677_v19 = vld [vmem:[#allocation2 + $0x360] ss:$28 sps:$4 sm:$0xff]  }
 0x112   :  { %2749 = vmatprep.subr.bf16.mxu1 %v4619_v21  ;;  %v4674_v21 = vld [vmem:[#allocation2 + $0x828] ss:$28 sps:$4 sm:$0xff]  }
 0x114   :  { %2709 = vmatpush2.bf16.msra.mxu0 %v4614_v24  ;;  %v4678_v24 = vld [vmem:[#allocation2 + $0x1a0] ss:$28 sps:$4 sm:$0xff]  }
 0x115   :  { %2750 = vmatpush2.bf16.msra.mxu1 %v4617_v25  ;;  %2710 = vmatprep.subr.bf16.mxu0 %v4622_v26  ;;  %v4681_v26 = vld [vmem:[#allocation2 + $0x7f4] ss:$28 sps:$4 sm:$0xff]  }
 0x116   :  { %2751 = vmatprep.subr.bf16.mxu1 %v4625_v27  ;;  %v4682_v27 = vld [vmem:[#allocation2 + $0x328] ss:$28 sps:$4 sm:$0xff]  }
 0x118   :  { %2711 = vmatpush2.bf16.msra.mxu0 %v4620_v29 }
 0x119   :  { %2752 = vmatpush2.bf16.msra.mxu1 %v4623_v31  ;;  %2712 = vmatprep.subr.bf16.mxu0 %v4628_v32  ;;  %v4679_v31 = vld [vmem:[#allocation2 + $0x7f0] ss:$28 sps:$4 sm:$0xff]   ;;  %v4683_v32 = vld [vmem:[#allocation2 + $0x168] ss:$28 sps:$4 sm:$0xff]  }
 0x11a   :  { %2753 = vmatprep.subr.bf16.mxu1 %v4631_v33  ;;  %v4686_v33 = vld [vmem:[#allocation2 + $0x7bc] ss:$28 sps:$4 sm:$0xff]  }
 0x11c   :  { %2713 = vmatpush2.bf16.msra.mxu0 %v4626_v34  ;;  %v4684_v34 = vld [vmem:[#allocation2 + $0x7b8] ss:$28 sps:$4 sm:$0xff]  }
 0x11d   :  { %2754 = vmatpush2.bf16.msra.mxu1 %v4629_v35  ;;  %2714 = vmatprep.subr.bf16.mxu0 %v4634_v36  ;;  %v4688_v35 = vld [vmem:[#allocation2 + $0x130] ss:$28 sps:$4 sm:$0xff]   ;;  %v4691_v36 = vld [vmem:[#allocation2 + $0x784] ss:$28 sps:$4 sm:$0xff]  }
 0x11e   :  { %2755 = vmatprep.subr.bf16.mxu1 %v4637_v37  ;;  %v4692_v37 = vld [vmem:[#allocation2 + $0x2b8] ss:$28 sps:$4 sm:$0xff]  }
 0x120   :  { %2715 = vmatpush2.bf16.msra.mxu0 %v4632_v38  ;;  %v4689_v38 = vld [vmem:[#allocation2 + $0x780] ss:$28 sps:$4 sm:$0xff]  }
 0x121   :  { %2756 = vmatpush2.bf16.msra.mxu1 %v4635_v39  ;;  %2716 = vmatprep.subr.bf16.mxu0 %v4640_v40  ;;  %v4693_v39 = vld [vmem:[#allocation2 + $0xf8] ss:$28 sps:$4 sm:$0xff]   ;;  %v4696_v40 = vld [vmem:[#allocation2 + $0x74c] ss:$28 sps:$4 sm:$0xff]  }
 0x122   :  { %2757 = vmatprep.subr.bf16.mxu1 %v4643_v41  ;;  %v4697_v41 = vld [vmem:[#allocation2 + $0x280] ss:$28 sps:$4 sm:$0xff]  }
 0x124   :  { %2717 = vmatpush2.bf16.msra.mxu0 %v4638_v43  ;;  %v4694_v43 = vld [vmem:[#allocation2 + $0x748] ss:$28 sps:$4 sm:$0xff]  }
 0x125   :  { %2758 = vmatpush2.bf16.msra.mxu1 %v4641_v44  ;;  %2718 = vmatprep.subr.bf16.mxu0 %v4646_v45  ;;  %v4698_v44 = vld [vmem:[#allocation2 + $0xc0] ss:$28 sps:$4 sm:$0xff]   ;;  %v4701_v45 = vld [vmem:[#allocation2 + $0x714] ss:$28 sps:$4 sm:$0xff]  }
 0x126   :  { %2759 = vmatprep.subr.bf16.mxu1 %v4649_v46  ;;  %v4702_v46 = vld [vmem:[#allocation2 + $0x248] ss:$28 sps:$4 sm:$0xff]  }
 0x128   :  { %2719 = vmatpush2.bf16.msra.mxu0 %v4644_v47  ;;  %v4703_v47 = vld [vmem:[#allocation2 + $0x88] ss:$28 sps:$4 sm:$0xff]  }
 0x129   :  { %2760 = vmatpush2.bf16.msra.mxu1 %v4647_v48  ;;  %2720 = vmatprep.subr.bf16.mxu0 %v4652_v50  ;;  %v4706_v48 = vld [vmem:[#allocation2 + $0xa5c] ss:$28 sps:$4 sm:$0xff]   ;;  %v4707_v50 = vld [vmem:[#allocation2 + $0x210] ss:$28 sps:$4 sm:$0xff]  }
 0x12a   :  { %2761 = vmatprep.subr.bf16.mxu1 %v4655_v51  ;;  %v4704_v51 = vld [vmem:[#allocation2 + $0xa58] ss:$28 sps:$4 sm:$0xff]  }
 0x12b   :  { %v2398_v58 = vpop.f32.mrf.mxu0 }
 0x12c   :  { %v2439_v59 = vpop.f32.mrf.mxu1  ;;  %v2399_v62 = vadd.f32 %v2398_v58, %v473_v54  ;;  %2721 = vmatpush2.bf16.msra.mxu0 %v4650_v52  ;;  %v4708_v52 = vld [vmem:[#allocation2 + $0x50] ss:$28 sps:$4 sm:$0xff]   ;;  %v4712_v54 = vld [vmem:[#allocation2 + $0x1d8] ss:$28 sps:$4 sm:$0xff]   ;;  %v4717_v58 = vld [vmem:[#allocation2 + $0x6e0] ss:$28 sps:$4 sm:$0xff]  }
 0x12d   :  { %2762 = vmatpush2.bf16.msra.mxu1 %v4653_v53  ;;  %v5041_v1 = vpop.f32.mrf.mxu0  ;;  %2722 = vmatprep.subr.bf16.mxu0 %v4658_v55  ;;  %v4711_v53 = vld [vmem:[#allocation2 + $0xa24] ss:$28 sps:$4 sm:$0xff]  }
 0x12e   :  { %v5043_v2 = vpop.f32.mrf.mxu1  ;;  %2763 = vmatprep.subr.bf16.mxu1 %v4661_v56  ;;  %v5045_v4 = vadd.f32 %v2439_v59, %v2399_v62  ;;  %v4709_v55 = vld [vmem:[#allocation2 + $0xa20] ss:$28 sps:$4 sm:$0xff]   ;;  %v4713_v56 = vld [vmem:[#allocation2 + $0x18] ss:$28 sps:$4 sm:$0xff]   ;;  %v4714_v59 = vld [vmem:[#allocation2 + $0x9e8] ss:$28 sps:$4 sm:$0xff]  }
 0x12f   :  { %v2402_v6 = vpop.f32.mrf.mxu0  ;;  %v4721_v62 = vld [vmem:[#allocation2 + $0x9b4] ss:$28 sps:$4 sm:$0xff]  }
 0x130   :  { %v2443_v8 = vpop.f32.mrf.mxu1  ;;  %2723 = vmatpush2.bf16.msra.mxu0 %v4656_v57  ;;  %v4716_v57 = vld [vmem:[#allocation2 + $0x9ec] ss:$28 sps:$4 sm:$0xff]   ;;  %v4726_v6 = vld [vmem:[#allocation2 + $0x97c] ss:$28 sps:$4 sm:$0xff]  }
 0x131   :  { %2764 = vmatpush2.bf16.msra.mxu1 %v4659_v61  ;;  %v2403_v10 = vpop.f32.mrf.mxu0  ;;  %2774 = vmatprep.subr.bf16.mxu0 %v4664_v63  ;;  %v4718_v61 = vld [vmem:[#allocation2 + $0x520] ss:$28 sps:$4 sm:$0xff]   ;;  %v4722_v63 = vld [vmem:[#allocation2 + $0x6a8] ss:$28 sps:$4 sm:$0xff]   ;;  %v476_v8 = vsub.s32 1, %v4980_v42 }
 0x132   :  { %2827 = vmatprep.subr.bf16.mxu1 %v4667_v3  ;;  %v2444_v13 = vpop.f32.mrf.mxu1  ;;  %v4719_v3 = vld [vmem:[#allocation2 + $0x9b0] ss:$28 sps:$4 sm:$0xff]  }
 0x133   :  { %2725 = vmatmul.mubr.bf16.vlgmr.msra.gmra.mxu0 %v4999_v11  ;;  %v4728_v10 = vld [vmem:[#allocation2 + $0x4b0] ss:$28 sps:$4 sm:$0xff]   ;;  %v477_v13 = vrot.slane %v5038_v49, %v476_v8  ;;  %v4772_v8 = vld [vmem:[#allocation2 + $0x718] ss:$28 sps:$4 sm:$0xff]  }
 0x134   :  { %2766 = vmatmul.mubr.bf16.vlgmr.msra.gmra.mxu1 %v5004_v18  ;;  %v5049_v16 = vpop.f32.mrf.mxu1  ;;  %2775 = vmatpush1.bf16.msra.mxu0 %v4662_v5  ;;  %v4723_v5 = vld [vmem:[#allocation2 + $0x4e8] ss:$28 sps:$4 sm:$0xff]  }
 0x135   :  { %2828 = vmatpush1.bf16.msra.mxu1 %v4665_v7  ;;  %2776 = vmatprep.subr.bf16.mxu0 %v4670_v9  ;;  %v4727_v7 = vld [vmem:[#allocation2 + $0x670] ss:$28 sps:$4 sm:$0xff]   ;;  %v4724_v9 = vld [vmem:[#allocation2 + $0x978] ss:$28 sps:$4 sm:$0xff]  }
 0x136   :  { %2829 = vmatprep.subr.bf16.mxu1 %v4673_v12  ;;  %v5051_v20 = vpop.f32.mrf.mxu1  ;;  %2847 = vmatprep.mubr.bf16.mxu1 %v4927_v28  ;;  %v4687_v28 = vld [vmem:[#allocation2 + $0x2f0] ss:$28 sps:$4 sm:$0xff]   ;;  %v4731_v12 = vld [vmem:[#allocation2 + $0x944] ss:$28 sps:$4 sm:$0xff]  }
 0x137   :  { %2806 = vmatprep.mubr.bf16.mxu0 %v5007_v22 }
 0x138   :  { %v2525_v25 = vpop.f32.mrf.mxu1  ;;  %2777 = vmatpush1.bf16.msra.mxu0 %v4668_v14  ;;  %v4729_v14 = vld [vmem:[#allocation2 + $0x940] ss:$28 sps:$4 sm:$0xff]  }
 0x139   :  { %2830 = vmatpush1.bf16.msra.mxu1 %v4671_v15  ;;  %2778 = vmatprep.subr.bf16.mxu0 %v4676_v17  ;;  %v4733_v15 = vld [vmem:[#allocation2 + $0x478] ss:$28 sps:$4 sm:$0xff]   ;;  %v4736_v17 = vld [vmem:[#allocation2 + $0x90c] ss:$28 sps:$4 sm:$0xff]  }
 0x13a   :  { %4088 = vmatprep.subr.bf16.mxu1 %v4677_v19  ;;  %v2526_v29 = vpop.f32.mrf.mxu1  ;;  %v2401_v19 = vadd.f32 %v5041_v1, %v477_v13  ;;  %v4741_v25 = vld [vmem:[#allocation2 + $0x8d4] ss:$28 sps:$4 sm:$0xff]   ;;  %v4783_v13 = vld [vmem:[%s5269_s5 + $0xb8] sm:$0xff]  }
 0x13b   :  { %v4744_v1 = vld [vmem:[#allocation2 + $0x590] ss:$28 sps:$4 sm:$0xff]  }
 0x13c   :  { %4031 = vmatmul.mubr.msk.bf16.vlgmr.msra.gmra.mxu1 %vm2360_vm0, %v5018_v30  ;;  %2779 = vmatpush1.bf16.msra.mxu0 %v4674_v21  ;;  %v4734_v21 = vld [vmem:[#allocation2 + $0x908] ss:$28 sps:$4 sm:$0xff]   ;;  %v2442_v29 = vadd.f32 %v5043_v2, %v2401_v19  ;;  %v4746_v2 = vld [vmem:[#allocation2 + $0x3d0] ss:$28 sps:$4 sm:$0xff]  }
 0x13d   :  { %4089 = vmatpush3.bf16.msra.mxu1 %v4678_v24  ;;  %2780 = vmatprep.subr.bf16.mxu0 %v4681_v26  ;;  %v4738_v24 = vld [vmem:[#allocation2 + $0x440] ss:$28 sps:$4 sm:$0xff]   ;;  %v4742_v26 = vld [vmem:[#allocation2 + $0x5c8] ss:$28 sps:$4 sm:$0xff]  }
 0x13e   :  { %4090 = vmatprep.subr.bf16.mxu1 %v4682_v27  ;;  %2888 = vmatprep.mubr.bf16.mxu1 %v4990_v60  ;;  %v4699_v60 = vld [vmem:[#allocation2 + $0x710] ss:$28 sps:$4 sm:$0xff]  }
 0x13f   :  { %v4778_v19 = vld [vmem:[%s5269_s5 + $0x48] sm:$0xff]  }
 0x140   :  { %2781 = vmatpush1.bf16.msra.mxu0 %v4679_v31 }
 0x141   :  { %4091 = vmatpush3.bf16.msra.mxu1 %v4683_v32  ;;  %2782 = vmatprep.subr.bf16.mxu0 %v4686_v33  ;;  %v4739_v32 = vld [vmem:[#allocation2 + $0x8d0] ss:$28 sps:$4 sm:$0xff]   ;;  %v4743_v33 = vld [vmem:[#allocation2 + $0x408] ss:$28 sps:$4 sm:$0xff]  }
 0x142   :  { %4092 = vmatprep.subr.bf16.mxu1 %v4687_v28 }
 0x144   :  { %2783 = vmatpush1.bf16.msra.mxu0 %v4684_v34  ;;  %v4745_v34 = vld [vmem:[#allocation2 + $0xa60] ss:$28 sps:$4 sm:$0xff]  }
 0x145   :  { %4093 = vmatpush3.bf16.msra.mxu1 %v4688_v35  ;;  %2784 = vmatprep.subr.bf16.mxu0 %v4691_v36 }
 0x146   :  { %4094 = vmatprep.subr.bf16.mxu1 %v4692_v37 }
 0x148   :  { %2785 = vmatpush1.bf16.msra.mxu0 %v4689_v38 }
 0x149   :  { %4095 = vmatpush3.bf16.msra.mxu1 %v4693_v39  ;;  %2786 = vmatprep.subr.bf16.mxu0 %v4696_v40  ;;  %v4748_v40 = vld [vmem:[#allocation2 + $0x558] ss:$28 sps:$4 sm:$0xff]  }
 0x14a   :  { %4096 = vmatprep.subr.bf16.mxu1 %v4697_v41  ;;  %v4749_v41 = vld [vmem:[#allocation2 + $0xa28] ss:$28 sps:$4 sm:$0xff]  }
 0x14c   :  { %2787 = vmatpush1.bf16.msra.mxu0 %v4694_v43 }
 0x14d   :  { %4097 = vmatpush3.bf16.msra.mxu1 %v4698_v44  ;;  %2788 = vmatprep.subr.bf16.mxu0 %v4701_v45  ;;  %v4751_v44 = vld [vmem:[#allocation2 + $0x868] ss:$28 sps:$4 sm:$0xff]  }
 0x14e   :  { %4098 = vmatprep.subr.bf16.mxu1 %v4702_v46 }
 0x150   :  { %2789 = vmatpush1.bf16.msra.mxu0 %v4699_v60  ;;  %v4753_v60 = vld [vmem:[#allocation2 + $0x830] ss:$28 sps:$4 sm:$0xff]  }
 0x151   :  { %4099 = vmatpush3.bf16.msra.mxu1 %v4703_v47  ;;  %2790 = vmatprep.subr.bf16.mxu0 %v4706_v48  ;;  %v4754_v47 = vld [vmem:[#allocation2 + $0xad0] ss:$28 sps:$4 sm:$0xff]   ;;  %v4928_v48 = vmov 0.0  }
 0x152   :  { %4100 = vmatprep.subr.bf16.mxu1 %v4707_v50  ;;  %v4755_v50 = vld [vmem:[#allocation2 + $0x9b8] ss:$28 sps:$4 sm:$0xff]  }
 0x154   :  { %2791 = vmatpush2.bf16.msra.mxu0 %v4704_v51 }
 0x155   :  { %4101 = vmatpush3.bf16.msra.mxu1 %v4708_v52  ;;  %2792 = vmatprep.subr.bf16.mxu0 %v4711_v53  ;;  %v4756_v52 = vld [vmem:[#allocation2 + $0x7f8] ss:$28 sps:$4 sm:$0xff]  }
 0x156   :  { %4102 = vmatprep.subr.bf16.mxu1 %v4712_v54  ;;  %v4757_v53 = vld [vmem:[#allocation2 + $0xa98] ss:$28 sps:$4 sm:$0xff]  }
 0x157   :  { %v4759_v54 = vld [vmem:[%s5269_s5 + $0x78] sm:$0xff]  }
 0x158   :  { %2793 = vmatpush2.bf16.msra.mxu0 %v4709_v55 }
 0x159   :  { %4103 = vmatpush3.bf16.msra.mxu1 %v4713_v56  ;;  %2794 = vmatprep.subr.bf16.mxu0 %v4716_v57  ;;  %v4761_v56 = vld [vmem:[%s5269_s5 + $0x38] sm:$0xff]   ;;  %v4762_v57 = vld [vmem:[#allocation2 + $0x948] ss:$28 sps:$4 sm:$0xff]  }
 0x15a   :  { %4110 = vmatprep.subr.bf16.mxu1 %v4717_v58  ;;  %v4763_v58 = vld [vmem:[%s5269_s5 + $0x70] sm:$0xff]  }
 0x15c   :  { %2889 = vmatmul.mubr.bf16.vlgmr.msra.gmra.mxu1 %v4999_v11  ;;  %2795 = vmatpush2.bf16.msra.mxu0 %v4714_v59  ;;  %v4732_v11 = vld [vmem:[#allocation2 + $0x638] ss:$28 sps:$4 sm:$0xff]  }
 0x15d   :  { %4111 = vmatpush3.bf16.msra.mxu1 %v4718_v61  ;;  %2796 = vmatprep.subr.bf16.mxu0 %v4721_v62  ;;  %v4764_v61 = vld [vmem:[#allocation2 + $0x788] ss:$28 sps:$4 sm:$0xff]   ;;  %v4765_v62 = vld [vmem:[%s5269_s5 + $0x30] sm:$0xff]  }
 0x15e   :  { %4112 = vmatprep.subr.bf16.mxu1 %v4722_v63  ;;  %2928 = vmatprep.mubr.bf16.mxu1 %v4994_v0  ;;  %v4737_v0 = vld [vmem:[#allocation2 + $0x600] ss:$28 sps:$4 sm:$0xff]   ;;  %v4766_v63 = vld [vmem:[#allocation2 + $0x910] ss:$28 sps:$4 sm:$0xff]  }
 0x160   :  { %2797 = vmatpush2.bf16.msra.mxu0 %v4719_v3  ;;  %v4767_v3 = vld [vmem:[%s5269_s5 + $0x68] sm:$0xff]  }
 0x161   :  { %4113 = vmatpush3.bf16.msra.mxu1 %v4723_v5  ;;  %2798 = vmatprep.subr.bf16.mxu0 %v4726_v6  ;;  %v4768_v5 = vld [vmem:[#allocation2 + $0x750] ss:$28 sps:$4 sm:$0xff]   ;;  %v4770_v6 = vld [vmem:[#allocation2 + $0x8d8] ss:$28 sps:$4 sm:$0xff]  }
 0x162   :  { %4114 = vmatprep.subr.bf16.mxu1 %v4727_v7  ;;  %v4771_v7 = vld [vmem:[%s5269_s5 + $0x60] sm:$0xff]  }
 0x164   :  { %2799 = vmatpush2.bf16.msra.mxu0 %v4724_v9  ;;  %v4773_v9 = vld [vmem:[%s5269_s5 + $0x20] sm:$0xff]  }
 0x165   :  { %4115 = vmatpush3.bf16.msra.mxu1 %v4728_v10  ;;  %2800 = vmatprep.subr.bf16.mxu0 %v4731_v12  ;;  %v4774_v10 = vld [vmem:[%s5269_s5 + $0x58] sm:$0xff]  }
 0x166   :  { %4116 = vmatprep.subr.bf16.mxu1 %v4732_v11  ;;  %v4782_v12 = vld [vmem:[%s5269_s5 + $0xf8] sm:$0xff]  }
 0x167   :  { %v4775_v11 = vld [vmem:[%s5269_s5 + $0x18] sm:$0xff]  }
 0x168   :  { %2801 = vmatpush2.bf16.msra.mxu0 %v4729_v14  ;;  %v4776_v14 = vld [vmem:[%s5269_s5 + $0x50] sm:$0xff]  }
 0x169   :  { %4117 = vmatpush3.bf16.msra.mxu1 %v4733_v15  ;;  %2802 = vmatprep.subr.bf16.mxu0 %v4736_v17  ;;  %v4784_v15 = vld [vmem:[%s5269_s5 + $0xf0] sm:$0xff]  }
 0x16a   :  { %4118 = vmatprep.subr.bf16.mxu1 %v4737_v0  ;;  %v4777_v17 = vld [vmem:[%s5269_s5 + $0x10] sm:$0xff]  }
 0x16b   :  { %v2480_v27 = vpop.f32.mrf.mxu0  ;;  %v4785_v0 = vld [vmem:[%s5269_s5 + $0xb0] sm:$0xff]  }
 0x16c   :  { %v2481_v31 = vadd.f32 %v2480_v27, %v5045_v4  ;;  %2803 = vmatpush2.bf16.msra.mxu0 %v4734_v21  ;;  %v4747_v4 = vld [vmem:[#allocation2 + $0x8a0] ss:$28 sps:$4 sm:$0xff]   ;;  %v4779_v21 = vld [vmem:[%s5269_s5 + $0x8] sm:$0xff]  }
 0x16d   :  { %4119 = vmatpush3.bf16.msra.mxu1 %v4738_v24  ;;  %v2482_v28 = vpop.f32.mrf.mxu0  ;;  %2804 = vmatprep.subr.bf16.mxu0 %v4741_v25  ;;  %v4787_v24 = vld [vmem:[%s5269_s5 + $0xa8] sm:$0xff]   ;;  %v4780_v25 = vld [vmem:[%s5269_s5 + $0x40] sm:$0xff]  }
 0x16e   :  { %4120 = vmatprep.subr.bf16.mxu1 %v4742_v26  ;;  %v5066_v35 = vadd.f32 %v5049_v16, %v2481_v31  ;;  %v2483_v36 = vadd.f32 %v2482_v28, %v2442_v29  ;;  %v4750_v16 = vld [vmem:[#allocation2 + $0x398] ss:$28 sps:$4 sm:$0xff]   ;;  %v4788_v26 = vld [vmem:[%s5269_s5 + $0xe0] sm:$0xff]  }
 0x16f   :  { %v2484_v37 = vpop.f32.mrf.mxu0  ;;  %v4781_v27 = vld [vmem:[%s5269_s5] sm:$0xff]   ;;  %v4790_v31 = vld [vmem:[%s5269_s5 + $0xd8] sm:$0xff]  }
 0x170   :  { %v2524_v38 = vadd.f32 %v5051_v20, %v2483_v36  ;;  %2805 = vmatpush2.bf16.msra.mxu0 %v4739_v32  ;;  %v4752_v20 = vld [vmem:[#allocation2 + $0x9f0] ss:$28 sps:$4 sm:$0xff]   ;;  %v4789_v29 = vld [vmem:[%s5269_s5 + $0xa0] sm:$0xff]   ;;  %v4798_v32 = vld [vmem:[%s5269_s5 + $0x178] sm:$0xff]  }
 0x171   :  { %4121 = vmatpush3.bf16.msra.mxu1 %v4743_v33  ;;  %v2485_v39 = vpop.f32.mrf.mxu0  ;;  %4132 = vmatprep.subr.bf16.mxu0 %v4745_v34  ;;  %v4791_v28 = vld [vmem:[%s5269_s5 + $0x98] sm:$0xff]   ;;  %v4800_v36 = vld [vmem:[%s5269_s5 + $0x170] sm:$0xff]  }
 0x172   :  { %4122 = vmatprep.subr.bf16.mxu1 %v4744_v1  ;;  %4818 = vtanh.f32 %v2524_v38  ;;  %v4799_v1 = vld [vmem:[%s5269_s5 + $0x138] sm:$0xff]   ;;  %v4793_v37 = vld [vmem:[%s5269_s5 + $0x90] sm:$0xff]   ;;  %v4795_v39 = vld [vmem:[%s5269_s5 + $0x88] sm:$0xff]  }
 0x173   :  { %2807 = vmatmul.mubr.bf16.vlgmr.msra.gmra.mxu0 %v5010_v23  ;;  %4820 = vtanh.f32 %v5066_v35  ;;  %v4792_v35 = vld [vmem:[%s5269_s5 + $0xd0] sm:$0xff]  }
 0x174   :  { %v5070_v43 = vpop.f32.mrf.mxu1  ;;  %4133 = vmatpush3.bf16.msra.mxu0 %v4747_v4  ;;  %2968 = vmatprep.mubr.bf16.mxu0 %v5007_v22  ;;  %v4758_v22 = vld [vmem:[#allocation2 + $0x980] ss:$28 sps:$4 sm:$0xff]   ;;  %v4801_v38 = vld [vmem:[%s5269_s5 + $0x130] sm:$0xff]   ;;  %v480_v4 = vsub.s32 2, %v4980_v42 }
 0x175   :  { %4123 = vmatpush3.bf16.msra.mxu1 %v4746_v2  ;;  %4134 = vmatprep.subr.bf16.mxu0 %v4749_v41  ;;  %v4794_v2 = vld [vmem:[%s5269_s5 + $0xc8] sm:$0xff]   ;;  %v484_v41 = vsub.s32 3, %v4980_v42 }
 0x176   :  { %4124 = vmatprep.subr.bf16.mxu1 %v4748_v40  ;;  %v5072_v45 = vpop.f32.mrf.mxu1  ;;  %v4796_v40 = vld [vmem:[%s5269_s5 + $0xc0] sm:$0xff]  }
 0x178   :  { %v2566_v46 = vpop.f32.mrf.mxu1  ;;  %4135 = vmatpush3.bf16.msra.mxu0 %v4751_v44  ;;  %v481_v44 = vrot.slane %v5038_v49, %v480_v4  ;;  %v488_v4 = vsub.s32 4, %v4980_v42 }
 0x179   :  { %4125 = vmatpush3.bf16.msra.mxu1 %v4750_v16  ;;  %4136 = vmatprep.subr.bf16.mxu0 %v4752_v20  ;;  %v4797_v20 = vld [vmem:[%s5269_s5 + $0x80] sm:$0xff]  }
 0x17a   :  { %4229 = vmatprep.subr.bf16.mxu1 %v4928_v48  ;;  %v2567_v51 = vpop.f32.mrf.mxu1 }
 0x17c   :  { %2929 = vmatmul.mubr.bf16.vlgmr.msra.gmra.mxu1 %v5004_v18  ;;  %4137 = vmatpush3.bf16.msra.mxu0 %v4753_v60  ;;  %v4760_v18 = vld [vmem:[#allocation2 + $0x7c0] ss:$28 sps:$4 sm:$0xff]   ;;  %v485_v60 = vrot.slane %v5038_v49, %v484_v41 }
 0x17d   :  { %4230 = vmatpush3.bf16.msra.mxu1 %v4754_v47  ;;  %4138 = vmatprep.subr.bf16.mxu0 %v4755_v50  ;;  %v2563_v50 = vadd.f32 %v5070_v43, %v481_v44 }
 0x17e   :  { %4231 = vmatprep.subr.bf16.mxu1 %v4928_v48  ;;  %4233 = vmatprep.mubr.msk.bf16.mxu1 %vm4929_vm1, %v4928_v48 }
 0x17f   :  { %v4819_v55 = vpop.eup %4818 }
 0x180   :  { %4139 = vmatpush3.bf16.msra.mxu0 %v4756_v52  ;;  %v3029_v59 = vpack.c.bf16 %v4819_v55, %v4819_v55  ;;  %v4821_v33 = vpop.eup %4820  ;;  %v2565_v52 = vadd.f32 %v5072_v45, %v485_v60  ;;  %v4804_v45 = vld [vmem:[%s5269_s5 + $0x160] sm:$0xff]  }
 0x181   :  { %4232 = vmatpush3.bf16.msra.mxu1 %v4757_v53  ;;  %4140 = vmatprep.subr.bf16.mxu0 %v4758_v22  ;;  %v3028_v34 = vpack.c.bf16 %v4821_v33, %v4821_v33  ;;  %v4802_v22 = vld [vmem:[%s5269_s5 + $0x168] sm:$0xff]  }
 0x182   :  { %4157 = vmatprep.subr.bf16.mxu1 %v4759_v54 }
 0x184   :  { %4234 = vmatmul.mubr.msk.bf16.vlgmr.msra.gmra.mxu1 %vm2360_vm0, %v5018_v30  ;;  %4141 = vmatpush3.bf16.msra.mxu0 %v4760_v18  ;;  %v4769_v30 = vld [vmem:[%s5269_s5 + $0x28] sm:$0xff]  }
 0x185   :  { %4158 = vmatpush3.bf16.msra.mxu1 %v4761_v56  ;;  %3470 = vmatprep.mubr.bf16.mxu1 %v3029_v59  ;;  %v4803_v18 = vld [vmem:[%s5269_s5 + $0x128] sm:$0xff]  }
 0x186   :  { %4142 = vmatprep.subr.bf16.mxu0 %v4762_v57  ;;  %4159 = vmatprep.subr.bf16.mxu1 %v4763_v58 }
 0x188   :  { %4143 = vmatpush3.bf16.msra.mxu0 %v4764_v61 }
 0x189   :  { %4160 = vmatpush3.bf16.msra.mxu1 %v4765_v62  ;;  %4144 = vmatprep.subr.bf16.mxu0 %v4766_v63 }
 0x18a   :  { %4161 = vmatprep.subr.bf16.mxu1 %v4767_v3  ;;  %v4805_v3 = vld [vmem:[%s5269_s5 + $0x120] sm:$0xff]  }
 0x18c   :  { %4145 = vmatpush3.bf16.msra.mxu0 %v4768_v5 }
 0x18d   :  { %4162 = vmatpush3.bf16.msra.mxu1 %v4769_v30  ;;  %4146 = vmatprep.subr.bf16.mxu0 %v4770_v6 }
 0x18e   :  { %4163 = vmatprep.subr.bf16.mxu1 %v4771_v7  ;;  %v4806_v7 = vld [vmem:[%s5269_s5 + $0x158] sm:$0xff]  }
 0x190   :  { %4147 = vmatpush3.bf16.msra.mxu0 %v4772_v8  ;;  %v4807_v8 = vld [vmem:[%s5269_s5 + $0x118] sm:$0xff]  }
 0x191   :  { %4164 = vmatpush3.bf16.msra.mxu1 %v4773_v9  ;;  %4179 = vmatprep.subr.bf16.mxu0 %v4782_v12  ;;  %v4808_v9 = vld [vmem:[%s5269_s5 + $0x150] sm:$0xff]   ;;  %v4810_v12 = vld [vmem:[%s5269_s5 + $0x148] sm:$0xff]  }
 0x192   :  { %4165 = vmatprep.subr.bf16.mxu1 %v4774_v10  ;;  %v4809_v10 = vld [vmem:[%s5269_s5 + $0x110] sm:$0xff]  }
 0x193   :  { %2969 = vmatmul.mubr.bf16.vlgmr.msra.gmra.mxu0 %v5010_v23  ;;  %v4786_v23 = vld [vmem:[%s5269_s5 + $0xe8] sm:$0xff]  }
 0x194   :  { %4180 = vmatpush3.bf16.msra.mxu0 %v4783_v13 }
 0x195   :  { %4166 = vmatpush3.bf16.msra.mxu1 %v4775_v11  ;;  %4181 = vmatprep.subr.bf16.mxu0 %v4784_v15  ;;  %v4811_v11 = vld [vmem:[%s5269_s5 + $0x108] sm:$0xff]   ;;  %v4813_v15 = vld [vmem:[%s5269_s5 + $0x100] sm:$0xff]  }
 0x196   :  { %4167 = vmatprep.subr.bf16.mxu1 %v4776_v14  ;;  %v4812_v14 = vld [vmem:[%s5269_s5 + $0x140] sm:$0xff]  }
 0x198   :  { %4182 = vmatpush3.bf16.msra.mxu0 %v4785_v0 }
 0x199   :  { %4168 = vmatpush3.bf16.msra.mxu1 %v4777_v17  ;;  %4183 = vmatprep.subr.bf16.mxu0 %v4786_v23  ;;  %v4814_v23 = vld [vmem:[%s5269_s5 + $0x188] sm:$0xff]  }
 0x19a   :  { %4169 = vmatprep.subr.bf16.mxu1 %v4778_v19 }
 0x19c   :  { %4184 = vmatpush3.bf16.msra.mxu0 %v4787_v24 }
 0x19d   :  { %4170 = vmatpush3.bf16.msra.mxu1 %v4779_v21  ;;  %4185 = vmatprep.subr.bf16.mxu0 %v4788_v26  ;;  %v4815_v21 = vld [vmem:[%s5269_s5 + $0x180] sm:$0xff]  }
 0x19e   :  { %4171 = vmatprep.subr.bf16.mxu1 %v4780_v25 }
 0x1a0   :  { %4186 = vmatpush3.bf16.msra.mxu0 %v4789_v29 }
 0x1a1   :  { %4172 = vmatpush3.bf16.msra.mxu1 %v4781_v27  ;;  %4187 = vmatprep.subr.bf16.mxu0 %v4790_v31 }
 0x1a2   :  { %4201 = vmatprep.subr.bf16.mxu1 %v4798_v32 }
 0x1a4   :  { %3471 = vmatmul.mubr.bf16.vlgmr.msra.gmra.mxu1 %v3028_v34  ;;  %4188 = vmatpush3.bf16.msra.mxu0 %v4791_v28 }
 0x1a5   :  { %4202 = vmatpush3.bf16.msra.mxu1 %v4799_v1  ;;  %4189 = vmatprep.subr.bf16.mxu0 %v4792_v35 }
 0x1a6   :  { %4203 = vmatprep.subr.bf16.mxu1 %v4800_v36 }
 0x1a8   :  { %4190 = vmatpush3.bf16.msra.mxu0 %v4793_v37 }
 0x1a9   :  { %4204 = vmatpush3.bf16.msra.mxu1 %v4801_v38  ;;  %4191 = vmatprep.subr.bf16.mxu0 %v4794_v2 }
 0x1aa   :  { %4205 = vmatprep.subr.bf16.mxu1 %v4802_v22 }
 0x1ab   :  { %v2603_v16 = vpop.f32.mrf.mxu0 }
 0x1ac   :  { %4192 = vmatpush3.bf16.msra.mxu0 %v4795_v39  ;;  %v2604_v53 = vadd.f32 %v2603_v16, %v2563_v50  ;;  %v492_v39 = vsub.s32 5, %v4980_v42 }
 0x1ad   :  { %v2605_v46 = vpop.f32.mrf.mxu0  ;;  %4193 = vmatprep.subr.bf16.mxu0 %v4796_v40  ;;  %4206 = vmatpush3.bf16.msra.mxu1 %v4803_v18  ;;  %v489_v40 = vrot.slane %v5038_v49, %v488_v4 }
 0x1ae   :  { %v2606_v56 = vadd.f32 %v2605_v46, %v2565_v52  ;;  %4207 = vmatprep.subr.bf16.mxu1 %v4804_v45  ;;  %v493_v41 = vrot.slane %v5038_v49, %v492_v39 }
 0x1af   :  { %v2607_v47 = vpop.f32.mrf.mxu0 }
 0x1b0   :  { %4194 = vmatpush3.bf16.msra.mxu0 %v4797_v20 }
 0x1b1   :  { %v2608_v51 = vpop.f32.mrf.mxu0  ;;  %4237 = vmatprep.subr.bf16.mxu0 %v4928_v48  ;;  %4208 = vmatpush3.bf16.msra.mxu1 %v4805_v3  ;;  %v496_v3 = vsub.s32 6, %v4980_v42 }
 0x1b2   :  { %4209 = vmatprep.subr.bf16.mxu1 %v4806_v7 }
 0x1b3   :  { %v2685_v55 = vpop.f32.mrf.mxu0 }
 0x1b4   :  { %v2644_v54 = vpop.f32.mrf.mxu1 }
 0x1b5   :  { %v2645_v57 = vadd.f32 %v2644_v54, %v2604_v53  ;;  %v2687_v58 = vpop.f32.mrf.mxu0  ;;  %4210 = vmatpush3.bf16.msra.mxu1 %v4807_v8 }
 0x1b6   :  { %v2646_v43 = vpop.f32.mrf.mxu1  ;;  %4211 = vmatprep.subr.bf16.mxu1 %v4808_v9 }
 0x1b7   :  { %v2686_v59 = vadd.f32 %v2685_v55, %v2645_v57  ;;  %v2647_v61 = vadd.f32 %v2646_v43, %v2606_v56  ;;  %v2689_v62 = vpop.f32.mrf.mxu0 }
 0x1b8   :  { %v2648_v63 = vpop.f32.mrf.mxu1 }
 0x1b9   :  { %v2688_v5 = vadd.f32 %v2687_v58, %v2647_v61  ;;  %4822 = vtanh.f32 %v2686_v59  ;;  %v2690_v30 = vpop.f32.mrf.mxu0  ;;  %4212 = vmatpush3.bf16.msra.mxu1 %v4809_v10 }
 0x1ba   :  { %v2649_v6 = vpop.f32.mrf.mxu1  ;;  %4213 = vmatprep.subr.bf16.mxu1 %v4810_v12 }
 0x1bb   :  { %4824 = vtanh.f32 %v2688_v5  ;;  %v4832_v5 = vld [vmem:[%s5267_s3] sm:$0x7f] }
 0x1bc   :  { %v497_v30 = vrot.slane %v4832_v5, %v496_v3 }
 0x1bd   :  { %4214 = vmatpush3.bf16.msra.mxu1 %v4811_v11 }
 0x1be   :  { %4215 = vmatprep.subr.bf16.mxu1 %v4812_v14 }
 0x1c1   :  { %4216 = vmatpush3.bf16.msra.mxu1 %v4813_v15 }
 0x1c6   :  { %v4823_v13 = vpop.eup %4822 }
 0x1c7   :  { %v3030_v19 = vpack.c.bf16 %v4823_v13, %v4823_v13 }
 0x1c8   :  { %v4825_v17 = vpop.eup %4824 }
 0x1c9   :  { %v3031_v0 = vpack.c.bf16 %v4825_v17, %v4825_v17 }
 0x1cb   :  { %3510 = vmatprep.mubr.bf16.mxu0 %v3031_v0 }
 0x1cc   :  { %3511 = vmatmul.mubr.bf16.vlgmr.msra.gmra.mxu0 %v3030_v19 }
 0x1cd   :  { %4241 = vmatprep.mubr.msk.bf16.mxu0 %vm4929_vm1, %v4928_v48  ;;  %4238 = vmatpush3.bf16.msra.mxu0 %v4814_v23 }
 0x1ce   :  { %4239 = vmatprep.subr.bf16.mxu0 %v4928_v48 }
 0x1d1   :  { %4240 = vmatpush3.bf16.msra.mxu0 %v4815_v21 }
 0x1d2   :  { %4245 = vmatprep.subr.bf16.mxu0 %v4928_v48 }
 0x1f3   :  { %v2726_v24 = vpop.f32.mrf.mxu0 }
 0x1f4   :  { %v2767_v25 = vpop.f32.mrf.mxu1  ;;  %v2727_v16 = vadd.f32 %v2726_v24, %v489_v40 }
 0x1f5   :  { %v2728_v26 = vpop.f32.mrf.mxu0 }
 0x1f6   :  { %v2769_v27 = vpop.f32.mrf.mxu1  ;;  %v2729_v44 = vadd.f32 %v2728_v26, %v493_v41  ;;  %v2768_v20 = vadd.f32 %v2767_v25, %v2727_v16  ;;  %v4816_v25 = vld [vmem:[#allocation5 + $0x8] sm:$0xff]  }
 0x1f7   :  { %v2730_v29 = vpop.f32.mrf.mxu0 }
 0x1f8   :  { %v2771_v31 = vpop.f32.mrf.mxu1  ;;  %v2770_v60 = vadd.f32 %v2769_v27, %v2729_v44  ;;  %v4817_v27 = vld [vmem:[#allocation5] sm:$0xff]   ;;  %v3023_v29 = vld [vmem:[%s5264_s0] sm:$0x1]  ;;  %s4930_s0 = smov [#allocation8]  }
 0x1f9   :  { %v2731_v32 = vpop.f32.mrf.mxu0  ;;  %s3669_s18 = sshll.u32 %s4930_s0, 4  ;;  %s3670_s18 = int_to_ptr.vmem [resolvable:$true] %s3669_s18 }
 0x1fa   :  { %v2772_v33 = vpop.f32.mrf.mxu1  ;;  %s4893_s19 = scalar_lea.vmem %s3670_s18, 32  ;;  %p4898_p2 = scmp.lt.s32.totalorder %s3670_s18, %s3670_s18 }
 0x1fb   :  { %p4894_p1 = scmp.ne.s32.totalorder %s3670_s18, %s4893_s19  ;;  %p4899_p3 = scmp.lt.s32.totalorder %s4893_s19, %s4893_s19 }
 0x1fc   :  { %v2849_v28 = vpop.f32.mrf.mxu1 }
 0x1fd   :  { %p4900_p4 = por %p4899_p3, %p4898_p2 }
 0x1fe   :  { %v2851_v1 = vpop.f32.mrf.mxu1 }
 0x1ff   :  { %p4901_p5 = pnand %p4900_p4, %p4894_p1 }
 0x200   :  { %v2853_v34 = vpop.f32.mrf.mxu1 }
 0x202   :  { %v2854_v35 = vpop.f32.mrf.mxu1 }
 0x21c   :  { %v4104_v36 = vpop.f32.mrf.mxu1 }
 0x21e   :  { %v4105_v37 = vpop.f32.mrf.mxu1 }
 0x21f   :  { %v4106_v6 = vadd.f32 %v4105_v37, %v4104_v36 }
 0x220   :  { %v4107_v38 = vpop.f32.mrf.mxu1 }
 0x221   :  { %v2891_v9 = vadd.f32 %v4106_v6, %v497_v30 }
 0x222   :  { %v4108_v2 = vpop.f32.mrf.mxu1 }
 0x233   :  { %v2808_v46 = vpop.f32.mrf.mxu0 }
 0x234   :  { %v2809_v47 = vadd.f32 %v2808_v46, %v2768_v20  ;;  %v4087_v20 = vld [vmem:[#allocation7] ss:$0 sm:$0xff] }
 0x235   :  { %v2810_v50 = vpop.f32.mrf.mxu0 }
 0x236   :  { %v2850_v51 = vadd.f32 %v2849_v28, %v2809_v47  ;;  %v2811_v52 = vadd.f32 %v2810_v50, %v2770_v60 }
 0x237   :  { %v2812_v53 = vpop.f32.mrf.mxu0 }
 0x238   :  { %v2852_v22 = vadd.f32 %v2851_v1, %v2811_v52  ;;  %4826 = vtanh.f32 %v2850_v51 }
 0x239   :  { %v2813_v54 = vpop.f32.mrf.mxu0 }
 0x23a   :  { %4828 = vtanh.f32 %v2852_v22 }
 0x23c   :  { %v4126_v55 = vpop.f32.mrf.mxu1 }
 0x23e   :  { %v4127_v18 = vpop.f32.mrf.mxu1 }
 0x23f   :  { %v4128_v7 = vadd.f32 %v4127_v18, %v4126_v55 }
 0x240   :  { %v4129_v56 = vpop.f32.mrf.mxu1 }
 0x241   :  { %v2931_v12 = vadd.f32 %v4128_v7, %v2891_v9 }
 0x242   :  { %v4130_v57 = vpop.f32.mrf.mxu1 }
 0x244   :  { %v3010_v43 = vpop.f32.mrf.mxu1 }
 0x245   :  { %v4827_v58 = vpop.eup %4826 }
 0x246   :  { %v4235_v49 = vpop.f32.mrf.mxu1  ;;  %v3032_v62 = vpack.c.bf16 %v4827_v58, %v4827_v58 }
 0x247   :  { %v4829_v59 = vpop.eup %4828 }
 0x248   :  { %v3013_v61 = vpop.f32.mrf.mxu1  ;;  %v3033_v45 = vpack.c.bf16 %v4829_v59, %v4829_v59 }
 0x24a   :  { %v4236_v63 = vpop.f32.mrf.mxu1  ;;  %3550 = vmatprep.mubr.bf16.mxu1 %v3033_v45 }
 0x24b   :  { %3551 = vmatmul.mubr.bf16.vlgmr.msra.gmra.mxu1 %v3032_v62 }
 0x253   :  { %v4148_v8 = vpop.f32.mrf.mxu0 }
 0x255   :  { %v4149_v10 = vpop.f32.mrf.mxu0 }
 0x256   :  { %v4150_v11 = vadd.f32 %v4149_v10, %v4148_v8 }
 0x257   :  { %v4151_v13 = vpop.f32.mrf.mxu0 }
 0x258   :  { %v2971_v14 = vadd.f32 %v4150_v11, %v2931_v12 }
 0x259   :  { %v4152_v15 = vpop.f32.mrf.mxu0 }
 0x25a   :  { %v3011_v17 = vadd.f32 %v3010_v43, %v2971_v14 }
 0x25c   :  { %4830 = vtanh.f32 %v3011_v17 }
 0x264   :  { %v4173_v0 = vpop.f32.mrf.mxu1 }
 0x266   :  { %v4174_v19 = vpop.f32.mrf.mxu1 }
 0x267   :  { %v4175_v42 = vadd.f32 %v4174_v19, %v4173_v0 }
 0x268   :  { %v4176_v23 = vpop.f32.mrf.mxu1 }
 0x269   :  { %v4831_v21 = vpop.eup %4830 }
 0x26a   :  { %v4177_v24 = vpop.f32.mrf.mxu1  ;;  %v3034_v26 = vpack.c.bf16 %v4831_v21, %v4831_v21 }
 0x26c   :  { %4242 = vmatmul.mubr.msk.bf16.vlgmr.msra.gmra.mxu0 %vm2360_vm0, %v3034_v26 }
 0x26d   :  { %4246 = vmatpush3.bf16.msra.mxu0 %v4816_v25  ;;  %4249 = vmatprep.mubr.msk.bf16.mxu0 %vm4929_vm1, %v4928_v48 }
 0x26e   :  { %4247 = vmatprep.subr.bf16.mxu0 %v4928_v48 }
 0x271   :  { %4248 = vmatpush3.bf16.msra.mxu0 %v4817_v27 }
 0x274   :  { %4250 = vmatmul.mubr.msk.bf16.vlgmr.msra.gmra.mxu0 %vm2360_vm0, %v3023_v29 }
 0x28c   :  { %v4195_v31 = vpop.f32.mrf.mxu0 }
 0x28e   :  { %v4196_v32 = vpop.f32.mrf.mxu0 }
 0x28f   :  { %v4197_v33 = vadd.f32 %v4196_v32, %v4195_v31 }
 0x290   :  { %v4198_v28 = vpop.f32.mrf.mxu0 }
 0x291   :  { %v3513_v1 = vadd.f32 %v4197_v33, %v4175_v42 }
 0x292   :  { %v4199_v34 = vpop.f32.mrf.mxu0 }
 0x30b   :  { %v4217_v35 = vpop.f32.mrf.mxu1 }
 0x30d   :  { %v4218_v36 = vpop.f32.mrf.mxu1 }
 0x30e   :  { %v4219_v4 = vadd.f32 %v4218_v36, %v4217_v35 }
 0x30f   :  { %v4220_v37 = vpop.f32.mrf.mxu1 }
 0x310   :  { %v3553_v40 = vadd.f32 %v4219_v4, %v3513_v1 }
 0x311   :  { %v4221_v38 = vpop.f32.mrf.mxu1 }
 0x32c   :  { %v3592_v2 = vpop.f32.mrf.mxu0 }
 0x32d   :  { %v3593_v16 = vadd.f32 %v3592_v2, %v3553_v40 }
 0x32e   :  { %v4243_v48 = vpop.f32.mrf.mxu0 }
 0x330   :  { %v3595_v39 = vpop.f32.mrf.mxu0 }
 0x332   :  { %v4244_v41 = vpop.f32.mrf.mxu0 }
 0x334   :  { %v3647_v44 = vpop.f32.mrf.mxu0 }
 0x335   :  { %v3648_v46 = vadd.f32 %v3647_v44, %v3593_v16 }
 0x336   :  { %v4251_v60 = vpop.f32.mrf.mxu0 }
 0x337   :  { %v3660_v47 = vadd.f32 %v4087_v20, %v3648_v46 }
 0x338   :  { %v3650_v50 = vpop.f32.mrf.mxu0 }
 0x339   :  { %3662 = vst.msk [vmem:[#allocation8] sm:$0x3] %vm3661_vm2, %v3660_v47 }
 0x33a   :  { %v4252_v51 = vpop.f32.mrf.mxu0 }
 0x33b   :  { %4904 = shalt.err (!%p4901_p5)
}
 0x33c   :  { %3672 = dma.vmem_to_hbm [thread:$0]  %s3670_s18, 32, %s5271_s7, [#allocation4]  }
 0x33d   :  { %4917 = dma.done.wait [#allocation4], 32  }
 0x33e   :  { %4918 = vsyncadd [#allocation4], 4294967264 }
 0x33f   :  { %3676 = vsyncpa [#allocation3], 1 }
 0x340   :  { %3677 = vsyncpa [#allocation6], 1 }
 0x341   :  { %3678 = vsyncpa [#allocation4], 1 }

</bundles_post_ra>
